<compile_context>
chip_gen: v6e
topology: v6e:2x2x1
jax: 0.10.0
libtpu: 0.0.40
codegen_flags: <defaults>
</compile_context>

<pallas_src>
import functools
import numpy as np
import jax
import jax.numpy as jnp
from jax import lax
from jax.experimental import pallas as pl
from jax.experimental.pallas import tpu as pltpu


# ------------------------------- Pallas kernel ------------------------------

def _gelayer_down_kernel(xph_ref, w1x_ref, b1x_ref, wd1_ref, bd1_ref,
                         wd2_ref, bd2_ref, wsd_ref, bsd_ref,
                         w2t_ref, wst_ref, bpw_ref, o_ref,
                         im2col_ref, ph00_ref, ph01_ref, ph10_ref, ph11_ref,
                         mpad_ref):
    """Whole GELayerDown forward for one image, fully fused in VMEM.

    xph_ref : (1, 4, Ho+1, Wo+1, Cin) f32 parity phases of the padded input:
              xph[p, a, b, :] = xpad[2a + p//2, 2b + p%2, :]
    w1x_ref : (9*Cin, Cmid) bf16 conv1 (BN folded) in im2col layout with the
              dwconv1 grouped channel expansion folded in; b1x_ref (1, Cmid).
    wd1/wd2 : (9, Cmid) f32 depthwise tap rows (t = kh*3 + kw); bd1/bd2 (1, Cmid)
    wsd     : (9, Cin) f32 shortcut depthwise; bsd (1, Cin)
    w2t     : (Cout, Cmid) bf16; wst (Cout, Cin) bf16; bpw (Cout, 1) f32
    o_ref   : (1, Cout, Ho*Wo) f32 lane-dense output
    scratch : im2col (4, Ho, Wo, 9*Cin); ph** (Ho+1, Wo+1, Cmid) hold the
              parity phases of the padded conv1 output; mpad (Ho+2, Wo+2, Cmid)
              holds the padded dwconv1 output.
    """
    _, _, Hp1, Wp1, Cin = xph_ref.shape
    Ho, Wo = Hp1 - 1, Wp1 - 1
    HWo = Ho * Wo
    Cmid = wd1_ref.shape[-1]
    f32 = jnp.float32
    phs = (ph00_ref, ph01_ref, ph10_ref, ph11_ref)        # index r*2 + c

    # -- conv1: 3x3 s1 + BN + ReLU as ONE big-K MXU matmul --------------------
    # Output rows grouped by output-pixel parity q = (y%2)*2 + (x%2) so the
    # result lands directly in the phase layout that stride-2 dwconv1 consumes.
    for q in range(4):
        rho, gam = divmod(q, 2)
        for t in range(9):
            kh, kw = divmod(t, 3)
            sp = ((rho + kh) % 2) * 2 + (gam + kw) % 2
            r0, c0 = (rho + kh) // 2, (gam + kw) // 2
            im2col_ref[q, :, :, t * Cin:(t + 1) * Cin] = (
                xph_ref[0, sp, r0:r0 + Ho, c0:c0 + Wo, :])
    cols = im2col_ref[...].reshape(4 * HWo, 9 * Cin).astype(jnp.bfloat16)
    f1 = jnp.dot(cols, w1x_ref[...], preferred_element_type=f32)
    f1 = jnp.maximum(f1 + b1x_ref[...], 0.0).reshape(4, Ho, Wo, Cmid)

    # Scatter conv1's parity phases into padded phase scratches,
    # ph[r][c][a, b] = conv1out_padded[2a + r, 2b + c].  Halo cells are the
    # dwconv1 zero padding; they are re-zeroed every step (megacore-safe) while
    # the interiors are fully overwritten every step.
    ph00_ref[0:1, :, :] = jnp.zeros((1, Wp1, Cmid), f32)
    ph01_ref[0:1, :, :] = jnp.zeros((1, Wp1, Cmid), f32)
    ph00_ref[:, 0:1, :] = jnp.zeros((Hp1, 1, Cmid), f32)
    ph10_ref[:, 0:1, :] = jnp.zeros((Hp1, 1, Cmid), f32)
    ph11_ref[0:Ho, 0:Wo, :] = f1[0]                 # conv1 output phase (0, 0)
    ph10_ref[0:Ho, 1:Wo + 1, :] = f1[1]             # (0, 1)
    ph01_ref[1:Ho + 1, 0:Wo, :] = f1[2]             # (1, 0)
    ph00_ref[1:Ho + 1, 1:Wo + 1, :] = f1[3]         # (1, 1)

    # -- dwconv1: 3x3 s2 depthwise (+BN), Cmid-lane-dense FMAs ----------------
    m = jnp.zeros((Ho, Wo, Cmid), f32) + bd1_ref[...]
    for t in range(9):
        kh, kw = divmod(t, 3)
        tap = phs[(kh % 2) * 2 + kw % 2][kh // 2:kh // 2 + Ho,
                                         kw // 2:kw // 2 + Wo, :]
        m = m + tap * wd1_ref[t:t + 1, :]

    # -- dwconv2: 3x3 s1 depthwise (+BN+ReLU) via a 1-pixel halo scratch ------
    mpad_ref[0:1, :, :] = jnp.zeros((1, Wo + 2, Cmid), f32)
    mpad_ref[Ho + 1:Ho + 2, :, :] = jnp.zeros((1, Wo + 2, Cmid), f32)
    mpad_ref[:, 0:1, :] = jnp.zeros((Ho + 2, 1, Cmid), f32)
    mpad_ref[:, Wo + 1:Wo + 2, :] = jnp.zeros((Ho + 2, 1, Cmid), f32)
    mpad_ref[1:Ho + 1, 1:Wo + 1, :] = m
    m2 = jnp.zeros((Ho, Wo, Cmid), f32) + bd2_ref[...]
    for t in range(9):
        kh, kw = divmod(t, 3)
        m2 = m2 + mpad_ref[kh:kh + Ho, kw:kw + Wo, :] * wd2_ref[t:t + 1, :]
    m2 = jnp.maximum(m2, 0.0).reshape(HWo, Cmid).astype(jnp.bfloat16)

    # -- shortcut: depthwise 3x3 s2 + BN (no ReLU) ----------------------------
    s = jnp.zeros((Ho, Wo, Cin), f32) + bsd_ref[...]
    for t in range(9):
        kh, kw = divmod(t, 3)
        sp = (kh % 2) * 2 + kw % 2
        tap = xph_ref[0, sp, kh // 2:kh // 2 + Ho, kw // 2:kw // 2 + Wo, :]
        s = s + tap * wsd_ref[t:t + 1, :]
    s = s.reshape(HWo, Cin).astype(jnp.bfloat16)

    # -- conv2 1x1 + shortcut 1x1 + add + ReLU, lane-dense (Cout, Ho*Wo) store
    nt = (((1,), (1,)), ((), ()))                   # contract channel dims
    y = lax.dot_general(w2t_ref[...], m2, nt, preferred_element_type=f32)
    y = y + lax.dot_general(wst_ref[...], s, nt, preferred_element_type=f32)
    y = y + bpw_ref[...]
    o_ref[0] = jnp.maximum(y, 0.0).astype(o_ref.dtype)


# ------------------------------ kernel wrapper ------------------------------

def _gelayer_down_call(xph, w1x, b1x, wd1, bd1, wd2, bd2, wsd, bsd,
                       w2t, wst, bpw):
    N, _, Hp1, Wp1, Cin = xph.shape
    Ho, Wo = Hp1 - 1, Wp1 - 1
    Cmid = wd1.shape[-1]
    Cout = bpw.shape[0]
    return pl.pallas_call(
        _gelayer_down_kernel,
        out_shape=jax.ShapeDtypeStruct((N, Cout, Ho * Wo), jnp.float32),
        grid=(N,),
        in_specs=[
            pl.BlockSpec((1, 4, Hp1, Wp1, Cin), lambda n: (n, 0, 0, 0, 0)),
            pl.BlockSpec(w1x.shape, lambda n: (0, 0)),
            pl.BlockSpec(b1x.shape, lambda n: (0, 0)),
            pl.BlockSpec(wd1.shape, lambda n: (0, 0)),
            pl.BlockSpec(bd1.shape, lambda n: (0, 0)),
            pl.BlockSpec(wd2.shape, lambda n: (0, 0)),
            pl.BlockSpec(bd2.shape, lambda n: (0, 0)),
            pl.BlockSpec(wsd.shape, lambda n: (0, 0)),
            pl.BlockSpec(bsd.shape, lambda n: (0, 0)),
            pl.BlockSpec(w2t.shape, lambda n: (0, 0)),
            pl.BlockSpec(wst.shape, lambda n: (0, 0)),
            pl.BlockSpec(bpw.shape, lambda n: (0, 0)),
        ],
        out_specs=pl.BlockSpec((1, Cout, Ho * Wo), lambda n: (n, 0, 0)),
        scratch_shapes=[
            pltpu.VMEM((4, Ho, Wo, 9 * Cin), jnp.float32),
            pltpu.VMEM((Hp1, Wp1, Cmid), jnp.float32),
            pltpu.VMEM((Hp1, Wp1, Cmid), jnp.float32),
            pltpu.VMEM((Hp1, Wp1, Cmid), jnp.float32),
            pltpu.VMEM((Hp1, Wp1, Cmid), jnp.float32),
            pltpu.VMEM((Ho + 2, Wo + 2, Cmid), jnp.float32),
        ],
        compiler_params=pltpu.CompilerParams(
            dimension_semantics=("parallel",)),
    )(xph, w1x, b1x, wd1, bd1, wd2, bd2, wsd, bsd, w2t, wst, bpw)


# ----------------------- parameter prep (plain-JAX glue) --------------------

def _fold_bn(w, b, gamma, beta, mean, var, eps=1e-5):
    """Fold inference-mode BatchNorm into the preceding conv (weight (Cout,...))."""
    scale = gamma / jnp.sqrt(var + eps)
    w_f = w * scale.reshape((-1,) + (1,) * (w.ndim - 1))
    b_f = (b - mean) * scale + beta
    return w_f, b_f


def gelayer_down_forward(x_nchw, P, exp_ratio):
    N, Cin, H, W = x_nchw.shape
    assert H % 2 == 0 and W % 2 == 0, "GELayerDown stride-2 expects even H, W"
    er = exp_ratio
    Cmid = Cin * er
    Ho, Wo = H // 2, W // 2

    # Fold inference-mode BN into every conv (glue).
    w1, b1 = _fold_bn(P["w1"], P["b1"], *P["bn1"])
    wd1, bd1 = _fold_bn(P["wd1"], P["bd1"], *P["bnd1"])
    wd2, bd2 = _fold_bn(P["wd2"], P["bd2"], *P["bnd2"])
    w2, b2 = _fold_bn(P["w2"], P["b2"], *P["bn2"])
    wsd, bsd = _fold_bn(P["wsd"], P["bsd"], *P["bns1"])
    wsp, bsp = _fold_bn(P["wsp"], P["bsp"], *P["bns2"])

    # Input: NCHW -> padded NHWC -> 2x2 parity phases (layout plumbing only,
    # zero duplication): xph[:, r*2+c, a, b, :] = xpad[:, 2a+r, 2b+c, :].
    x = jnp.transpose(x_nchw, (0, 2, 3, 1))
    xp = jnp.pad(x, ((0, 0), (1, 1), (1, 1), (0, 0)))
    xph = jnp.stack([xp[:, r::2, c::2, :] for r in range(2) for c in range(2)],
                    axis=1)                              # (N, 4, Ho+1, Wo+1, Cin)

    # conv1 weight/bias in im2col layout (row = t*Cin + ci, t = kh*3 + kw) with
    # the dwconv1 grouped channel expansion (mid channel j <- conv1 channel
    # j // er) folded in.
    w1_im = jnp.transpose(w1, (2, 3, 1, 0)).reshape(9 * Cin, Cin)
    w1x = jnp.repeat(w1_im, er, axis=1).astype(jnp.bfloat16)   # (9*Cin, Cmid)
    b1x = jnp.repeat(b1, er)[None, :]                          # (1, Cmid)

    # Depthwise weights as (9, C) tap rows, t = kh*3 + kw.
    wd1_t = jnp.transpose(wd1[:, 0].reshape(Cmid, 9), (1, 0))  # (9, Cmid)
    wd2_t = jnp.transpose(wd2[:, 0].reshape(Cmid, 9), (1, 0))  # (9, Cmid)
    wsd_t = jnp.transpose(wsd[:, 0].reshape(Cin, 9), (1, 0))   # (9, Cin)

    w2t = w2[:, :, 0, 0].astype(jnp.bfloat16)                  # (Cout, Cmid)
    wst = wsp[:, :, 0, 0].astype(jnp.bfloat16)                 # (Cout, Cin)
    bpw = (b2 + bsp)[:, None]                                  # (Cout, 1)
    Cout = bpw.shape[0]

    out = _gelayer_down_call(xph, w1x, b1x, wd1_t, bd1[None, :], wd2_t,
                             bd2[None, :], wsd_t, bsd[None, :], w2t, wst, bpw)
    # Kernel already stores (N, Cout, Ho*Wo): reshape is NCHW, no transpose.
    return out.reshape(N, Cout, Ho, Wo)


# ---------------------------- pure-JAX reference ----------------------------

def _conv2d_ref(x, w, b, stride, padding, groups):
    y = lax.conv_general_dilated(
        x, w, (stride, stride), ((padding, padding), (padding, padding)),
        feature_group_count=groups,
        dimension_numbers=("NCHW", "OIHW", "NCHW"),
        precision=lax.Precision.HIGHEST)
    return y + b[None, :, None, None]


def _bn_ref(x, gamma, beta, mean, var, eps=1e-5):
    sh = (1, -1, 1, 1)
    return (gamma.reshape(sh) * (x - mean.reshape(sh))
            / jnp.sqrt(var.reshape(sh) + eps) + beta.reshape(sh))


def gelayer_down_ref(x, P, in_chan, mid_chan):
    f = _conv2d_ref(x, P["w1"], P["b1"], 1, 1, 1)
    f = jnp.maximum(_bn_ref(f, *P["bn1"]), 0.0)
    f = _conv2d_ref(f, P["wd1"], P["bd1"], 2, 1, in_chan)
    f = _bn_ref(f, *P["bnd1"])
    f = _conv2d_ref(f, P["wd2"], P["bd2"], 1, 1, mid_chan)
    f = jnp.maximum(_bn_ref(f, *P["bnd2"]), 0.0)
    f = _conv2d_ref(f, P["w2"], P["b2"], 1, 0, 1)
    f = _bn_ref(f, *P["bn2"])
    s = _conv2d_ref(x, P["wsd"], P["bsd"], 2, 1, in_chan)
    s = _bn_ref(s, *P["bns1"])
    s = _conv2d_ref(s, P["wsp"], P["bsp"], 1, 0, 1)
    s = _bn_ref(s, *P["bns2"])
    return jnp.maximum(f + s, 0.0)


# --------------------------------- params -----------------------------------

def init_params(key, in_chan, out_chan, exp_ratio):
    mid = in_chan * exp_ratio
    keys = iter(jax.random.split(key, 48))

    def nrm(shape, std=0.2):
        return std * jax.random.normal(next(keys), shape, jnp.float32)

    def bn(c):
        return (1.0 + 0.1 * jax.random.normal(next(keys), (c,), jnp.float32),
                0.1 * jax.random.normal(next(keys), (c,), jnp.float32),
                0.1 * jax.random.normal(next(keys), (c,), jnp.float32),
                0.5 + 0.2 * jnp.abs(jax.random.normal(next(keys), (c,), jnp.float32)))

    return dict(
        w1=nrm((in_chan, in_chan, 3, 3)), b1=nrm((in_chan,), 0.1), bn1=bn(in_chan),
        wd1=nrm((mid, 1, 3, 3)), bd1=nrm((mid,), 0.1), bnd1=bn(mid),
        wd2=nrm((mid, 1, 3, 3)), bd2=nrm((mid,), 0.1), bnd2=bn(mid),
        w2=nrm((out_chan, mid, 1, 1)), b2=nrm((out_chan,), 0.1), bn2=bn(out_chan),
        wsd=nrm((in_chan, 1, 3, 3)), bsd=nrm((in_chan,), 0.1), bns1=bn(in_chan),
        wsp=nrm((out_chan, in_chan, 1, 1)), bsp=nrm((out_chan,), 0.1), bns2=bn(out_chan),
    )


# ----------------------------------- main ------------------------------------

if __name__ == "__main__":
    N, Cin, H, W = 2, 4, 16, 16
    out_chan, exp_ratio = 8, 6
    mid = Cin * exp_ratio

    key = jax.random.PRNGKey(0)
    kx, kp = jax.random.split(key)
    x = jax.random.normal(kx, (N, Cin, H, W), jnp.float32)
    P = init_params(kp, Cin, out_chan, exp_ratio)

    fwd = jax.jit(functools.partial(gelayer_down_forward, exp_ratio=exp_ratio))
    out = jax.block_until_ready(fwd(x, P))

    ref = gelayer_down_ref(x, P, Cin, mid)
    assert out.shape == (N, out_chan, H // 2, W // 2), out.shape
    # MXU dots use bf16 operands with f32 accumulation (per the perf review);
    # the pure-JAX reference runs at Precision.HIGHEST, hence the tolerance.
    np.testing.assert_allclose(np.asarray(out), np.asarray(ref),
                               rtol=2e-2, atol=2e-2)

    print("KERNEL_OK")
</pallas_src>

<mosaic_0001>
module attributes {stable_mosaic.version = 11 : i64} {
  func.func @_gelayer_down_kernel(%arg0: i32, %arg1: memref<1x4x9x9x4xf32, #tpu.memory_space<vmem>>, %arg2: memref<36x24xbf16, #tpu.memory_space<vmem>>, %arg3: memref<1x24xf32, #tpu.memory_space<vmem>>, %arg4: memref<9x24xf32, #tpu.memory_space<vmem>>, %arg5: memref<1x24xf32, #tpu.memory_space<vmem>>, %arg6: memref<9x24xf32, #tpu.memory_space<vmem>>, %arg7: memref<1x24xf32, #tpu.memory_space<vmem>>, %arg8: memref<9x4xf32, #tpu.memory_space<vmem>>, %arg9: memref<1x4xf32, #tpu.memory_space<vmem>>, %arg10: memref<8x24xbf16, #tpu.memory_space<vmem>>, %arg11: memref<8x4xbf16, #tpu.memory_space<vmem>>, %arg12: memref<8x1xf32, #tpu.memory_space<vmem>>, %arg13: memref<1x8x64xf32, #tpu.memory_space<vmem>>, %arg14: memref<4x8x8x36xf32, #tpu.memory_space<vmem>>, %arg15: memref<9x9x24xf32, #tpu.memory_space<vmem>>, %arg16: memref<9x9x24xf32, #tpu.memory_space<vmem>>, %arg17: memref<9x9x24xf32, #tpu.memory_space<vmem>>, %arg18: memref<9x9x24xf32, #tpu.memory_space<vmem>>, %arg19: memref<10x10x24xf32, #tpu.memory_space<vmem>>) attributes {dimension_semantics = [#tpu.dimension_semantics<parallel>], iteration_bounds = array<i64: 2>, scalar_prefetch = 0 : i64, scratch_operands = 6 : i64, tpu.core_type = #tpu.core_type<tc>, window_params = [{transform_indices = @transform_0, window_bounds = array<i64: 1, 4, 9, 9, 4>}, {pipeline_mode = #tpu.pipeline_mode<synchronous>, transform_indices = @transform_1, window_bounds = array<i64: 36, 24>}, {pipeline_mode = #tpu.pipeline_mode<synchronous>, transform_indices = @transform_2, window_bounds = array<i64: 1, 24>}, {pipeline_mode = #tpu.pipeline_mode<synchronous>, transform_indices = @transform_3, window_bounds = array<i64: 9, 24>}, {pipeline_mode = #tpu.pipeline_mode<synchronous>, transform_indices = @transform_4, window_bounds = array<i64: 1, 24>}, {pipeline_mode = #tpu.pipeline_mode<synchronous>, transform_indices = @transform_5, window_bounds = array<i64: 9, 24>}, {pipeline_mode = #tpu.pipeline_mode<synchronous>, transform_indices = @transform_6, window_bounds = array<i64: 1, 24>}, {pipeline_mode = #tpu.pipeline_mode<synchronous>, transform_indices = @transform_7, window_bounds = array<i64: 9, 4>}, {pipeline_mode = #tpu.pipeline_mode<synchronous>, transform_indices = @transform_8, window_bounds = array<i64: 1, 4>}, {pipeline_mode = #tpu.pipeline_mode<synchronous>, transform_indices = @transform_9, window_bounds = array<i64: 8, 24>}, {pipeline_mode = #tpu.pipeline_mode<synchronous>, transform_indices = @transform_10, window_bounds = array<i64: 8, 4>}, {pipeline_mode = #tpu.pipeline_mode<synchronous>, transform_indices = @transform_11, window_bounds = array<i64: 8, 1>}, {transform_indices = @transform_12, window_bounds = array<i64: 1, 8, 64>}]} {
    %c0 = arith.constant 0 : index
    %c0_0 = arith.constant 0 : index
    %c0_1 = arith.constant 0 : index
    %c0_2 = arith.constant 0 : index
    %c0_3 = arith.constant 0 : index
    %0 = vector.load %arg1[%c0, %c0_0, %c0_1, %c0_2, %c0_3] : memref<1x4x9x9x4xf32, #tpu.memory_space<vmem>>, vector<1x1x8x8x4xf32>
    %1 = vector.shape_cast %0 : vector<1x1x8x8x4xf32> to vector<8x8x4xf32>
    %c0_4 = arith.constant 0 : index
    %c0_5 = arith.constant 0 : index
    %c0_6 = arith.constant 0 : index
    %c0_7 = arith.constant 0 : index
    %2 = vector.load %arg14[%c0_4, %c0_5, %c0_6, %c0_7] : memref<4x8x8x36xf32, #tpu.memory_space<vmem>>, vector<1x8x8x4xf32>
    %3 = vector.shape_cast %2 : vector<1x8x8x4xf32> to vector<8x8x4xf32>
    %4 = vector.shape_cast %1 : vector<8x8x4xf32> to vector<1x8x8x4xf32>
    tpu.vector_store %arg14[%c0_4, %c0_5, %c0_6, %c0_7], %4 {strides = array<i32>} : memref<4x8x8x36xf32, #tpu.memory_space<vmem>>, vector<1x8x8x4xf32>,
    %c0_8 = arith.constant 0 : index
    %c1 = arith.constant 1 : index
    %c0_9 = arith.constant 0 : index
    %c0_10 = arith.constant 0 : index
    %c0_11 = arith.constant 0 : index
    %5 = vector.load %arg1[%c0_8, %c1, %c0_9, %c0_10, %c0_11] : memref<1x4x9x9x4xf32, #tpu.memory_space<vmem>>, vector<1x1x8x8x4xf32>
    %6 = vector.shape_cast %5 : vector<1x1x8x8x4xf32> to vector<8x8x4xf32>
    %c0_12 = arith.constant 0 : index
    %c0_13 = arith.constant 0 : index
    %c0_14 = arith.constant 0 : index
    %c4 = arith.constant 4 : index
    %7 = vector.load %arg14[%c0_12, %c0_13, %c0_14, %c4] : memref<4x8x8x36xf32, #tpu.memory_space<vmem>>, vector<1x8x8x4xf32>
    %8 = vector.shape_cast %7 : vector<1x8x8x4xf32> to vector<8x8x4xf32>
    %9 = vector.shape_cast %6 : vector<8x8x4xf32> to vector<1x8x8x4xf32>
    tpu.vector_store %arg14[%c0_12, %c0_13, %c0_14, %c4], %9 {strides = array<i32>} : memref<4x8x8x36xf32, #tpu.memory_space<vmem>>, vector<1x8x8x4xf32>,
    %c0_15 = arith.constant 0 : index
    %c0_16 = arith.constant 0 : index
    %c0_17 = arith.constant 0 : index
    %c1_18 = arith.constant 1 : index
    %c0_19 = arith.constant 0 : index
    %10 = vector.load %arg1[%c0_15, %c0_16, %c0_17, %c1_18, %c0_19] : memref<1x4x9x9x4xf32, #tpu.memory_space<vmem>>, vector<1x1x8x8x4xf32>
    %11 = vector.shape_cast %10 : vector<1x1x8x8x4xf32> to vector<8x8x4xf32>
    %c0_20 = arith.constant 0 : index
    %c0_21 = arith.constant 0 : index
    %c0_22 = arith.constant 0 : index
    %c8 = arith.constant 8 : index
    %12 = vector.load %arg14[%c0_20, %c0_21, %c0_22, %c8] : memref<4x8x8x36xf32, #tpu.memory_space<vmem>>, vector<1x8x8x4xf32>
    %13 = vector.shape_cast %12 : vector<1x8x8x4xf32> to vector<8x8x4xf32>
    %14 = vector.shape_cast %11 : vector<8x8x4xf32> to vector<1x8x8x4xf32>
    tpu.vector_store %arg14[%c0_20, %c0_21, %c0_22, %c8], %14 {strides = array<i32>} : memref<4x8x8x36xf32, #tpu.memory_space<vmem>>, vector<1x8x8x4xf32>,
    %c0_23 = arith.constant 0 : index
    %c2 = arith.constant 2 : index
    %c0_24 = arith.constant 0 : index
    %c0_25 = arith.constant 0 : index
    %c0_26 = arith.constant 0 : index
    %15 = vector.load %arg1[%c0_23, %c2, %c0_24, %c0_25, %c0_26] : memref<1x4x9x9x4xf32, #tpu.memory_space<vmem>>, vector<1x1x8x8x4xf32>
    %16 = vector.shape_cast %15 : vector<1x1x8x8x4xf32> to vector<8x8x4xf32>
    %c0_27 = arith.constant 0 : index
    %c0_28 = arith.constant 0 : index
    %c0_29 = arith.constant 0 : index
    %c12 = arith.constant 12 : index
    %17 = vector.load %arg14[%c0_27, %c0_28, %c0_29, %c12] : memref<4x8x8x36xf32, #tpu.memory_space<vmem>>, vector<1x8x8x4xf32>
    %18 = vector.shape_cast %17 : vector<1x8x8x4xf32> to vector<8x8x4xf32>
    %19 = vector.shape_cast %16 : vector<8x8x4xf32> to vector<1x8x8x4xf32>
    tpu.vector_store %arg14[%c0_27, %c0_28, %c0_29, %c12], %19 {strides = array<i32>} : memref<4x8x8x36xf32, #tpu.memory_space<vmem>>, vector<1x8x8x4xf32>,
    %c0_30 = arith.constant 0 : index
    %c3 = arith.constant 3 : index
    %c0_31 = arith.constant 0 : index
    %c0_32 = arith.constant 0 : index
    %c0_33 = arith.constant 0 : index
    %20 = vector.load %arg1[%c0_30, %c3, %c0_31, %c0_32, %c0_33] : memref<1x4x9x9x4xf32, #tpu.memory_space<vmem>>, vector<1x1x8x8x4xf32>
    %21 = vector.shape_cast %20 : vector<1x1x8x8x4xf32> to vector<8x8x4xf32>
    %c0_34 = arith.constant 0 : index
    %c0_35 = arith.constant 0 : index
    %c0_36 = arith.constant 0 : index
    %c16 = arith.constant 16 : index
    %22 = vector.load %arg14[%c0_34, %c0_35, %c0_36, %c16] : memref<4x8x8x36xf32, #tpu.memory_space<vmem>>, vector<1x8x8x4xf32>
    %23 = vector.shape_cast %22 : vector<1x8x8x4xf32> to vector<8x8x4xf32>
    %24 = vector.shape_cast %21 : vector<8x8x4xf32> to vector<1x8x8x4xf32>
    tpu.vector_store %arg14[%c0_34, %c0_35, %c0_36, %c16], %24 {strides = array<i32>} : memref<4x8x8x36xf32, #tpu.memory_space<vmem>>, vector<1x8x8x4xf32>,
    %c0_37 = arith.constant 0 : index
    %c2_38 = arith.constant 2 : index
    %c0_39 = arith.constant 0 : index
    %c1_40 = arith.constant 1 : index
    %c0_41 = arith.constant 0 : index
    %25 = vector.load %arg1[%c0_37, %c2_38, %c0_39, %c1_40, %c0_41] : memref<1x4x9x9x4xf32, #tpu.memory_space<vmem>>, vector<1x1x8x8x4xf32>
    %26 = vector.shape_cast %25 : vector<1x1x8x8x4xf32> to vector<8x8x4xf32>
    %c0_42 = arith.constant 0 : index
    %c0_43 = arith.constant 0 : index
    %c0_44 = arith.constant 0 : index
    %c20 = arith.constant 20 : index
    %27 = vector.load %arg14[%c0_42, %c0_43, %c0_44, %c20] : memref<4x8x8x36xf32, #tpu.memory_space<vmem>>, vector<1x8x8x4xf32>
    %28 = vector.shape_cast %27 : vector<1x8x8x4xf32> to vector<8x8x4xf32>
    %29 = vector.shape_cast %26 : vector<8x8x4xf32> to vector<1x8x8x4xf32>
    tpu.vector_store %arg14[%c0_42, %c0_43, %c0_44, %c20], %29 {strides = array<i32>} : memref<4x8x8x36xf32, #tpu.memory_space<vmem>>, vector<1x8x8x4xf32>,
    %c0_45 = arith.constant 0 : index
    %c0_46 = arith.constant 0 : index
    %c1_47 = arith.constant 1 : index
    %c0_48 = arith.constant 0 : index
    %c0_49 = arith.constant 0 : index
    %30 = vector.load %arg1[%c0_45, %c0_46, %c1_47, %c0_48, %c0_49] : memref<1x4x9x9x4xf32, #tpu.memory_space<vmem>>, vector<1x1x8x8x4xf32>
    %31 = vector.shape_cast %30 : vector<1x1x8x8x4xf32> to vector<8x8x4xf32>
    %c0_50 = arith.constant 0 : index
    %c0_51 = arith.constant 0 : index
    %c0_52 = arith.constant 0 : index
    %c24 = arith.constant 24 : index
    %32 = vector.load %arg14[%c0_50, %c0_51, %c0_52, %c24] : memref<4x8x8x36xf32, #tpu.memory_space<vmem>>, vector<1x8x8x4xf32>
    %33 = vector.shape_cast %32 : vector<1x8x8x4xf32> to vector<8x8x4xf32>
    %34 = vector.shape_cast %31 : vector<8x8x4xf32> to vector<1x8x8x4xf32>
    tpu.vector_store %arg14[%c0_50, %c0_51, %c0_52, %c24], %34 {strides = array<i32>} : memref<4x8x8x36xf32, #tpu.memory_space<vmem>>, vector<1x8x8x4xf32>,
    %c0_53 = arith.constant 0 : index
    %c1_54 = arith.constant 1 : index
    %c1_55 = arith.constant 1 : index
    %c0_56 = arith.constant 0 : index
    %c0_57 = arith.constant 0 : index
    %35 = vector.load %arg1[%c0_53, %c1_54, %c1_55, %c0_56, %c0_57] : memref<1x4x9x9x4xf32, #tpu.memory_space<vmem>>, vector<1x1x8x8x4xf32>
    %36 = vector.shape_cast %35 : vector<1x1x8x8x4xf32> to vector<8x8x4xf32>
    %c0_58 = arith.constant 0 : index
    %c0_59 = arith.constant 0 : index
    %c0_60 = arith.constant 0 : index
    %c28 = arith.constant 28 : index
    %37 = vector.load %arg14[%c0_58, %c0_59, %c0_60, %c28] : memref<4x8x8x36xf32, #tpu.memory_space<vmem>>, vector<1x8x8x4xf32>
    %38 = vector.shape_cast %37 : vector<1x8x8x4xf32> to vector<8x8x4xf32>
    %39 = vector.shape_cast %36 : vector<8x8x4xf32> to vector<1x8x8x4xf32>
    tpu.vector_store %arg14[%c0_58, %c0_59, %c0_60, %c28], %39 {strides = array<i32>} : memref<4x8x8x36xf32, #tpu.memory_space<vmem>>, vector<1x8x8x4xf32>,
    %c0_61 = arith.constant 0 : index
    %c0_62 = arith.constant 0 : index
    %c1_63 = arith.constant 1 : index
    %c1_64 = arith.constant 1 : index
    %c0_65 = arith.constant 0 : index
    %40 = vector.load %arg1[%c0_61, %c0_62, %c1_63, %c1_64, %c0_65] : memref<1x4x9x9x4xf32, #tpu.memory_space<vmem>>, vector<1x1x8x8x4xf32>
    %41 = vector.shape_cast %40 : vector<1x1x8x8x4xf32> to vector<8x8x4xf32>
    %c0_66 = arith.constant 0 : index
    %c0_67 = arith.constant 0 : index
    %c0_68 = arith.constant 0 : index
    %c32 = arith.constant 32 : index
    %42 = vector.load %arg14[%c0_66, %c0_67, %c0_68, %c32] : memref<4x8x8x36xf32, #tpu.memory_space<vmem>>, vector<1x8x8x4xf32>
    %43 = vector.shape_cast %42 : vector<1x8x8x4xf32> to vector<8x8x4xf32>
    %44 = vector.shape_cast %41 : vector<8x8x4xf32> to vector<1x8x8x4xf32>
    tpu.vector_store %arg14[%c0_66, %c0_67, %c0_68, %c32], %44 {strides = array<i32>} : memref<4x8x8x36xf32, #tpu.memory_space<vmem>>, vector<1x8x8x4xf32>,
    %c0_69 = arith.constant 0 : index
    %c1_70 = arith.constant 1 : index
    %c0_71 = arith.constant 0 : index
    %c0_72 = arith.constant 0 : index
    %c0_73 = arith.constant 0 : index
    %45 = vector.load %arg1[%c0_69, %c1_70, %c0_71, %c0_72, %c0_73] : memref<1x4x9x9x4xf32, #tpu.memory_space<vmem>>, vector<1x1x8x8x4xf32>
    %46 = vector.shape_cast %45 : vector<1x1x8x8x4xf32> to vector<8x8x4xf32>
    %c1_74 = arith.constant 1 : index
    %c0_75 = arith.constant 0 : index
    %c0_76 = arith.constant 0 : index
    %c0_77 = arith.constant 0 : index
    %47 = vector.load %arg14[%c1_74, %c0_75, %c0_76, %c0_77] : memref<4x8x8x36xf32, #tpu.memory_space<vmem>>, vector<1x8x8x4xf32>
    %48 = vector.shape_cast %47 : vector<1x8x8x4xf32> to vector<8x8x4xf32>
    %49 = vector.shape_cast %46 : vector<8x8x4xf32> to vector<1x8x8x4xf32>
    tpu.vector_store %arg14[%c1_74, %c0_75, %c0_76, %c0_77], %49 {strides = array<i32>} : memref<4x8x8x36xf32, #tpu.memory_space<vmem>>, vector<1x8x8x4xf32>,
    %c0_78 = arith.constant 0 : index
    %c0_79 = arith.constant 0 : index
    %c0_80 = arith.constant 0 : index
    %c1_81 = arith.constant 1 : index
    %c0_82 = arith.constant 0 : index
    %50 = vector.load %arg1[%c0_78, %c0_79, %c0_80, %c1_81, %c0_82] : memref<1x4x9x9x4xf32, #tpu.memory_space<vmem>>, vector<1x1x8x8x4xf32>
    %51 = vector.shape_cast %50 : vector<1x1x8x8x4xf32> to vector<8x8x4xf32>
    %c1_83 = arith.constant 1 : index
    %c0_84 = arith.constant 0 : index
    %c0_85 = arith.constant 0 : index
    %c4_86 = arith.constant 4 : index
    %52 = vector.load %arg14[%c1_83, %c0_84, %c0_85, %c4_86] : memref<4x8x8x36xf32, #tpu.memory_space<vmem>>, vector<1x8x8x4xf32>
    %53 = vector.shape_cast %52 : vector<1x8x8x4xf32> to vector<8x8x4xf32>
    %54 = vector.shape_cast %51 : vector<8x8x4xf32> to vector<1x8x8x4xf32>
    tpu.vector_store %arg14[%c1_83, %c0_84, %c0_85, %c4_86], %54 {strides = array<i32>} : memref<4x8x8x36xf32, #tpu.memory_space<vmem>>, vector<1x8x8x4xf32>,
    %c0_87 = arith.constant 0 : index
    %c1_88 = arith.constant 1 : index
    %c0_89 = arith.constant 0 : index
    %c1_90 = arith.constant 1 : index
    %c0_91 = arith.constant 0 : index
    %55 = vector.load %arg1[%c0_87, %c1_88, %c0_89, %c1_90, %c0_91] : memref<1x4x9x9x4xf32, #tpu.memory_space<vmem>>, vector<1x1x8x8x4xf32>
    %56 = vector.shape_cast %55 : vector<1x1x8x8x4xf32> to vector<8x8x4xf32>
    %c1_92 = arith.constant 1 : index
    %c0_93 = arith.constant 0 : index
    %c0_94 = arith.constant 0 : index
    %c8_95 = arith.constant 8 : index
    %57 = vector.load %arg14[%c1_92, %c0_93, %c0_94, %c8_95] : memref<4x8x8x36xf32, #tpu.memory_space<vmem>>, vector<1x8x8x4xf32>
    %58 = vector.shape_cast %57 : vector<1x8x8x4xf32> to vector<8x8x4xf32>
    %59 = vector.shape_cast %56 : vector<8x8x4xf32> to vector<1x8x8x4xf32>
    tpu.vector_store %arg14[%c1_92, %c0_93, %c0_94, %c8_95], %59 {strides = array<i32>} : memref<4x8x8x36xf32, #tpu.memory_space<vmem>>, vector<1x8x8x4xf32>,
    %c0_96 = arith.constant 0 : index
    %c3_97 = arith.constant 3 : index
    %c0_98 = arith.constant 0 : index
    %c0_99 = arith.constant 0 : index
    %c0_100 = arith.constant 0 : index
    %60 = vector.load %arg1[%c0_96, %c3_97, %c0_98, %c0_99, %c0_100] : memref<1x4x9x9x4xf32, #tpu.memory_space<vmem>>, vector<1x1x8x8x4xf32>
    %61 = vector.shape_cast %60 : vector<1x1x8x8x4xf32> to vector<8x8x4xf32>
    %c1_101 = arith.constant 1 : index
    %c0_102 = arith.constant 0 : index
    %c0_103 = arith.constant 0 : index
    %c12_104 = arith.constant 12 : index
    %62 = vector.load %arg14[%c1_101, %c0_102, %c0_103, %c12_104] : memref<4x8x8x36xf32, #tpu.memory_space<vmem>>, vector<1x8x8x4xf32>
    %63 = vector.shape_cast %62 : vector<1x8x8x4xf32> to vector<8x8x4xf32>
    %64 = vector.shape_cast %61 : vector<8x8x4xf32> to vector<1x8x8x4xf32>
    tpu.vector_store %arg14[%c1_101, %c0_102, %c0_103, %c12_104], %64 {strides = array<i32>} : memref<4x8x8x36xf32, #tpu.memory_space<vmem>>, vector<1x8x8x4xf32>,
    %c0_105 = arith.constant 0 : index
    %c2_106 = arith.constant 2 : index
    %c0_107 = arith.constant 0 : index
    %c1_108 = arith.constant 1 : index
    %c0_109 = arith.constant 0 : index
    %65 = vector.load %arg1[%c0_105, %c2_106, %c0_107, %c1_108, %c0_109] : memref<1x4x9x9x4xf32, #tpu.memory_space<vmem>>, vector<1x1x8x8x4xf32>
    %66 = vector.shape_cast %65 : vector<1x1x8x8x4xf32> to vector<8x8x4xf32>
    %c1_110 = arith.constant 1 : index
    %c0_111 = arith.constant 0 : index
    %c0_112 = arith.constant 0 : index
    %c16_113 = arith.constant 16 : index
    %67 = vector.load %arg14[%c1_110, %c0_111, %c0_112, %c16_113] : memref<4x8x8x36xf32, #tpu.memory_space<vmem>>, vector<1x8x8x4xf32>
    %68 = vector.shape_cast %67 : vector<1x8x8x4xf32> to vector<8x8x4xf32>
    %69 = vector.shape_cast %66 : vector<8x8x4xf32> to vector<1x8x8x4xf32>
    tpu.vector_store %arg14[%c1_110, %c0_111, %c0_112, %c16_113], %69 {strides = array<i32>} : memref<4x8x8x36xf32, #tpu.memory_space<vmem>>, vector<1x8x8x4xf32>,
    %c0_114 = arith.constant 0 : index
    %c3_115 = arith.constant 3 : index
    %c0_116 = arith.constant 0 : index
    %c1_117 = arith.constant 1 : index
    %c0_118 = arith.constant 0 : index
    %70 = vector.load %arg1[%c0_114, %c3_115, %c0_116, %c1_117, %c0_118] : memref<1x4x9x9x4xf32, #tpu.memory_space<vmem>>, vector<1x1x8x8x4xf32>
    %71 = vector.shape_cast %70 : vector<1x1x8x8x4xf32> to vector<8x8x4xf32>
    %c1_119 = arith.constant 1 : index
    %c0_120 = arith.constant 0 : index
    %c0_121 = arith.constant 0 : index
    %c20_122 = arith.constant 20 : index
    %72 = vector.load %arg14[%c1_119, %c0_120, %c0_121, %c20_122] : memref<4x8x8x36xf32, #tpu.memory_space<vmem>>, vector<1x8x8x4xf32>
    %73 = vector.shape_cast %72 : vector<1x8x8x4xf32> to vector<8x8x4xf32>
    %74 = vector.shape_cast %71 : vector<8x8x4xf32> to vector<1x8x8x4xf32>
    tpu.vector_store %arg14[%c1_119, %c0_120, %c0_121, %c20_122], %74 {strides = array<i32>} : memref<4x8x8x36xf32, #tpu.memory_space<vmem>>, vector<1x8x8x4xf32>,
    %c0_123 = arith.constant 0 : index
    %c1_124 = arith.constant 1 : index
    %c1_125 = arith.constant 1 : index
    %c0_126 = arith.constant 0 : index
    %c0_127 = arith.constant 0 : index
    %75 = vector.load %arg1[%c0_123, %c1_124, %c1_125, %c0_126, %c0_127] : memref<1x4x9x9x4xf32, #tpu.memory_space<vmem>>, vector<1x1x8x8x4xf32>
    %76 = vector.shape_cast %75 : vector<1x1x8x8x4xf32> to vector<8x8x4xf32>
    %c1_128 = arith.constant 1 : index
    %c0_129 = arith.constant 0 : index
    %c0_130 = arith.constant 0 : index
    %c24_131 = arith.constant 24 : index
    %77 = vector.load %arg14[%c1_128, %c0_129, %c0_130, %c24_131] : memref<4x8x8x36xf32, #tpu.memory_space<vmem>>, vector<1x8x8x4xf32>
    %78 = vector.shape_cast %77 : vector<1x8x8x4xf32> to vector<8x8x4xf32>
    %79 = vector.shape_cast %76 : vector<8x8x4xf32> to vector<1x8x8x4xf32>
    tpu.vector_store %arg14[%c1_128, %c0_129, %c0_130, %c24_131], %79 {strides = array<i32>} : memref<4x8x8x36xf32, #tpu.memory_space<vmem>>, vector<1x8x8x4xf32>,
    %c0_132 = arith.constant 0 : index
    %c0_133 = arith.constant 0 : index
    %c1_134 = arith.constant 1 : index
    %c1_135 = arith.constant 1 : index
    %c0_136 = arith.constant 0 : index
    %80 = vector.load %arg1[%c0_132, %c0_133, %c1_134, %c1_135, %c0_136] : memref<1x4x9x9x4xf32, #tpu.memory_space<vmem>>, vector<1x1x8x8x4xf32>
    %81 = vector.shape_cast %80 : vector<1x1x8x8x4xf32> to vector<8x8x4xf32>
    %c1_137 = arith.constant 1 : index
    %c0_138 = arith.constant 0 : index
    %c0_139 = arith.constant 0 : index
    %c28_140 = arith.constant 28 : index
    %82 = vector.load %arg14[%c1_137, %c0_138, %c0_139, %c28_140] : memref<4x8x8x36xf32, #tpu.memory_space<vmem>>, vector<1x8x8x4xf32>
    %83 = vector.shape_cast %82 : vector<1x8x8x4xf32> to vector<8x8x4xf32>
    %84 = vector.shape_cast %81 : vector<8x8x4xf32> to vector<1x8x8x4xf32>
    tpu.vector_store %arg14[%c1_137, %c0_138, %c0_139, %c28_140], %84 {strides = array<i32>} : memref<4x8x8x36xf32, #tpu.memory_space<vmem>>, vector<1x8x8x4xf32>,
    %c0_141 = arith.constant 0 : index
    %c1_142 = arith.constant 1 : index
    %c1_143 = arith.constant 1 : index
    %c1_144 = arith.constant 1 : index
    %c0_145 = arith.constant 0 : index
    %85 = vector.load %arg1[%c0_141, %c1_142, %c1_143, %c1_144, %c0_145] : memref<1x4x9x9x4xf32, #tpu.memory_space<vmem>>, vector<1x1x8x8x4xf32>
    %86 = vector.shape_cast %85 : vector<1x1x8x8x4xf32> to vector<8x8x4xf32>
    %c1_146 = arith.constant 1 : index
    %c0_147 = arith.constant 0 : index
    %c0_148 = arith.constant 0 : index
    %c32_149 = arith.constant 32 : index
    %87 = vector.load %arg14[%c1_146, %c0_147, %c0_148, %c32_149] : memref<4x8x8x36xf32, #tpu.memory_space<vmem>>, vector<1x8x8x4xf32>
    %88 = vector.shape_cast %87 : vector<1x8x8x4xf32> to vector<8x8x4xf32>
    %89 = vector.shape_cast %86 : vector<8x8x4xf32> to vector<1x8x8x4xf32>
    tpu.vector_store %arg14[%c1_146, %c0_147, %c0_148, %c32_149], %89 {strides = array<i32>} : memref<4x8x8x36xf32, #tpu.memory_space<vmem>>, vector<1x8x8x4xf32>,
    %c0_150 = arith.constant 0 : index
    %c2_151 = arith.constant 2 : index
    %c0_152 = arith.constant 0 : index
    %c0_153 = arith.constant 0 : index
    %c0_154 = arith.constant 0 : index
    %90 = vector.load %arg1[%c0_150, %c2_151, %c0_152, %c0_153, %c0_154] : memref<1x4x9x9x4xf32, #tpu.memory_space<vmem>>, vector<1x1x8x8x4xf32>
    %91 = vector.shape_cast %90 : vector<1x1x8x8x4xf32> to vector<8x8x4xf32>
    %c2_155 = arith.constant 2 : index
    %c0_156 = arith.constant 0 : index
    %c0_157 = arith.constant 0 : index
    %c0_158 = arith.constant 0 : index
    %92 = vector.load %arg14[%c2_155, %c0_156, %c0_157, %c0_158] : memref<4x8x8x36xf32, #tpu.memory_space<vmem>>, vector<1x8x8x4xf32>
    %93 = vector.shape_cast %92 : vector<1x8x8x4xf32> to vector<8x8x4xf32>
    %94 = vector.shape_cast %91 : vector<8x8x4xf32> to vector<1x8x8x4xf32>
    tpu.vector_store %arg14[%c2_155, %c0_156, %c0_157, %c0_158], %94 {strides = array<i32>} : memref<4x8x8x36xf32, #tpu.memory_space<vmem>>, vector<1x8x8x4xf32>,
    %c0_159 = arith.constant 0 : index
    %c3_160 = arith.constant 3 : index
    %c0_161 = arith.constant 0 : index
    %c0_162 = arith.constant 0 : index
    %c0_163 = arith.constant 0 : index
    %95 = vector.load %arg1[%c0_159, %c3_160, %c0_161, %c0_162, %c0_163] : memref<1x4x9x9x4xf32, #tpu.memory_space<vmem>>, vector<1x1x8x8x4xf32>
    %96 = vector.shape_cast %95 : vector<1x1x8x8x4xf32> to vector<8x8x4xf32>
    %c2_164 = arith.constant 2 : index
    %c0_165 = arith.constant 0 : index
    %c0_166 = arith.constant 0 : index
    %c4_167 = arith.constant 4 : index
    %97 = vector.load %arg14[%c2_164, %c0_165, %c0_166, %c4_167] : memref<4x8x8x36xf32, #tpu.memory_space<vmem>>, vector<1x8x8x4xf32>
    %98 = vector.shape_cast %97 : vector<1x8x8x4xf32> to vector<8x8x4xf32>
    %99 = vector.shape_cast %96 : vector<8x8x4xf32> to vector<1x8x8x4xf32>
    tpu.vector_store %arg14[%c2_164, %c0_165, %c0_166, %c4_167], %99 {strides = array<i32>} : memref<4x8x8x36xf32, #tpu.memory_space<vmem>>, vector<1x8x8x4xf32>,
    %c0_168 = arith.constant 0 : index
    %c2_169 = arith.constant 2 : index
    %c0_170 = arith.constant 0 : index
    %c1_171 = arith.constant 1 : index
    %c0_172 = arith.constant 0 : index
    %100 = vector.load %arg1[%c0_168, %c2_169, %c0_170, %c1_171, %c0_172] : memref<1x4x9x9x4xf32, #tpu.memory_space<vmem>>, vector<1x1x8x8x4xf32>
    %101 = vector.shape_cast %100 : vector<1x1x8x8x4xf32> to vector<8x8x4xf32>
    %c2_173 = arith.constant 2 : index
    %c0_174 = arith.constant 0 : index
    %c0_175 = arith.constant 0 : index
    %c8_176 = arith.constant 8 : index
    %102 = vector.load %arg14[%c2_173, %c0_174, %c0_175, %c8_176] : memref<4x8x8x36xf32, #tpu.memory_space<vmem>>, vector<1x8x8x4xf32>
    %103 = vector.shape_cast %102 : vector<1x8x8x4xf32> to vector<8x8x4xf32>
    %104 = vector.shape_cast %101 : vector<8x8x4xf32> to vector<1x8x8x4xf32>
    tpu.vector_store %arg14[%c2_173, %c0_174, %c0_175, %c8_176], %104 {strides = array<i32>} : memref<4x8x8x36xf32, #tpu.memory_space<vmem>>, vector<1x8x8x4xf32>,
    %c0_177 = arith.constant 0 : index
    %c0_178 = arith.constant 0 : index
    %c1_179 = arith.constant 1 : index
    %c0_180 = arith.constant 0 : index
    %c0_181 = arith.constant 0 : index
    %105 = vector.load %arg1[%c0_177, %c0_178, %c1_179, %c0_180, %c0_181] : memref<1x4x9x9x4xf32, #tpu.memory_space<vmem>>, vector<1x1x8x8x4xf32>
    %106 = vector.shape_cast %105 : vector<1x1x8x8x4xf32> to vector<8x8x4xf32>
    %c2_182 = arith.constant 2 : index
    %c0_183 = arith.constant 0 : index
    %c0_184 = arith.constant 0 : index
    %c12_185 = arith.constant 12 : index
    %107 = vector.load %arg14[%c2_182, %c0_183, %c0_184, %c12_185] : memref<4x8x8x36xf32, #tpu.memory_space<vmem>>, vector<1x8x8x4xf32>
    %108 = vector.shape_cast %107 : vector<1x8x8x4xf32> to vector<8x8x4xf32>
    %109 = vector.shape_cast %106 : vector<8x8x4xf32> to vector<1x8x8x4xf32>
    tpu.vector_store %arg14[%c2_182, %c0_183, %c0_184, %c12_185], %109 {strides = array<i32>} : memref<4x8x8x36xf32, #tpu.memory_space<vmem>>, vector<1x8x8x4xf32>,
    %c0_186 = arith.constant 0 : index
    %c1_187 = arith.constant 1 : index
    %c1_188 = arith.constant 1 : index
    %c0_189 = arith.constant 0 : index
    %c0_190 = arith.constant 0 : index
    %110 = vector.load %arg1[%c0_186, %c1_187, %c1_188, %c0_189, %c0_190] : memref<1x4x9x9x4xf32, #tpu.memory_space<vmem>>, vector<1x1x8x8x4xf32>
    %111 = vector.shape_cast %110 : vector<1x1x8x8x4xf32> to vector<8x8x4xf32>
    %c2_191 = arith.constant 2 : index
    %c0_192 = arith.constant 0 : index
    %c0_193 = arith.constant 0 : index
    %c16_194 = arith.constant 16 : index
    %112 = vector.load %arg14[%c2_191, %c0_192, %c0_193, %c16_194] : memref<4x8x8x36xf32, #tpu.memory_space<vmem>>, vector<1x8x8x4xf32>
    %113 = vector.shape_cast %112 : vector<1x8x8x4xf32> to vector<8x8x4xf32>
    %114 = vector.shape_cast %111 : vector<8x8x4xf32> to vector<1x8x8x4xf32>
    tpu.vector_store %arg14[%c2_191, %c0_192, %c0_193, %c16_194], %114 {strides = array<i32>} : memref<4x8x8x36xf32, #tpu.memory_space<vmem>>, vector<1x8x8x4xf32>,
    %c0_195 = arith.constant 0 : index
    %c0_196 = arith.constant 0 : index
    %c1_197 = arith.constant 1 : index
    %c1_198 = arith.constant 1 : index
    %c0_199 = arith.constant 0 : index
    %115 = vector.load %arg1[%c0_195, %c0_196, %c1_197, %c1_198, %c0_199] : memref<1x4x9x9x4xf32, #tpu.memory_space<vmem>>, vector<1x1x8x8x4xf32>
    %116 = vector.shape_cast %115 : vector<1x1x8x8x4xf32> to vector<8x8x4xf32>
    %c2_200 = arith.constant 2 : index
    %c0_201 = arith.constant 0 : index
    %c0_202 = arith.constant 0 : index
    %c20_203 = arith.constant 20 : index
    %117 = vector.load %arg14[%c2_200, %c0_201, %c0_202, %c20_203] : memref<4x8x8x36xf32, #tpu.memory_space<vmem>>, vector<1x8x8x4xf32>
    %118 = vector.shape_cast %117 : vector<1x8x8x4xf32> to vector<8x8x4xf32>
    %119 = vector.shape_cast %116 : vector<8x8x4xf32> to vector<1x8x8x4xf32>
    tpu.vector_store %arg14[%c2_200, %c0_201, %c0_202, %c20_203], %119 {strides = array<i32>} : memref<4x8x8x36xf32, #tpu.memory_space<vmem>>, vector<1x8x8x4xf32>,
    %c0_204 = arith.constant 0 : index
    %c2_205 = arith.constant 2 : index
    %c1_206 = arith.constant 1 : index
    %c0_207 = arith.constant 0 : index
    %c0_208 = arith.constant 0 : index
    %120 = vector.load %arg1[%c0_204, %c2_205, %c1_206, %c0_207, %c0_208] : memref<1x4x9x9x4xf32, #tpu.memory_space<vmem>>, vector<1x1x8x8x4xf32>
    %121 = vector.shape_cast %120 : vector<1x1x8x8x4xf32> to vector<8x8x4xf32>
    %c2_209 = arith.constant 2 : index
    %c0_210 = arith.constant 0 : index
    %c0_211 = arith.constant 0 : index
    %c24_212 = arith.constant 24 : index
    %122 = vector.load %arg14[%c2_209, %c0_210, %c0_211, %c24_212] : memref<4x8x8x36xf32, #tpu.memory_space<vmem>>, vector<1x8x8x4xf32>
    %123 = vector.shape_cast %122 : vector<1x8x8x4xf32> to vector<8x8x4xf32>
    %124 = vector.shape_cast %121 : vector<8x8x4xf32> to vector<1x8x8x4xf32>
    tpu.vector_store %arg14[%c2_209, %c0_210, %c0_211, %c24_212], %124 {strides = array<i32>} : memref<4x8x8x36xf32, #tpu.memory_space<vmem>>, vector<1x8x8x4xf32>,
    %c0_213 = arith.constant 0 : index
    %c3_214 = arith.constant 3 : index
    %c1_215 = arith.constant 1 : index
    %c0_216 = arith.constant 0 : index
    %c0_217 = arith.constant 0 : index
    %125 = vector.load %arg1[%c0_213, %c3_214, %c1_215, %c0_216, %c0_217] : memref<1x4x9x9x4xf32, #tpu.memory_space<vmem>>, vector<1x1x8x8x4xf32>
    %126 = vector.shape_cast %125 : vector<1x1x8x8x4xf32> to vector<8x8x4xf32>
    %c2_218 = arith.constant 2 : index
    %c0_219 = arith.constant 0 : index
    %c0_220 = arith.constant 0 : index
    %c28_221 = arith.constant 28 : index
    %127 = vector.load %arg14[%c2_218, %c0_219, %c0_220, %c28_221] : memref<4x8x8x36xf32, #tpu.memory_space<vmem>>, vector<1x8x8x4xf32>
    %128 = vector.shape_cast %127 : vector<1x8x8x4xf32> to vector<8x8x4xf32>
    %129 = vector.shape_cast %126 : vector<8x8x4xf32> to vector<1x8x8x4xf32>
    tpu.vector_store %arg14[%c2_218, %c0_219, %c0_220, %c28_221], %129 {strides = array<i32>} : memref<4x8x8x36xf32, #tpu.memory_space<vmem>>, vector<1x8x8x4xf32>,
    %c0_222 = arith.constant 0 : index
    %c2_223 = arith.constant 2 : index
    %c1_224 = arith.constant 1 : index
    %c1_225 = arith.constant 1 : index
    %c0_226 = arith.constant 0 : index
    %130 = vector.load %arg1[%c0_222, %c2_223, %c1_224, %c1_225, %c0_226] : memref<1x4x9x9x4xf32, #tpu.memory_space<vmem>>, vector<1x1x8x8x4xf32>
    %131 = vector.shape_cast %130 : vector<1x1x8x8x4xf32> to vector<8x8x4xf32>
    %c2_227 = arith.constant 2 : index
    %c0_228 = arith.constant 0 : index
    %c0_229 = arith.constant 0 : index
    %c32_230 = arith.constant 32 : index
    %132 = vector.load %arg14[%c2_227, %c0_228, %c0_229, %c32_230] : memref<4x8x8x36xf32, #tpu.memory_space<vmem>>, vector<1x8x8x4xf32>
    %133 = vector.shape_cast %132 : vector<1x8x8x4xf32> to vector<8x8x4xf32>
    %134 = vector.shape_cast %131 : vector<8x8x4xf32> to vector<1x8x8x4xf32>
    tpu.vector_store %arg14[%c2_227, %c0_228, %c0_229, %c32_230], %134 {strides = array<i32>} : memref<4x8x8x36xf32, #tpu.memory_space<vmem>>, vector<1x8x8x4xf32>,
    %c0_231 = arith.constant 0 : index
    %c3_232 = arith.constant 3 : index
    %c0_233 = arith.constant 0 : index
    %c0_234 = arith.constant 0 : index
    %c0_235 = arith.constant 0 : index
    %135 = vector.load %arg1[%c0_231, %c3_232, %c0_233, %c0_234, %c0_235] : memref<1x4x9x9x4xf32, #tpu.memory_space<vmem>>, vector<1x1x8x8x4xf32>
    %136 = vector.shape_cast %135 : vector<1x1x8x8x4xf32> to vector<8x8x4xf32>
    %c3_236 = arith.constant 3 : index
    %c0_237 = arith.constant 0 : index
    %c0_238 = arith.constant 0 : index
    %c0_239 = arith.constant 0 : index
    %137 = vector.load %arg14[%c3_236, %c0_237, %c0_238, %c0_239] : memref<4x8x8x36xf32, #tpu.memory_space<vmem>>, vector<1x8x8x4xf32>
    %138 = vector.shape_cast %137 : vector<1x8x8x4xf32> to vector<8x8x4xf32>
    %139 = vector.shape_cast %136 : vector<8x8x4xf32> to vector<1x8x8x4xf32>
    tpu.vector_store %arg14[%c3_236, %c0_237, %c0_238, %c0_239], %139 {strides = array<i32>} : memref<4x8x8x36xf32, #tpu.memory_space<vmem>>, vector<1x8x8x4xf32>,
    %c0_240 = arith.constant 0 : index
    %c2_241 = arith.constant 2 : index
    %c0_242 = arith.constant 0 : index
    %c1_243 = arith.constant 1 : index
    %c0_244 = arith.constant 0 : index
    %140 = vector.load %arg1[%c0_240, %c2_241, %c0_242, %c1_243, %c0_244] : memref<1x4x9x9x4xf32, #tpu.memory_space<vmem>>, vector<1x1x8x8x4xf32>
    %141 = vector.shape_cast %140 : vector<1x1x8x8x4xf32> to vector<8x8x4xf32>
    %c3_245 = arith.constant 3 : index
    %c0_246 = arith.constant 0 : index
    %c0_247 = arith.constant 0 : index
    %c4_248 = arith.constant 4 : index
    %142 = vector.load %arg14[%c3_245, %c0_246, %c0_247, %c4_248] : memref<4x8x8x36xf32, #tpu.memory_space<vmem>>, vector<1x8x8x4xf32>
    %143 = vector.shape_cast %142 : vector<1x8x8x4xf32> to vector<8x8x4xf32>
    %144 = vector.shape_cast %141 : vector<8x8x4xf32> to vector<1x8x8x4xf32>
    tpu.vector_store %arg14[%c3_245, %c0_246, %c0_247, %c4_248], %144 {strides = array<i32>} : memref<4x8x8x36xf32, #tpu.memory_space<vmem>>, vector<1x8x8x4xf32>,
    %c0_249 = arith.constant 0 : index
    %c3_250 = arith.constant 3 : index
    %c0_251 = arith.constant 0 : index
    %c1_252 = arith.constant 1 : index
    %c0_253 = arith.constant 0 : index
    %145 = vector.load %arg1[%c0_249, %c3_250, %c0_251, %c1_252, %c0_253] : memref<1x4x9x9x4xf32, #tpu.memory_space<vmem>>, vector<1x1x8x8x4xf32>
    %146 = vector.shape_cast %145 : vector<1x1x8x8x4xf32> to vector<8x8x4xf32>
    %c3_254 = arith.constant 3 : index
    %c0_255 = arith.constant 0 : index
    %c0_256 = arith.constant 0 : index
    %c8_257 = arith.constant 8 : index
    %147 = vector.load %arg14[%c3_254, %c0_255, %c0_256, %c8_257] : memref<4x8x8x36xf32, #tpu.memory_space<vmem>>, vector<1x8x8x4xf32>
    %148 = vector.shape_cast %147 : vector<1x8x8x4xf32> to vector<8x8x4xf32>
    %149 = vector.shape_cast %146 : vector<8x8x4xf32> to vector<1x8x8x4xf32>
    tpu.vector_store %arg14[%c3_254, %c0_255, %c0_256, %c8_257], %149 {strides = array<i32>} : memref<4x8x8x36xf32, #tpu.memory_space<vmem>>, vector<1x8x8x4xf32>,
    %c0_258 = arith.constant 0 : index
    %c1_259 = arith.constant 1 : index
    %c1_260 = arith.constant 1 : index
    %c0_261 = arith.constant 0 : index
    %c0_262 = arith.constant 0 : index
    %150 = vector.load %arg1[%c0_258, %c1_259, %c1_260, %c0_261, %c0_262] : memref<1x4x9x9x4xf32, #tpu.memory_space<vmem>>, vector<1x1x8x8x4xf32>
    %151 = vector.shape_cast %150 : vector<1x1x8x8x4xf32> to vector<8x8x4xf32>
    %c3_263 = arith.constant 3 : index
    %c0_264 = arith.constant 0 : index
    %c0_265 = arith.constant 0 : index
    %c12_266 = arith.constant 12 : index
    %152 = vector.load %arg14[%c3_263, %c0_264, %c0_265, %c12_266] : memref<4x8x8x36xf32, #tpu.memory_space<vmem>>, vector<1x8x8x4xf32>
    %153 = vector.shape_cast %152 : vector<1x8x8x4xf32> to vector<8x8x4xf32>
    %154 = vector.shape_cast %151 : vector<8x8x4xf32> to vector<1x8x8x4xf32>
    tpu.vector_store %arg14[%c3_263, %c0_264, %c0_265, %c12_266], %154 {strides = array<i32>} : memref<4x8x8x36xf32, #tpu.memory_space<vmem>>, vector<1x8x8x4xf32>,
    %c0_267 = arith.constant 0 : index
    %c0_268 = arith.constant 0 : index
    %c1_269 = arith.constant 1 : index
    %c1_270 = arith.constant 1 : index
    %c0_271 = arith.constant 0 : index
    %155 = vector.load %arg1[%c0_267, %c0_268, %c1_269, %c1_270, %c0_271] : memref<1x4x9x9x4xf32, #tpu.memory_space<vmem>>, vector<1x1x8x8x4xf32>
    %156 = vector.shape_cast %155 : vector<1x1x8x8x4xf32> to vector<8x8x4xf32>
    %c3_272 = arith.constant 3 : index
    %c0_273 = arith.constant 0 : index
    %c0_274 = arith.constant 0 : index
    %c16_275 = arith.constant 16 : index
    %157 = vector.load %arg14[%c3_272, %c0_273, %c0_274, %c16_275] : memref<4x8x8x36xf32, #tpu.memory_space<vmem>>, vector<1x8x8x4xf32>
    %158 = vector.shape_cast %157 : vector<1x8x8x4xf32> to vector<8x8x4xf32>
    %159 = vector.shape_cast %156 : vector<8x8x4xf32> to vector<1x8x8x4xf32>
    tpu.vector_store %arg14[%c3_272, %c0_273, %c0_274, %c16_275], %159 {strides = array<i32>} : memref<4x8x8x36xf32, #tpu.memory_space<vmem>>, vector<1x8x8x4xf32>,
    %c0_276 = arith.constant 0 : index
    %c1_277 = arith.constant 1 : index
    %c1_278 = arith.constant 1 : index
    %c1_279 = arith.constant 1 : index
    %c0_280 = arith.constant 0 : index
    %160 = vector.load %arg1[%c0_276, %c1_277, %c1_278, %c1_279, %c0_280] : memref<1x4x9x9x4xf32, #tpu.memory_space<vmem>>, vector<1x1x8x8x4xf32>
    %161 = vector.shape_cast %160 : vector<1x1x8x8x4xf32> to vector<8x8x4xf32>
    %c3_281 = arith.constant 3 : index
    %c0_282 = arith.constant 0 : index
    %c0_283 = arith.constant 0 : index
    %c20_284 = arith.constant 20 : index
    %162 = vector.load %arg14[%c3_281, %c0_282, %c0_283, %c20_284] : memref<4x8x8x36xf32, #tpu.memory_space<vmem>>, vector<1x8x8x4xf32>
    %163 = vector.shape_cast %162 : vector<1x8x8x4xf32> to vector<8x8x4xf32>
    %164 = vector.shape_cast %161 : vector<8x8x4xf32> to vector<1x8x8x4xf32>
    tpu.vector_store %arg14[%c3_281, %c0_282, %c0_283, %c20_284], %164 {strides = array<i32>} : memref<4x8x8x36xf32, #tpu.memory_space<vmem>>, vector<1x8x8x4xf32>,
    %c0_285 = arith.constant 0 : index
    %c3_286 = arith.constant 3 : index
    %c1_287 = arith.constant 1 : index
    %c0_288 = arith.constant 0 : index
    %c0_289 = arith.constant 0 : index
    %165 = vector.load %arg1[%c0_285, %c3_286, %c1_287, %c0_288, %c0_289] : memref<1x4x9x9x4xf32, #tpu.memory_space<vmem>>, vector<1x1x8x8x4xf32>
    %166 = vector.shape_cast %165 : vector<1x1x8x8x4xf32> to vector<8x8x4xf32>
    %c3_290 = arith.constant 3 : index
    %c0_291 = arith.constant 0 : index
    %c0_292 = arith.constant 0 : index
    %c24_293 = arith.constant 24 : index
    %167 = vector.load %arg14[%c3_290, %c0_291, %c0_292, %c24_293] : memref<4x8x8x36xf32, #tpu.memory_space<vmem>>, vector<1x8x8x4xf32>
    %168 = vector.shape_cast %167 : vector<1x8x8x4xf32> to vector<8x8x4xf32>
    %169 = vector.shape_cast %166 : vector<8x8x4xf32> to vector<1x8x8x4xf32>
    tpu.vector_store %arg14[%c3_290, %c0_291, %c0_292, %c24_293], %169 {strides = array<i32>} : memref<4x8x8x36xf32, #tpu.memory_space<vmem>>, vector<1x8x8x4xf32>,
    %c0_294 = arith.constant 0 : index
    %c2_295 = arith.constant 2 : index
    %c1_296 = arith.constant 1 : index
    %c1_297 = arith.constant 1 : index
    %c0_298 = arith.constant 0 : index
    %170 = vector.load %arg1[%c0_294, %c2_295, %c1_296, %c1_297, %c0_298] : memref<1x4x9x9x4xf32, #tpu.memory_space<vmem>>, vector<1x1x8x8x4xf32>
    %171 = vector.shape_cast %170 : vector<1x1x8x8x4xf32> to vector<8x8x4xf32>
    %c3_299 = arith.constant 3 : index
    %c0_300 = arith.constant 0 : index
    %c0_301 = arith.constant 0 : index
    %c28_302 = arith.constant 28 : index
    %172 = vector.load %arg14[%c3_299, %c0_300, %c0_301, %c28_302] : memref<4x8x8x36xf32, #tpu.memory_space<vmem>>, vector<1x8x8x4xf32>
    %173 = vector.shape_cast %172 : vector<1x8x8x4xf32> to vector<8x8x4xf32>
    %174 = vector.shape_cast %171 : vector<8x8x4xf32> to vector<1x8x8x4xf32>
    tpu.vector_store %arg14[%c3_299, %c0_300, %c0_301, %c28_302], %174 {strides = array<i32>} : memref<4x8x8x36xf32, #tpu.memory_space<vmem>>, vector<1x8x8x4xf32>,
    %c0_303 = arith.constant 0 : index
    %c3_304 = arith.constant 3 : index
    %c1_305 = arith.constant 1 : index
    %c1_306 = arith.constant 1 : index
    %c0_307 = arith.constant 0 : index
    %175 = vector.load %arg1[%c0_303, %c3_304, %c1_305, %c1_306, %c0_307] : memref<1x4x9x9x4xf32, #tpu.memory_space<vmem>>, vector<1x1x8x8x4xf32>
    %176 = vector.shape_cast %175 : vector<1x1x8x8x4xf32> to vector<8x8x4xf32>
    %c3_308 = arith.constant 3 : index
    %c0_309 = arith.constant 0 : index
    %c0_310 = arith.constant 0 : index
    %c32_311 = arith.constant 32 : index
    %177 = vector.load %arg14[%c3_308, %c0_309, %c0_310, %c32_311] : memref<4x8x8x36xf32, #tpu.memory_space<vmem>>, vector<1x8x8x4xf32>
    %178 = vector.shape_cast %177 : vector<1x8x8x4xf32> to vector<8x8x4xf32>
    %179 = vector.shape_cast %176 : vector<8x8x4xf32> to vector<1x8x8x4xf32>
    tpu.vector_store %arg14[%c3_308, %c0_309, %c0_310, %c32_311], %179 {strides = array<i32>} : memref<4x8x8x36xf32, #tpu.memory_space<vmem>>, vector<1x8x8x4xf32>,
    %c0_312 = arith.constant 0 : index
    %c0_313 = arith.constant 0 : index
    %c0_314 = arith.constant 0 : index
    %c0_315 = arith.constant 0 : index
    %180 = vector.load %arg14[%c0_312, %c0_313, %c0_314, %c0_315] : memref<4x8x8x36xf32, #tpu.memory_space<vmem>>, vector<4x8x8x36xf32>
    %181 = vector.shape_cast %180 : vector<4x8x8x36xf32> to vector<256x36xf32>
    %182 = arith.truncf %181 : vector<256x36xf32> to vector<256x36xbf16>
    %c0_316 = arith.constant 0 : index
    %c0_317 = arith.constant 0 : index
    %183 = vector.load %arg2[%c0_316, %c0_317] : memref<36x24xbf16, #tpu.memory_space<vmem>>, vector<36x24xbf16>
    %cst = arith.constant dense<0.000000e+00> : vector<256x24xf32>
    %184 = tpu.matmul %182, %183, %cst {dimension_numbers = #tpu.dot_dimension_numbers<[1], [0], [0], [1], [0, 0, 1, 1], [], []>} : vector<256x36xbf16>, vector<36x24xbf16>, vector<256x24xf32> -> vector<256x24xf32>
    %c0_318 = arith.constant 0 : index
    %c0_319 = arith.constant 0 : index
    %185 = vector.load %arg3[%c0_318, %c0_319] : memref<1x24xf32, #tpu.memory_space<vmem>>, vector<1x24xf32>
    %186 = vector.broadcast %185 : vector<1x24xf32> to vector<256x24xf32>
    %187 = arith.addf %184, %186 : vector<256x24xf32>
    %cst_320 = arith.constant 0.000000e+00 : f32
    %188 = vector.broadcast %cst_320 : f32 to vector<256x24xf32>
    %189 = arith.maximumf %187, %188 : vector<256x24xf32>
    %190 = vector.shape_cast %189 : vector<256x24xf32> to vector<4x8x8x24xf32>
    %cst_321 = arith.constant 0.000000e+00 : f32
    %191 = vector.broadcast %cst_321 : f32 to vector<1x9x24xf32>
    %c0_322 = arith.constant 0 : index
    %c0_323 = arith.constant 0 : index
    %c0_324 = arith.constant 0 : index
    %192 = vector.load %arg15[%c0_322, %c0_323, %c0_324] : memref<9x9x24xf32, #tpu.memory_space<vmem>>, vector<1x9x24xf32>
    tpu.vector_store %arg15[%c0_322, %c0_323, %c0_324], %191 {strides = array<i32>} : memref<9x9x24xf32, #tpu.memory_space<vmem>>, vector<1x9x24xf32>,
    %cst_325 = arith.constant 0.000000e+00 : f32
    %193 = vector.broadcast %cst_325 : f32 to vector<1x9x24xf32>
    %c0_326 = arith.constant 0 : index
    %c0_327 = arith.constant 0 : index
    %c0_328 = arith.constant 0 : index
    %194 = vector.load %arg16[%c0_326, %c0_327, %c0_328] : memref<9x9x24xf32, #tpu.memory_space<vmem>>, vector<1x9x24xf32>
    tpu.vector_store %arg16[%c0_326, %c0_327, %c0_328], %193 {strides = array<i32>} : memref<9x9x24xf32, #tpu.memory_space<vmem>>, vector<1x9x24xf32>,
    %cst_329 = arith.constant 0.000000e+00 : f32
    %195 = vector.broadcast %cst_329 : f32 to vector<9x1x24xf32>
    %c0_330 = arith.constant 0 : index
    %c0_331 = arith.constant 0 : index
    %c0_332 = arith.constant 0 : index
    %196 = vector.load %arg15[%c0_330, %c0_331, %c0_332] : memref<9x9x24xf32, #tpu.memory_space<vmem>>, vector<9x1x24xf32>
    tpu.vector_store %arg15[%c0_330, %c0_331, %c0_332], %195 {strides = array<i32>} : memref<9x9x24xf32, #tpu.memory_space<vmem>>, vector<9x1x24xf32>,
    %cst_333 = arith.constant 0.000000e+00 : f32
    %197 = vector.broadcast %cst_333 : f32 to vector<9x1x24xf32>
    %c0_334 = arith.constant 0 : index
    %c0_335 = arith.constant 0 : index
    %c0_336 = arith.constant 0 : index
    %198 = vector.load %arg17[%c0_334, %c0_335, %c0_336] : memref<9x9x24xf32, #tpu.memory_space<vmem>>, vector<9x1x24xf32>
    tpu.vector_store %arg17[%c0_334, %c0_335, %c0_336], %197 {strides = array<i32>} : memref<9x9x24xf32, #tpu.memory_space<vmem>>, vector<9x1x24xf32>,
    %199 = vector.extract_strided_slice %190 {offsets = [0, 0, 0, 0], sizes = [1, 8, 8, 24], strides = [1, 1, 1, 1]} : vector<4x8x8x24xf32> to vector<1x8x8x24xf32>
    %200 = vector.shape_cast %199 : vector<1x8x8x24xf32> to vector<8x8x24xf32>
    %c0_337 = arith.constant 0 : index
    %c0_338 = arith.constant 0 : index
    %c0_339 = arith.constant 0 : index
    %201 = vector.load %arg18[%c0_337, %c0_338, %c0_339] : memref<9x9x24xf32, #tpu.memory_space<vmem>>, vector<8x8x24xf32>
    tpu.vector_store %arg18[%c0_337, %c0_338, %c0_339], %200 {strides = array<i32>} : memref<9x9x24xf32, #tpu.memory_space<vmem>>, vector<8x8x24xf32>,
    %202 = vector.extract_strided_slice %190 {offsets = [1, 0, 0, 0], sizes = [1, 8, 8, 24], strides = [1, 1, 1, 1]} : vector<4x8x8x24xf32> to vector<1x8x8x24xf32>
    %203 = vector.shape_cast %202 : vector<1x8x8x24xf32> to vector<8x8x24xf32>
    %c0_340 = arith.constant 0 : index
    %c1_341 = arith.constant 1 : index
    %c0_342 = arith.constant 0 : index
    %204 = vector.load %arg17[%c0_340, %c1_341, %c0_342] : memref<9x9x24xf32, #tpu.memory_space<vmem>>, vector<8x8x24xf32>
    tpu.vector_store %arg17[%c0_340, %c1_341, %c0_342], %203 {strides = array<i32>} : memref<9x9x24xf32, #tpu.memory_space<vmem>>, vector<8x8x24xf32>,
    %205 = vector.extract_strided_slice %190 {offsets = [2, 0, 0, 0], sizes = [1, 8, 8, 24], strides = [1, 1, 1, 1]} : vector<4x8x8x24xf32> to vector<1x8x8x24xf32>
    %206 = vector.shape_cast %205 : vector<1x8x8x24xf32> to vector<8x8x24xf32>
    %c1_343 = arith.constant 1 : index
    %c0_344 = arith.constant 0 : index
    %c0_345 = arith.constant 0 : index
    %207 = vector.load %arg16[%c1_343, %c0_344, %c0_345] : memref<9x9x24xf32, #tpu.memory_space<vmem>>, vector<8x8x24xf32>
    tpu.vector_store %arg16[%c1_343, %c0_344, %c0_345], %206 {strides = array<i32>} : memref<9x9x24xf32, #tpu.memory_space<vmem>>, vector<8x8x24xf32>,
    %208 = vector.extract_strided_slice %190 {offsets = [3, 0, 0, 0], sizes = [1, 8, 8, 24], strides = [1, 1, 1, 1]} : vector<4x8x8x24xf32> to vector<1x8x8x24xf32>
    %209 = vector.shape_cast %208 : vector<1x8x8x24xf32> to vector<8x8x24xf32>
    %c1_346 = arith.constant 1 : index
    %c1_347 = arith.constant 1 : index
    %c0_348 = arith.constant 0 : index
    %210 = vector.load %arg15[%c1_346, %c1_347, %c0_348] : memref<9x9x24xf32, #tpu.memory_space<vmem>>, vector<8x8x24xf32>
    tpu.vector_store %arg15[%c1_346, %c1_347, %c0_348], %209 {strides = array<i32>} : memref<9x9x24xf32, #tpu.memory_space<vmem>>, vector<8x8x24xf32>,
    %cst_349 = arith.constant 0.000000e+00 : f32
    %211 = vector.broadcast %cst_349 : f32 to vector<8x8x24xf32>
    %c0_350 = arith.constant 0 : index
    %c0_351 = arith.constant 0 : index
    %212 = vector.load %arg5[%c0_350, %c0_351] : memref<1x24xf32, #tpu.memory_space<vmem>>, vector<1x24xf32>
    %213 = vector.shape_cast %212 : vector<1x24xf32> to vector<1x1x24xf32>
    %214 = vector.broadcast %213 : vector<1x1x24xf32> to vector<8x8x24xf32>
    %215 = arith.addf %211, %214 : vector<8x8x24xf32>
    %c0_352 = arith.constant 0 : index
    %c0_353 = arith.constant 0 : index
    %c0_354 = arith.constant 0 : index
    %216 = vector.load %arg15[%c0_352, %c0_353, %c0_354] : memref<9x9x24xf32, #tpu.memory_space<vmem>>, vector<8x8x24xf32>
    %c0_355 = arith.constant 0 : index
    %c0_356 = arith.constant 0 : index
    %217 = vector.load %arg4[%c0_355, %c0_356] : memref<9x24xf32, #tpu.memory_space<vmem>>, vector<1x24xf32>
    %218 = vector.shape_cast %217 : vector<1x24xf32> to vector<1x1x24xf32>
    %219 = vector.broadcast %218 : vector<1x1x24xf32> to vector<8x8x24xf32>
    %220 = arith.mulf %216, %219 : vector<8x8x24xf32>
    %221 = arith.addf %215, %220 : vector<8x8x24xf32>
    %c0_357 = arith.constant 0 : index
    %c0_358 = arith.constant 0 : index
    %c0_359 = arith.constant 0 : index
    %222 = vector.load %arg16[%c0_357, %c0_358, %c0_359] : memref<9x9x24xf32, #tpu.memory_space<vmem>>, vector<8x8x24xf32>
    %c1_360 = arith.constant 1 : index
    %c0_361 = arith.constant 0 : index
    %223 = vector.load %arg4[%c1_360, %c0_361] : memref<9x24xf32, #tpu.memory_space<vmem>>, vector<1x24xf32>
    %224 = vector.shape_cast %223 : vector<1x24xf32> to vector<1x1x24xf32>
    %225 = vector.broadcast %224 : vector<1x1x24xf32> to vector<8x8x24xf32>
    %226 = arith.mulf %222, %225 : vector<8x8x24xf32>
    %227 = arith.addf %221, %226 : vector<8x8x24xf32>
    %c0_362 = arith.constant 0 : index
    %c1_363 = arith.constant 1 : index
    %c0_364 = arith.constant 0 : index
    %228 = vector.load %arg15[%c0_362, %c1_363, %c0_364] : memref<9x9x24xf32, #tpu.memory_space<vmem>>, vector<8x8x24xf32>
    %c2_365 = arith.constant 2 : index
    %c0_366 = arith.constant 0 : index
    %229 = vector.load %arg4[%c2_365, %c0_366] : memref<9x24xf32, #tpu.memory_space<vmem>>, vector<1x24xf32>
    %230 = vector.shape_cast %229 : vector<1x24xf32> to vector<1x1x24xf32>
    %231 = vector.broadcast %230 : vector<1x1x24xf32> to vector<8x8x24xf32>
    %232 = arith.mulf %228, %231 : vector<8x8x24xf32>
    %233 = arith.addf %227, %232 : vector<8x8x24xf32>
    %c0_367 = arith.constant 0 : index
    %c0_368 = arith.constant 0 : index
    %c0_369 = arith.constant 0 : index
    %234 = vector.load %arg17[%c0_367, %c0_368, %c0_369] : memref<9x9x24xf32, #tpu.memory_space<vmem>>, vector<8x8x24xf32>
    %c3_370 = arith.constant 3 : index
    %c0_371 = arith.constant 0 : index
    %235 = vector.load %arg4[%c3_370, %c0_371] : memref<9x24xf32, #tpu.memory_space<vmem>>, vector<1x24xf32>
    %236 = vector.shape_cast %235 : vector<1x24xf32> to vector<1x1x24xf32>
    %237 = vector.broadcast %236 : vector<1x1x24xf32> to vector<8x8x24xf32>
    %238 = arith.mulf %234, %237 : vector<8x8x24xf32>
    %239 = arith.addf %233, %238 : vector<8x8x24xf32>
    %c0_372 = arith.constant 0 : index
    %c0_373 = arith.constant 0 : index
    %c0_374 = arith.constant 0 : index
    %240 = vector.load %arg18[%c0_372, %c0_373, %c0_374] : memref<9x9x24xf32, #tpu.memory_space<vmem>>, vector<8x8x24xf32>
    %c4_375 = arith.constant 4 : index
    %c0_376 = arith.constant 0 : index
    %241 = vector.load %arg4[%c4_375, %c0_376] : memref<9x24xf32, #tpu.memory_space<vmem>>, vector<1x24xf32>
    %242 = vector.shape_cast %241 : vector<1x24xf32> to vector<1x1x24xf32>
    %243 = vector.broadcast %242 : vector<1x1x24xf32> to vector<8x8x24xf32>
    %244 = arith.mulf %240, %243 : vector<8x8x24xf32>
    %245 = arith.addf %239, %244 : vector<8x8x24xf32>
    %c0_377 = arith.constant 0 : index
    %c1_378 = arith.constant 1 : index
    %c0_379 = arith.constant 0 : index
    %246 = vector.load %arg17[%c0_377, %c1_378, %c0_379] : memref<9x9x24xf32, #tpu.memory_space<vmem>>, vector<8x8x24xf32>
    %c5 = arith.constant 5 : index
    %c0_380 = arith.constant 0 : index
    %247 = vector.load %arg4[%c5, %c0_380] : memref<9x24xf32, #tpu.memory_space<vmem>>, vector<1x24xf32>
    %248 = vector.shape_cast %247 : vector<1x24xf32> to vector<1x1x24xf32>
    %249 = vector.broadcast %248 : vector<1x1x24xf32> to vector<8x8x24xf32>
    %250 = arith.mulf %246, %249 : vector<8x8x24xf32>
    %251 = arith.addf %245, %250 : vector<8x8x24xf32>
    %c1_381 = arith.constant 1 : index
    %c0_382 = arith.constant 0 : index
    %c0_383 = arith.constant 0 : index
    %252 = vector.load %arg15[%c1_381, %c0_382, %c0_383] : memref<9x9x24xf32, #tpu.memory_space<vmem>>, vector<8x8x24xf32>
    %c6 = arith.constant 6 : index
    %c0_384 = arith.constant 0 : index
    %253 = vector.load %arg4[%c6, %c0_384] : memref<9x24xf32, #tpu.memory_space<vmem>>, vector<1x24xf32>
    %254 = vector.shape_cast %253 : vector<1x24xf32> to vector<1x1x24xf32>
    %255 = vector.broadcast %254 : vector<1x1x24xf32> to vector<8x8x24xf32>
    %256 = arith.mulf %252, %255 : vector<8x8x24xf32>
    %257 = arith.addf %251, %256 : vector<8x8x24xf32>
    %c1_385 = arith.constant 1 : index
    %c0_386 = arith.constant 0 : index
    %c0_387 = arith.constant 0 : index
    %258 = vector.load %arg16[%c1_385, %c0_386, %c0_387] : memref<9x9x24xf32, #tpu.memory_space<vmem>>, vector<8x8x24xf32>
    %c7 = arith.constant 7 : index
    %c0_388 = arith.constant 0 : index
    %259 = vector.load %arg4[%c7, %c0_388] : memref<9x24xf32, #tpu.memory_space<vmem>>, vector<1x24xf32>
    %260 = vector.shape_cast %259 : vector<1x24xf32> to vector<1x1x24xf32>
    %261 = vector.broadcast %260 : vector<1x1x24xf32> to vector<8x8x24xf32>
    %262 = arith.mulf %258, %261 : vector<8x8x24xf32>
    %263 = arith.addf %257, %262 : vector<8x8x24xf32>
    %c1_389 = arith.constant 1 : index
    %c1_390 = arith.constant 1 : index
    %c0_391 = arith.constant 0 : index
    %264 = vector.load %arg15[%c1_389, %c1_390, %c0_391] : memref<9x9x24xf32, #tpu.memory_space<vmem>>, vector<8x8x24xf32>
    %c8_392 = arith.constant 8 : index
    %c0_393 = arith.constant 0 : index
    %265 = vector.load %arg4[%c8_392, %c0_393] : memref<9x24xf32, #tpu.memory_space<vmem>>, vector<1x24xf32>
    %266 = vector.shape_cast %265 : vector<1x24xf32> to vector<1x1x24xf32>
    %267 = vector.broadcast %266 : vector<1x1x24xf32> to vector<8x8x24xf32>
    %268 = arith.mulf %264, %267 : vector<8x8x24xf32>
    %269 = arith.addf %263, %268 : vector<8x8x24xf32>
    %cst_394 = arith.constant 0.000000e+00 : f32
    %270 = vector.broadcast %cst_394 : f32 to vector<1x10x24xf32>
    %c0_395 = arith.constant 0 : index
    %c0_396 = arith.constant 0 : index
    %c0_397 = arith.constant 0 : index
    %271 = vector.load %arg19[%c0_395, %c0_396, %c0_397] : memref<10x10x24xf32, #tpu.memory_space<vmem>>, vector<1x10x24xf32>
    tpu.vector_store %arg19[%c0_395, %c0_396, %c0_397], %270 {strides = array<i32>} : memref<10x10x24xf32, #tpu.memory_space<vmem>>, vector<1x10x24xf32>,
    %cst_398 = arith.constant 0.000000e+00 : f32
    %272 = vector.broadcast %cst_398 : f32 to vector<1x10x24xf32>
    %c9 = arith.constant 9 : index
    %c0_399 = arith.constant 0 : index
    %c0_400 = arith.constant 0 : index
    %273 = vector.load %arg19[%c9, %c0_399, %c0_400] : memref<10x10x24xf32, #tpu.memory_space<vmem>>, vector<1x10x24xf32>
    tpu.vector_store %arg19[%c9, %c0_399, %c0_400], %272 {strides = array<i32>} : memref<10x10x24xf32, #tpu.memory_space<vmem>>, vector<1x10x24xf32>,
    %cst_401 = arith.constant 0.000000e+00 : f32
    %274 = vector.broadcast %cst_401 : f32 to vector<10x1x24xf32>
    %c0_402 = arith.constant 0 : index
    %c0_403 = arith.constant 0 : index
    %c0_404 = arith.constant 0 : index
    %275 = vector.load %arg19[%c0_402, %c0_403, %c0_404] : memref<10x10x24xf32, #tpu.memory_space<vmem>>, vector<10x1x24xf32>
    tpu.vector_store %arg19[%c0_402, %c0_403, %c0_404], %274 {strides = array<i32>} : memref<10x10x24xf32, #tpu.memory_space<vmem>>, vector<10x1x24xf32>,
    %cst_405 = arith.constant 0.000000e+00 : f32
    %276 = vector.broadcast %cst_405 : f32 to vector<10x1x24xf32>
    %c0_406 = arith.constant 0 : index
    %c9_407 = arith.constant 9 : index
    %c0_408 = arith.constant 0 : index
    %277 = vector.load %arg19[%c0_406, %c9_407, %c0_408] : memref<10x10x24xf32, #tpu.memory_space<vmem>>, vector<10x1x24xf32>
    tpu.vector_store %arg19[%c0_406, %c9_407, %c0_408], %276 {strides = array<i32>} : memref<10x10x24xf32, #tpu.memory_space<vmem>>, vector<10x1x24xf32>,
    %c1_409 = arith.constant 1 : index
    %c1_410 = arith.constant 1 : index
    %c0_411 = arith.constant 0 : index
    %278 = vector.load %arg19[%c1_409, %c1_410, %c0_411] : memref<10x10x24xf32, #tpu.memory_space<vmem>>, vector<8x8x24xf32>
    tpu.vector_store %arg19[%c1_409, %c1_410, %c0_411], %269 {strides = array<i32>} : memref<10x10x24xf32, #tpu.memory_space<vmem>>, vector<8x8x24xf32>,
    %cst_412 = arith.constant 0.000000e+00 : f32
    %279 = vector.broadcast %cst_412 : f32 to vector<8x8x24xf32>
    %c0_413 = arith.constant 0 : index
    %c0_414 = arith.constant 0 : index
    %280 = vector.load %arg7[%c0_413, %c0_414] : memref<1x24xf32, #tpu.memory_space<vmem>>, vector<1x24xf32>
    %281 = vector.shape_cast %280 : vector<1x24xf32> to vector<1x1x24xf32>
    %282 = vector.broadcast %281 : vector<1x1x24xf32> to vector<8x8x24xf32>
    %283 = arith.addf %279, %282 : vector<8x8x24xf32>
    %c0_415 = arith.constant 0 : index
    %c0_416 = arith.constant 0 : index
    %c0_417 = arith.constant 0 : index
    %284 = vector.load %arg19[%c0_415, %c0_416, %c0_417] : memref<10x10x24xf32, #tpu.memory_space<vmem>>, vector<8x8x24xf32>
    %c0_418 = arith.constant 0 : index
    %c0_419 = arith.constant 0 : index
    %285 = vector.load %arg6[%c0_418, %c0_419] : memref<9x24xf32, #tpu.memory_space<vmem>>, vector<1x24xf32>
    %286 = vector.shape_cast %285 : vector<1x24xf32> to vector<1x1x24xf32>
    %287 = vector.broadcast %286 : vector<1x1x24xf32> to vector<8x8x24xf32>
    %288 = arith.mulf %284, %287 : vector<8x8x24xf32>
    %289 = arith.addf %283, %288 : vector<8x8x24xf32>
    %c0_420 = arith.constant 0 : index
    %c1_421 = arith.constant 1 : index
    %c0_422 = arith.constant 0 : index
    %290 = vector.load %arg19[%c0_420, %c1_421, %c0_422] : memref<10x10x24xf32, #tpu.memory_space<vmem>>, vector<8x8x24xf32>
    %c1_423 = arith.constant 1 : index
    %c0_424 = arith.constant 0 : index
    %291 = vector.load %arg6[%c1_423, %c0_424] : memref<9x24xf32, #tpu.memory_space<vmem>>, vector<1x24xf32>
    %292 = vector.shape_cast %291 : vector<1x24xf32> to vector<1x1x24xf32>
    %293 = vector.broadcast %292 : vector<1x1x24xf32> to vector<8x8x24xf32>
    %294 = arith.mulf %290, %293 : vector<8x8x24xf32>
    %295 = arith.addf %289, %294 : vector<8x8x24xf32>
    %c0_425 = arith.constant 0 : index
    %c2_426 = arith.constant 2 : index
    %c0_427 = arith.constant 0 : index
    %296 = vector.load %arg19[%c0_425, %c2_426, %c0_427] : memref<10x10x24xf32, #tpu.memory_space<vmem>>, vector<8x8x24xf32>
    %c2_428 = arith.constant 2 : index
    %c0_429 = arith.constant 0 : index
    %297 = vector.load %arg6[%c2_428, %c0_429] : memref<9x24xf32, #tpu.memory_space<vmem>>, vector<1x24xf32>
    %298 = vector.shape_cast %297 : vector<1x24xf32> to vector<1x1x24xf32>
    %299 = vector.broadcast %298 : vector<1x1x24xf32> to vector<8x8x24xf32>
    %300 = arith.mulf %296, %299 : vector<8x8x24xf32>
    %301 = arith.addf %295, %300 : vector<8x8x24xf32>
    %c1_430 = arith.constant 1 : index
    %c0_431 = arith.constant 0 : index
    %c0_432 = arith.constant 0 : index
    %302 = vector.load %arg19[%c1_430, %c0_431, %c0_432] : memref<10x10x24xf32, #tpu.memory_space<vmem>>, vector<8x8x24xf32>
    %c3_433 = arith.constant 3 : index
    %c0_434 = arith.constant 0 : index
    %303 = vector.load %arg6[%c3_433, %c0_434] : memref<9x24xf32, #tpu.memory_space<vmem>>, vector<1x24xf32>
    %304 = vector.shape_cast %303 : vector<1x24xf32> to vector<1x1x24xf32>
    %305 = vector.broadcast %304 : vector<1x1x24xf32> to vector<8x8x24xf32>
    %306 = arith.mulf %302, %305 : vector<8x8x24xf32>
    %307 = arith.addf %301, %306 : vector<8x8x24xf32>
    %c1_435 = arith.constant 1 : index
    %c1_436 = arith.constant 1 : index
    %c0_437 = arith.constant 0 : index
    %308 = vector.load %arg19[%c1_435, %c1_436, %c0_437] : memref<10x10x24xf32, #tpu.memory_space<vmem>>, vector<8x8x24xf32>
    %c4_438 = arith.constant 4 : index
    %c0_439 = arith.constant 0 : index
    %309 = vector.load %arg6[%c4_438, %c0_439] : memref<9x24xf32, #tpu.memory_space<vmem>>, vector<1x24xf32>
    %310 = vector.shape_cast %309 : vector<1x24xf32> to vector<1x1x24xf32>
    %311 = vector.broadcast %310 : vector<1x1x24xf32> to vector<8x8x24xf32>
    %312 = arith.mulf %308, %311 : vector<8x8x24xf32>
    %313 = arith.addf %307, %312 : vector<8x8x24xf32>
    %c1_440 = arith.constant 1 : index
    %c2_441 = arith.constant 2 : index
    %c0_442 = arith.constant 0 : index
    %314 = vector.load %arg19[%c1_440, %c2_441, %c0_442] : memref<10x10x24xf32, #tpu.memory_space<vmem>>, vector<8x8x24xf32>
    %c5_443 = arith.constant 5 : index
    %c0_444 = arith.constant 0 : index
    %315 = vector.load %arg6[%c5_443, %c0_444] : memref<9x24xf32, #tpu.memory_space<vmem>>, vector<1x24xf32>
    %316 = vector.shape_cast %315 : vector<1x24xf32> to vector<1x1x24xf32>
    %317 = vector.broadcast %316 : vector<1x1x24xf32> to vector<8x8x24xf32>
    %318 = arith.mulf %314, %317 : vector<8x8x24xf32>
    %319 = arith.addf %313, %318 : vector<8x8x24xf32>
    %c2_445 = arith.constant 2 : index
    %c0_446 = arith.constant 0 : index
    %c0_447 = arith.constant 0 : index
    %320 = vector.load %arg19[%c2_445, %c0_446, %c0_447] : memref<10x10x24xf32, #tpu.memory_space<vmem>>, vector<8x8x24xf32>
    %c6_448 = arith.constant 6 : index
    %c0_449 = arith.constant 0 : index
    %321 = vector.load %arg6[%c6_448, %c0_449] : memref<9x24xf32, #tpu.memory_space<vmem>>, vector<1x24xf32>
    %322 = vector.shape_cast %321 : vector<1x24xf32> to vector<1x1x24xf32>
    %323 = vector.broadcast %322 : vector<1x1x24xf32> to vector<8x8x24xf32>
    %324 = arith.mulf %320, %323 : vector<8x8x24xf32>
    %325 = arith.addf %319, %324 : vector<8x8x24xf32>
    %c2_450 = arith.constant 2 : index
    %c1_451 = arith.constant 1 : index
    %c0_452 = arith.constant 0 : index
    %326 = vector.load %arg19[%c2_450, %c1_451, %c0_452] : memref<10x10x24xf32, #tpu.memory_space<vmem>>, vector<8x8x24xf32>
    %c7_453 = arith.constant 7 : index
    %c0_454 = arith.constant 0 : index
    %327 = vector.load %arg6[%c7_453, %c0_454] : memref<9x24xf32, #tpu.memory_space<vmem>>, vector<1x24xf32>
    %328 = vector.shape_cast %327 : vector<1x24xf32> to vector<1x1x24xf32>
    %329 = vector.broadcast %328 : vector<1x1x24xf32> to vector<8x8x24xf32>
    %330 = arith.mulf %326, %329 : vector<8x8x24xf32>
    %331 = arith.addf %325, %330 : vector<8x8x24xf32>
    %c2_455 = arith.constant 2 : index
    %c2_456 = arith.constant 2 : index
    %c0_457 = arith.constant 0 : index
    %332 = vector.load %arg19[%c2_455, %c2_456, %c0_457] : memref<10x10x24xf32, #tpu.memory_space<vmem>>, vector<8x8x24xf32>
    %c8_458 = arith.constant 8 : index
    %c0_459 = arith.constant 0 : index
    %333 = vector.load %arg6[%c8_458, %c0_459] : memref<9x24xf32, #tpu.memory_space<vmem>>, vector<1x24xf32>
    %334 = vector.shape_cast %333 : vector<1x24xf32> to vector<1x1x24xf32>
    %335 = vector.broadcast %334 : vector<1x1x24xf32> to vector<8x8x24xf32>
    %336 = arith.mulf %332, %335 : vector<8x8x24xf32>
    %337 = arith.addf %331, %336 : vector<8x8x24xf32>
    %cst_460 = arith.constant 0.000000e+00 : f32
    %338 = vector.broadcast %cst_460 : f32 to vector<8x8x24xf32>
    %339 = arith.maximumf %337, %338 : vector<8x8x24xf32>
    %340 = vector.shape_cast %339 : vector<8x8x24xf32> to vector<64x24xf32>
    %341 = arith.truncf %340 : vector<64x24xf32> to vector<64x24xbf16>
    %cst_461 = arith.constant 0.000000e+00 : f32
    %342 = vector.broadcast %cst_461 : f32 to vector<8x8x4xf32>
    %c0_462 = arith.constant 0 : index
    %c0_463 = arith.constant 0 : index
    %343 = vector.load %arg9[%c0_462, %c0_463] : memref<1x4xf32, #tpu.memory_space<vmem>>, vector<1x4xf32>
    %344 = vector.shape_cast %343 : vector<1x4xf32> to vector<1x1x4xf32>
    %345 = vector.broadcast %344 : vector<1x1x4xf32> to vector<8x8x4xf32>
    %346 = arith.addf %342, %345 : vector<8x8x4xf32>
    %c0_464 = arith.constant 0 : index
    %c0_465 = arith.constant 0 : index
    %c0_466 = arith.constant 0 : index
    %c0_467 = arith.constant 0 : index
    %c0_468 = arith.constant 0 : index
    %347 = vector.load %arg1[%c0_464, %c0_465, %c0_466, %c0_467, %c0_468] : memref<1x4x9x9x4xf32, #tpu.memory_space<vmem>>, vector<1x1x8x8x4xf32>
    %348 = vector.shape_cast %347 : vector<1x1x8x8x4xf32> to vector<8x8x4xf32>
    %c0_469 = arith.constant 0 : index
    %c0_470 = arith.constant 0 : index
    %349 = vector.load %arg8[%c0_469, %c0_470] : memref<9x4xf32, #tpu.memory_space<vmem>>, vector<1x4xf32>
    %350 = vector.shape_cast %349 : vector<1x4xf32> to vector<1x1x4xf32>
    %351 = vector.broadcast %350 : vector<1x1x4xf32> to vector<8x8x4xf32>
    %352 = arith.mulf %348, %351 : vector<8x8x4xf32>
    %353 = arith.addf %346, %352 : vector<8x8x4xf32>
    %c0_471 = arith.constant 0 : index
    %c1_472 = arith.constant 1 : index
    %c0_473 = arith.constant 0 : index
    %c0_474 = arith.constant 0 : index
    %c0_475 = arith.constant 0 : index
    %354 = vector.load %arg1[%c0_471, %c1_472, %c0_473, %c0_474, %c0_475] : memref<1x4x9x9x4xf32, #tpu.memory_space<vmem>>, vector<1x1x8x8x4xf32>
    %355 = vector.shape_cast %354 : vector<1x1x8x8x4xf32> to vector<8x8x4xf32>
    %c1_476 = arith.constant 1 : index
    %c0_477 = arith.constant 0 : index
    %356 = vector.load %arg8[%c1_476, %c0_477] : memref<9x4xf32, #tpu.memory_space<vmem>>, vector<1x4xf32>
    %357 = vector.shape_cast %356 : vector<1x4xf32> to vector<1x1x4xf32>
    %358 = vector.broadcast %357 : vector<1x1x4xf32> to vector<8x8x4xf32>
    %359 = arith.mulf %355, %358 : vector<8x8x4xf32>
    %360 = arith.addf %353, %359 : vector<8x8x4xf32>
    %c0_478 = arith.constant 0 : index
    %c0_479 = arith.constant 0 : index
    %c0_480 = arith.constant 0 : index
    %c1_481 = arith.constant 1 : index
    %c0_482 = arith.constant 0 : index
    %361 = vector.load %arg1[%c0_478, %c0_479, %c0_480, %c1_481, %c0_482] : memref<1x4x9x9x4xf32, #tpu.memory_space<vmem>>, vector<1x1x8x8x4xf32>
    %362 = vector.shape_cast %361 : vector<1x1x8x8x4xf32> to vector<8x8x4xf32>
    %c2_483 = arith.constant 2 : index
    %c0_484 = arith.constant 0 : index
    %363 = vector.load %arg8[%c2_483, %c0_484] : memref<9x4xf32, #tpu.memory_space<vmem>>, vector<1x4xf32>
    %364 = vector.shape_cast %363 : vector<1x4xf32> to vector<1x1x4xf32>
    %365 = vector.broadcast %364 : vector<1x1x4xf32> to vector<8x8x4xf32>
    %366 = arith.mulf %362, %365 : vector<8x8x4xf32>
    %367 = arith.addf %360, %366 : vector<8x8x4xf32>
    %c0_485 = arith.constant 0 : index
    %c2_486 = arith.constant 2 : index
    %c0_487 = arith.constant 0 : index
    %c0_488 = arith.constant 0 : index
    %c0_489 = arith.constant 0 : index
    %368 = vector.load %arg1[%c0_485, %c2_486, %c0_487, %c0_488, %c0_489] : memref<1x4x9x9x4xf32, #tpu.memory_space<vmem>>, vector<1x1x8x8x4xf32>
    %369 = vector.shape_cast %368 : vector<1x1x8x8x4xf32> to vector<8x8x4xf32>
    %c3_490 = arith.constant 3 : index
    %c0_491 = arith.constant 0 : index
    %370 = vector.load %arg8[%c3_490, %c0_491] : memref<9x4xf32, #tpu.memory_space<vmem>>, vector<1x4xf32>
    %371 = vector.shape_cast %370 : vector<1x4xf32> to vector<1x1x4xf32>
    %372 = vector.broadcast %371 : vector<1x1x4xf32> to vector<8x8x4xf32>
    %373 = arith.mulf %369, %372 : vector<8x8x4xf32>
    %374 = arith.addf %367, %373 : vector<8x8x4xf32>
    %c0_492 = arith.constant 0 : index
    %c3_493 = arith.constant 3 : index
    %c0_494 = arith.constant 0 : index
    %c0_495 = arith.constant 0 : index
    %c0_496 = arith.constant 0 : index
    %375 = vector.load %arg1[%c0_492, %c3_493, %c0_494, %c0_495, %c0_496] : memref<1x4x9x9x4xf32, #tpu.memory_space<vmem>>, vector<1x1x8x8x4xf32>
    %376 = vector.shape_cast %375 : vector<1x1x8x8x4xf32> to vector<8x8x4xf32>
    %c4_497 = arith.constant 4 : index
    %c0_498 = arith.constant 0 : index
    %377 = vector.load %arg8[%c4_497, %c0_498] : memref<9x4xf32, #tpu.memory_space<vmem>>, vector<1x4xf32>
    %378 = vector.shape_cast %377 : vector<1x4xf32> to vector<1x1x4xf32>
    %379 = vector.broadcast %378 : vector<1x1x4xf32> to vector<8x8x4xf32>
    %380 = arith.mulf %376, %379 : vector<8x8x4xf32>
    %381 = arith.addf %374, %380 : vector<8x8x4xf32>
    %c0_499 = arith.constant 0 : index
    %c2_500 = arith.constant 2 : index
    %c0_501 = arith.constant 0 : index
    %c1_502 = arith.constant 1 : index
    %c0_503 = arith.constant 0 : index
    %382 = vector.load %arg1[%c0_499, %c2_500, %c0_501, %c1_502, %c0_503] : memref<1x4x9x9x4xf32, #tpu.memory_space<vmem>>, vector<1x1x8x8x4xf32>
    %383 = vector.shape_cast %382 : vector<1x1x8x8x4xf32> to vector<8x8x4xf32>
    %c5_504 = arith.constant 5 : index
    %c0_505 = arith.constant 0 : index
    %384 = vector.load %arg8[%c5_504, %c0_505] : memref<9x4xf32, #tpu.memory_space<vmem>>, vector<1x4xf32>
    %385 = vector.shape_cast %384 : vector<1x4xf32> to vector<1x1x4xf32>
    %386 = vector.broadcast %385 : vector<1x1x4xf32> to vector<8x8x4xf32>
    %387 = arith.mulf %383, %386 : vector<8x8x4xf32>
    %388 = arith.addf %381, %387 : vector<8x8x4xf32>
    %c0_506 = arith.constant 0 : index
    %c0_507 = arith.constant 0 : index
    %c1_508 = arith.constant 1 : index
    %c0_509 = arith.constant 0 : index
    %c0_510 = arith.constant 0 : index
    %389 = vector.load %arg1[%c0_506, %c0_507, %c1_508, %c0_509, %c0_510] : memref<1x4x9x9x4xf32, #tpu.memory_space<vmem>>, vector<1x1x8x8x4xf32>
    %390 = vector.shape_cast %389 : vector<1x1x8x8x4xf32> to vector<8x8x4xf32>
    %c6_511 = arith.constant 6 : index
    %c0_512 = arith.constant 0 : index
    %391 = vector.load %arg8[%c6_511, %c0_512] : memref<9x4xf32, #tpu.memory_space<vmem>>, vector<1x4xf32>
    %392 = vector.shape_cast %391 : vector<1x4xf32> to vector<1x1x4xf32>
    %393 = vector.broadcast %392 : vector<1x1x4xf32> to vector<8x8x4xf32>
    %394 = arith.mulf %390, %393 : vector<8x8x4xf32>
    %395 = arith.addf %388, %394 : vector<8x8x4xf32>
    %c0_513 = arith.constant 0 : index
    %c1_514 = arith.constant 1 : index
    %c1_515 = arith.constant 1 : index
    %c0_516 = arith.constant 0 : index
    %c0_517 = arith.constant 0 : index
    %396 = vector.load %arg1[%c0_513, %c1_514, %c1_515, %c0_516, %c0_517] : memref<1x4x9x9x4xf32, #tpu.memory_space<vmem>>, vector<1x1x8x8x4xf32>
    %397 = vector.shape_cast %396 : vector<1x1x8x8x4xf32> to vector<8x8x4xf32>
    %c7_518 = arith.constant 7 : index
    %c0_519 = arith.constant 0 : index
    %398 = vector.load %arg8[%c7_518, %c0_519] : memref<9x4xf32, #tpu.memory_space<vmem>>, vector<1x4xf32>
    %399 = vector.shape_cast %398 : vector<1x4xf32> to vector<1x1x4xf32>
    %400 = vector.broadcast %399 : vector<1x1x4xf32> to vector<8x8x4xf32>
    %401 = arith.mulf %397, %400 : vector<8x8x4xf32>
    %402 = arith.addf %395, %401 : vector<8x8x4xf32>
    %c0_520 = arith.constant 0 : index
    %c0_521 = arith.constant 0 : index
    %c1_522 = arith.constant 1 : index
    %c1_523 = arith.constant 1 : index
    %c0_524 = arith.constant 0 : index
    %403 = vector.load %arg1[%c0_520, %c0_521, %c1_522, %c1_523, %c0_524] : memref<1x4x9x9x4xf32, #tpu.memory_space<vmem>>, vector<1x1x8x8x4xf32>
    %404 = vector.shape_cast %403 : vector<1x1x8x8x4xf32> to vector<8x8x4xf32>
    %c8_525 = arith.constant 8 : index
    %c0_526 = arith.constant 0 : index
    %405 = vector.load %arg8[%c8_525, %c0_526] : memref<9x4xf32, #tpu.memory_space<vmem>>, vector<1x4xf32>
    %406 = vector.shape_cast %405 : vector<1x4xf32> to vector<1x1x4xf32>
    %407 = vector.broadcast %406 : vector<1x1x4xf32> to vector<8x8x4xf32>
    %408 = arith.mulf %404, %407 : vector<8x8x4xf32>
    %409 = arith.addf %402, %408 : vector<8x8x4xf32>
    %410 = vector.shape_cast %409 : vector<8x8x4xf32> to vector<64x4xf32>
    %411 = arith.truncf %410 : vector<64x4xf32> to vector<64x4xbf16>
    %c0_527 = arith.constant 0 : index
    %c0_528 = arith.constant 0 : index
    %412 = vector.load %arg10[%c0_527, %c0_528] : memref<8x24xbf16, #tpu.memory_space<vmem>>, vector<8x24xbf16>
    %cst_529 = arith.constant dense<0.000000e+00> : vector<8x64xf32>
    %413 = tpu.matmul %412, %341, %cst_529 {dimension_numbers = #tpu.dot_dimension_numbers<[1], [1], [0], [0], [0, 0, 1, 0], [], []>} : vector<8x24xbf16>, vector<64x24xbf16>, vector<8x64xf32> -> vector<8x64xf32>
    %c0_530 = arith.constant 0 : index
    %c0_531 = arith.constant 0 : index
    %414 = vector.load %arg11[%c0_530, %c0_531] : memref<8x4xbf16, #tpu.memory_space<vmem>>, vector<8x4xbf16>
    %cst_532 = arith.constant dense<0.000000e+00> : vector<8x64xf32>
    %415 = tpu.matmul %414, %411, %cst_532 {dimension_numbers = #tpu.dot_dimension_numbers<[1], [1], [0], [0], [0, 0, 1, 0], [], []>} : vector<8x4xbf16>, vector<64x4xbf16>, vector<8x64xf32> -> vector<8x64xf32>
    %416 = arith.addf %413, %415 : vector<8x64xf32>
    %c0_533 = arith.constant 0 : index
    %c0_534 = arith.constant 0 : index
    %417 = vector.load %arg12[%c0_533, %c0_534] : memref<8x1xf32, #tpu.memory_space<vmem>>, vector<8x1xf32>
    %418 = vector.broadcast %417 : vector<8x1xf32> to vector<8x64xf32>
    %419 = arith.addf %416, %418 : vector<8x64xf32>
    %cst_535 = arith.constant 0.000000e+00 : f32
    %420 = vector.broadcast %cst_535 : f32 to vector<8x64xf32>
    %421 = arith.maximumf %419, %420 : vector<8x64xf32>
    %c0_536 = arith.constant 0 : index
    %c0_537 = arith.constant 0 : index
    %c0_538 = arith.constant 0 : index
    %422 = vector.load %arg13[%c0_536, %c0_537, %c0_538] : memref<1x8x64xf32, #tpu.memory_space<vmem>>, vector<1x8x64xf32>
    %423 = vector.shape_cast %422 : vector<1x8x64xf32> to vector<8x64xf32>
    %424 = vector.shape_cast %421 : vector<8x64xf32> to vector<1x8x64xf32>
    tpu.vector_store %arg13[%c0_536, %c0_537, %c0_538], %424 {strides = array<i32>} : memref<1x8x64xf32, #tpu.memory_space<vmem>>, vector<1x8x64xf32>,
    return
  }
  func.func @transform_0(%arg0: i32) -> (i32, i32, i32, i32, i32) {
    %c0_i32 = arith.constant 0 : i32
    %c0_i32_0 = arith.constant 0 : i32
    %c0_i32_1 = arith.constant 0 : i32
    %c0_i32_2 = arith.constant 0 : i32
    %c0_i32_3 = arith.constant 0 : i32
    return %arg0, %c0_i32, %c0_i32_0, %c0_i32_1, %c0_i32_2 : i32, i32, i32, i32, i32
  }
  func.func @transform_1(%arg0: i32) -> (i32, i32) {
    %c0_i32 = arith.constant 0 : i32
    %c0_i32_0 = arith.constant 0 : i32
    %c0_i32_1 = arith.constant 0 : i32
    return %c0_i32, %c0_i32_0 : i32, i32
  }
  func.func @transform_2(%arg0: i32) -> (i32, i32) {
    %c0_i32 = arith.constant 0 : i32
    %c0_i32_0 = arith.constant 0 : i32
    %c0_i32_1 = arith.constant 0 : i32
    return %c0_i32, %c0_i32_0 : i32, i32
  }
  func.func @transform_3(%arg0: i32) -> (i32, i32) {
    %c0_i32 = arith.constant 0 : i32
    %c0_i32_0 = arith.constant 0 : i32
    %c0_i32_1 = arith.constant 0 : i32
    return %c0_i32, %c0_i32_0 : i32, i32
  }
  func.func @transform_4(%arg0: i32) -> (i32, i32) {
    %c0_i32 = arith.constant 0 : i32
    %c0_i32_0 = arith.constant 0 : i32
    %c0_i32_1 = arith.constant 0 : i32
    return %c0_i32, %c0_i32_0 : i32, i32
  }
  func.func @transform_5(%arg0: i32) -> (i32, i32) {
    %c0_i32 = arith.constant 0 : i32
    %c0_i32_0 = arith.constant 0 : i32
    %c0_i32_1 = arith.constant 0 : i32
    return %c0_i32, %c0_i32_0 : i32, i32
  }
  func.func @transform_6(%arg0: i32) -> (i32, i32) {
    %c0_i32 = arith.constant 0 : i32
    %c0_i32_0 = arith.constant 0 : i32
    %c0_i32_1 = arith.constant 0 : i32
    return %c0_i32, %c0_i32_0 : i32, i32
  }
  func.func @transform_7(%arg0: i32) -> (i32, i32) {
    %c0_i32 = arith.constant 0 : i32
    %c0_i32_0 = arith.constant 0 : i32
    %c0_i32_1 = arith.constant 0 : i32
    return %c0_i32, %c0_i32_0 : i32, i32
  }
  func.func @transform_8(%arg0: i32) -> (i32, i32) {
    %c0_i32 = arith.constant 0 : i32
    %c0_i32_0 = arith.constant 0 : i32
    %c0_i32_1 = arith.constant 0 : i32
    return %c0_i32, %c0_i32_0 : i32, i32
  }
  func.func @transform_9(%arg0: i32) -> (i32, i32) {
    %c0_i32 = arith.constant 0 : i32
    %c0_i32_0 = arith.constant 0 : i32
    %c0_i32_1 = arith.constant 0 : i32
    return %c0_i32, %c0_i32_0 : i32, i32
  }
  func.func @transform_10(%arg0: i32) -> (i32, i32) {
    %c0_i32 = arith.constant 0 : i32
    %c0_i32_0 = arith.constant 0 : i32
    %c0_i32_1 = arith.constant 0 : i32
    return %c0_i32, %c0_i32_0 : i32, i32
  }
  func.func @transform_11(%arg0: i32) -> (i32, i32) {
    %c0_i32 = arith.constant 0 : i32
    %c0_i32_0 = arith.constant 0 : i32
    %c0_i32_1 = arith.constant 0 : i32
    return %c0_i32, %c0_i32_0 : i32, i32
  }
  func.func @transform_12(%arg0: i32) -> (i32, i32, i32) {
    %c0_i32 = arith.constant 0 : i32
    %c0_i32_0 = arith.constant 0 : i32
    %c0_i32_1 = arith.constant 0 : i32
    return %arg0, %c0_i32, %c0_i32_0 : i32, i32, i32
  }
}

</mosaic_0001>

<bundles_post_ra>
// kernel: squeeze.6
= control target key start
LH: loop header
LB: loop body
LE: loop exit
PB: predicated region body
PF: predicated region fallthrough
CT: control target
= control target key end

     0   :  { %vm17_vm0 = vcmask 195584   ;;  %s62_s0 = inlined_call_operand.vmem [shape: f32[24,3,3], index: 0, kind: input, shape index: {}]   ;;  %s63_s1 = inlined_call_operand.vmem [shape: f32[24,9], index: 1, kind: output, shape index: {}]  }
   0x1   :  { %v30_v0 = vld [vmem:[%s62_s0 + $0x8] sm:$0xf]  ;;  %v31_v1 = vld [vmem:[%s62_s0 + $0x4] sm:$0xf]  ;;  %v14_v2 = vld [vmem:[%s62_s0] sm:$0xf] }
   0x2   :  { %9 = vst [vmem:[#allocation0] sm:$0xf] %v30_v0  ;;  %13 = vst [vmem:[#allocation0 + $0x10] sm:$0xf] %v31_v1 }
   0x3   :  { %15 = vst [vmem:[#allocation0 + $0x8] sm:$0xf] %v14_v2 }
   0x9   :  { %v20_v4 = vld [vmem:[#allocation0 + $0x10] sm:$0x7]   ;;  %v25_v5 = vld [vmem:[#allocation0] sm:$0x7]  }
   0xa   :  { %v16_v3 = vld [vmem:[#allocation0 + $0x8] sm:$0x7]   ;;  %32 = vst.msk [vmem:[%s63_s1 + $0x3] sm:$0x7] %vm17_vm0, %v20_v4   ;;  %33 = vst.msk [vmem:[%s63_s1 + $0x6] sm:$0x7] %vm17_vm0, %v25_v5  }
   0xb   :  { %18 = vst.msk [vmem:[%s63_s1] sm:$0x7] %vm17_vm0, %v16_v3  }

// kernel: gelayer_down_forward.1
= control target key start
LH: loop header
LB: loop body
LE: loop exit
PB: predicated region body
PF: predicated region fallthrough
CT: control target
= control target key end

     0   :  { %s4027_s21 = smov 0   ;;  %s6000_s0 = inlined_call_operand.vmem [shape: f32[2,4,9,9,4], index: 0, kind: input, shape index: {}]   ;;  %s6001_s1 = inlined_call_operand.vmem [shape: bf16[36,24], index: 1, kind: input, shape index: {}]   ;;  %s6002_s2 = inlined_call_operand.vmem [shape: f32[1,24], index: 2, kind: input, shape index: {}]   ;;  %s6003_s3 = inlined_call_operand.vmem [shape: f32[9,24], index: 3, kind: input, shape index: {}]   ;;  %s6004_s4 = inlined_call_operand.vmem [shape: f32[1,24], index: 4, kind: input, shape index: {}]   ;;  %s6005_s5 = inlined_call_operand.vmem [shape: f32[9,24], index: 5, kind: input, shape index: {}]   ;;  %s6006_s6 = inlined_call_operand.vmem [shape: f32[1,24], index: 6, kind: input, shape index: {}]   ;;  %s6007_s7 = inlined_call_operand.vmem [shape: f32[9,4], index: 7, kind: input, shape index: {}]   ;;  %s6008_s8 = inlined_call_operand.vmem [shape: f32[1,4], index: 8, kind: input, shape index: {}]   ;;  %s6009_s9 = inlined_call_operand.vmem [shape: bf16[8,24], index: 9, kind: input, shape index: {}]   ;;  %s6010_s10 = inlined_call_operand.vmem [shape: bf16[8,4], index: 10, kind: input, shape index: {}]   ;;  %s6011_s11 = inlined_call_operand.vmem [shape: f32[8,1], index: 11, kind: input, shape index: {}]   ;;  %s6012_s12 = inlined_call_operand.vmem [shape: f32[2,8,64], index: 12, kind: output, shape index: {}]  }
   0x1 LB: > { %s3445_s22 = sadd.s32 4294967295, %s3949_s21   ;;  %p3449_p0 = scmp.ge.s32.totalorder %s3949_s21, 1  ;;  %s3949_s21 = sphi %s4027_s21, %s22_s21  }
   0x2   : > { %p362_p1 = scmp.lt.s32.totalorder %s3949_s21, 3 }
   0x4   : > { %p363_p2 = pnand %p3449_p0, %p362_p1 }
   0x5   : > { %p403_p3 = scmp.lt.s32.totalorder (!%p363_p2), %s3445_s22, 1  ;;  %s3951_s27 = smov (!%p363_p2), 4  }
   0x6   : > { %366 = sbr.rel (%p363_p2) target bundleno = 1145 (0x479), region = 68  ;;  %s3952_s28 = smov (!%p363_p2), 8  }
   0x7   : > { %s3953_s29 = smov (!%p363_p2), 12   ;;  %s3954_s30 = smov (!%p363_p2), 16  }
   0x8   : > { %s3955_s13 = smov (!%p363_p2), 20   ;;  %s3956_s14 = smov (!%p363_p2), 24  }
   0x9   : > { %s3957_s17 = smov (!%p363_p2), 28   ;;  %s3958_s24 = smov (!%p363_p2), 32  }
   0xb   : > { %s6014_s22 = smov (!%p403_p3, %s3445_s22), 1  ;;  %vm421_vm0 = vcmask 31744   ;;  %v3939_v30 = vld [vmem:[%s6001_s1 + $0x10] ss:$0 sps:$4 sm:$0x33]   ;;  %vm2156_vm1 = vcmask 1041408  }
   0xc   : > { %s3918_s23 = smul.u32 576, %s6014_s22  ;;  %3917 = vmatprep.subr.msk.bf16.mxu0 %vm2156_vm1, %v3939_v30  ;;  %v2158_v31 = vsel %vm2156_vm1, %v3939_v30, 0  ;;  %v3940_v32 = vld [vmem:[%s6001_s1 + $0x8] sm:$0xff]   ;;  %v3941_v33 = vld [vmem:[%s6001_s1] sm:$0xff]   ;;  %vm471_vm2 = vcmask 64544   ;;  %vm520_vm3 = vcmask 97344  }
   0xd   : > { %3856 = vmatpush3.bf16.msra.mxu0 %v2158_v31  ;;  %vm570_vm4 = vcmask 130144   ;;  %vm620_vm5 = vcmask 162944   ;;  %vm669_vm6 = vcmask 195744   ;;  %vm719_vm7 = vcmask 228544  }
   0xe   : > { %s4041_s26 = scalar_lea.vmem %s6000_s0, %s3918_s23  ;;  %3857 = vmatprep.subr.bf16.mxu0 %v3940_v32  ;;  %vm769_vm8 = vcmask 261344   ;;  %vm818_vm9 = vcmask 294144   ;;  %vm2107_vm10 = vcmask 293888   ;;  %vm2353_vm11 = vcmask 195584  }
   0xf   : > { %v4044_v0 = vld [vmem:[%s4041_s26 + $0xb0] sm:$0xff]  ;;  %v4048_v2 = vld [vmem:[%s4041_s26 + $0xc0] sm:$0xff]  ;;  %vm2355_vm12 = vcmask 188416   ;;  %vm2681_vm13 = vcmask 189440   ;;  %vm3960_vm14 = vmmov 0   ;;  %vm3390_vm15 = vcmask 523264  }
  0x10   : > { %v3452_v1 = vld [vmem:[%s4041_s26 + $0x90] sm:$0xff]  ;;  %451 = vrot.lane.b32.xlu1 %v4044_v0, %s3951_s27  ;;  %v4054_v3 = vld [vmem:[%s4041_s26 + $0xa0] sm:$0xff]  ;;  %839 = vst.msk [vmem:[#allocation2 + $0x58] sm:$0xff] %vm421_vm0, %v4048_v2  ;;  %838 = vst.msk [vmem:[#allocation2 + $0x50] sm:$0xff] %vm421_vm0, %v4044_v0 }
  0x11   : > { %447 = vrot.lane.b32.xlu0 %v3452_v1, %s3951_s27  ;;  %836 = vst.msk [vmem:[#allocation2 + $0x40] sm:$0xff] %vm421_vm0, %v3452_v1  ;;  %837 = vst.msk [vmem:[#allocation2 + $0x48] sm:$0xff] %vm421_vm0, %v4054_v3  ;;  %v4068_v4 = vld [vmem:[%s4041_s26 + $0x11] sm:$0xff]  ;;  %v4071_v5 = vld [vmem:[%s4041_s26 + $0x1] sm:$0xff]  ;;  %3858 = vmatpush3.bf16.msra.mxu0 %v3940_v32 }
  0x12   : > { %v4074_v6 = vld [vmem:[%s4041_s26 + $0x20] sm:$0xff]  ;;  %v4077_v7 = vld [vmem:[%s4041_s26 + $0x10] sm:$0xff]  ;;  %3859 = vmatprep.subr.bf16.mxu0 %v3941_v33 }
  0x13   : > { %v4080_v8 = vld [vmem:[%s4041_s26 + $0x40] sm:$0xff]  ;;  %v4083_v9 = vld [vmem:[%s4041_s26 + $0x30] sm:$0xff]  ;;  %424 = vst.msk [vmem:[#allocation2 + $0x10] sm:$0xff] %vm421_vm0, %v4074_v6  ;;  %423 = vst.msk [vmem:[#allocation2 + $0x8] sm:$0xff] %vm421_vm0, %v4077_v7 }
  0x14   : > { %453 = vrot.lane.b32.xlu1 %v4048_v2, %s3951_s27  ;;  %v4086_v10 = vld [vmem:[%s4041_s26 + $0xd0] sm:$0xff]  ;;  %v4097_v11 = vld [vmem:[%s4041_s26 + $0xe0] sm:$0xff]  ;;  %425 = vst.msk [vmem:[#allocation2 + $0x18] sm:$0xff] %vm421_vm0, %v4083_v9  ;;  %426 = vst.msk [vmem:[#allocation2 + $0x20] sm:$0xff] %vm421_vm0, %v4080_v8 }
  0x15   : > { %449 = vrot.lane.b32.xlu0 %v4054_v3, %s3951_s27  ;;  %840 = vst.msk [vmem:[#allocation2 + $0x60] sm:$0xff] %vm421_vm0, %v4086_v10  ;;  %v4106_v12 = vld [vmem:[%s4041_s26 + $0x31] sm:$0xff]  ;;  %v4109_v13 = vld [vmem:[%s4041_s26 + $0x21] sm:$0xff]  ;;  %841 = vst.msk [vmem:[#allocation2 + $0x68] sm:$0xff] %vm421_vm0, %v4097_v11  ;;  %3860 = vmatpush3.bf16.msra.mxu0 %v3941_v33 }
  0x16   : > { %v3461_v14 = vld [vmem:[%s4041_s26 + $0x130] sm:$0xff]  ;;  %v3460_v15 = vld [vmem:[%s4041_s26 + $0x120] sm:$0xff] }
  0x17   : > { %v4120_v16 = vld [vmem:[%s4041_s26 + $0x60] sm:$0xff]  ;;  %v4123_v17 = vld [vmem:[%s4041_s26 + $0x50] sm:$0xff] }
  0x18   : > { %498 = vrot.lane.b32.xlu1 %v4068_v4, %s3952_s28  ;;  %v4128_v18 = vld [vmem:[%s4041_s26 + $0x70] sm:$0xff]  ;;  %v413_v19 = vld [vmem:[%s4041_s26] sm:$0xff]  ;;  %427 = vst.msk [vmem:[#allocation2 + $0x28] sm:$0xff] %vm421_vm0, %v4123_v17  ;;  %428 = vst.msk [vmem:[#allocation2 + $0x30] sm:$0xff] %vm421_vm0, %v4120_v16 }
  0x19   : > { %496 = vrot.lane.b32.xlu0 %v4071_v5, %s3952_s28  ;;  %v3463_v20 = vld [vmem:[%s4041_s26 + $0x150] sm:$0xff]  ;;  %v3462_v21 = vld [vmem:[%s4041_s26 + $0x140] sm:$0xff]  ;;  %422 = vst.msk [vmem:[#allocation2] sm:$0xff] %vm421_vm0, %v413_v19  ;;  %429 = vst.msk [vmem:[#allocation2 + $0x38] sm:$0xff] %vm421_vm0, %v4128_v18 }
  0x1a   : > { %v4143_v22 = vld [vmem:[%s4041_s26 + $0x1c0] sm:$0xff]  ;;  %v4146_v23 = vld [vmem:[%s4041_s26 + $0x1b0] sm:$0xff] }
  0x1b   : > { %v4153_v24 = vld [vmem:[%s4041_s26 + $0x1e0] sm:$0xff]  ;;  %v4156_v25 = vld [vmem:[%s4041_s26 + $0x1d0] sm:$0xff] }
  0x1c   : > { %502 = vrot.lane.b32.xlu1 %v4106_v12, %s3952_s28  ;;  %v4163_v26 = vld [vmem:[%s4041_s26 + $0x131] sm:$0xff]  ;;  %v4166_v27 = vld [vmem:[%s4041_s26 + $0x121] sm:$0xff] }
  0x1d   : > { %500 = vrot.lane.b32.xlu0 %v4109_v13, %s3952_s28  ;;  %v4173_v28 = vld [vmem:[%s4041_s26 + $0x151] sm:$0xff]  ;;  %v4176_v29 = vld [vmem:[%s4041_s26 + $0x141] sm:$0xff] }
  0x1e   : > { %v4216_v34 = vld [vmem:[%s4041_s26 + $0x41] sm:$0xff]  ;;  %v4226_v36 = vld [vmem:[%s4041_s26 + $0xf0] sm:$0xff] }
  0x1f   : > { %v4223_v35 = vld [vmem:[%s4041_s26 + $0x100] sm:$0xff]  ;;  %v4233_v37 = vld [vmem:[%s4041_s26 + $0x51] sm:$0xff] }
  0x20   : > { %548 = vrot.lane.b32.xlu1 %v3461_v14, %s3953_s29  ;;  %v4240_v38 = vld [vmem:[%s4041_s26 + $0x71] sm:$0xff]  ;;  %v4243_v39 = vld [vmem:[%s4041_s26 + $0x61] sm:$0xff] }
  0x21   : > { %546 = vrot.lane.b32.xlu0 %v3460_v15, %s3953_s29  ;;  %v3465_v40 = vld [vmem:[%s4041_s26 + $0x170] sm:$0xff]  ;;  %v4251_v41 = vld [vmem:[%s4041_s26 + $0x160] sm:$0xff] }
  0x22   : > { %v3467_v42 = vld [vmem:[%s4041_s26 + $0x190] sm:$0xff]  ;;  %v3466_v43 = vld [vmem:[%s4041_s26 + $0x180] sm:$0xff] }
  0x23   : > { %v4261_v44 = vld [vmem:[%s4041_s26 + $0x200] sm:$0xff]  ;;  %v4264_v45 = vld [vmem:[%s4041_s26 + $0x1f0] sm:$0xff] }
  0x24   : > { %552 = vrot.lane.b32.xlu1 %v3463_v20, %s3953_s29  ;;  %v4271_v46 = vld [vmem:[%s4041_s26 + $0x220] sm:$0xff]  ;;  %v4274_v47 = vld [vmem:[%s4041_s26 + $0x210] sm:$0xff] }
  0x25   : > { %550 = vrot.lane.b32.xlu0 %v3462_v21, %s3953_s29  ;;  %v4281_v48 = vld [vmem:[%s4041_s26 + $0x171] sm:$0xff]  ;;  %v4284_v49 = vld [vmem:[%s4041_s26 + $0x161] sm:$0xff] }
  0x26   : > { %v4291_v50 = vld [vmem:[%s4041_s26 + $0x191] sm:$0xff]  ;;  %v4294_v51 = vld [vmem:[%s4041_s26 + $0x181] sm:$0xff] }
  0x27   : > { %v3491_v52 = vld [vmem:[%s4041_s26 + $0x80] sm:$0xff]  ;;  %v4313_v53 = vld [vmem:[%s4041_s26 + $0x110] sm:$0xff] }
  0x28   : > { %598 = vrot.lane.b32.xlu1 %v4143_v22, %s3954_s30  ;;  %v4328_v58 = vld [vmem:[%s4041_s26 + $0x81] sm:$0xff]  ;;  %v3516_v15 = vld [vmem:[%s4041_s26 + $0x91] sm:$0xff] }
  0x29   : > { %596 = vrot.lane.b32.xlu0 %v4146_v23, %s3954_s30  ;;  %v4349_v14 = vld [vmem:[%s4041_s26 + $0xa1] sm:$0xff] }
  0x2c   : > { %602 = vrot.lane.b32.xlu1 %v4153_v24, %s3954_s30 }
  0x2d   : > { %600 = vrot.lane.b32.xlu0 %v4156_v25, %s3954_s30 }
  0x30   : > { %647 = vrot.lane.b32.xlu1 %v4163_v26, %s3955_s13 }
  0x31   : > { %645 = vrot.lane.b32.xlu0 %v4166_v27, %s3955_s13 }
  0x34   : > { %651 = vrot.lane.b32.xlu1 %v4173_v28, %s3955_s13 }
  0x35   : > { %649 = vrot.lane.b32.xlu0 %v4176_v29, %s3955_s13 }
  0x38   : > { %697 = vrot.lane.b32.xlu1 %v4074_v6, %s3956_s14 }
  0x39   : > { %695 = vrot.lane.b32.xlu0 %v4077_v7, %s3956_s14 }
  0x3c   : > { %701 = vrot.lane.b32.xlu1 %v4080_v8, %s3956_s14 }
  0x3d   : > { %699 = vrot.lane.b32.xlu0 %v4083_v9, %s3956_s14 }
  0x40   : > { %747 = vrot.lane.b32.xlu1 %v4044_v0, %s3957_s17 }
  0x41   : > { %745 = vrot.lane.b32.xlu0 %v4054_v3, %s3957_s17 }
  0x44   : > { %751 = vrot.lane.b32.xlu1 %v4086_v10, %s3957_s17 }
  0x45   : > { %749 = vrot.lane.b32.xlu0 %v4048_v2, %s3957_s17 }
  0x48   : > { %796 = vrot.lane.b32.xlu1 %v4109_v13, %s3958_s24 }
  0x49   : > { %794 = vrot.lane.b32.xlu0 %v4068_v4, %s3958_s24 }
  0x4c   : > { %457 = vrot.lane.b32.xlu1 %v4097_v11, %s3951_s27 }
  0x4d   : > { %455 = vrot.lane.b32.xlu0 %v4086_v10, %s3951_s27 }
  0x50   : > { %800 = vrot.lane.b32.xlu1 %v4216_v34, %s3958_s24 }
  0x51   : > { %798 = vrot.lane.b32.xlu0 %v4106_v12, %s3958_s24 }
  0x54   : > { %461 = vrot.lane.b32.xlu1 %v4223_v35, %s3951_s27 }
  0x55   : > { %459 = vrot.lane.b32.xlu0 %v4226_v36, %s3951_s27 }
  0x58   : > { %506 = vrot.lane.b32.xlu1 %v4233_v37, %s3952_s28 }
  0x59   : > { %504 = vrot.lane.b32.xlu0 %v4216_v34, %s3952_s28 }
  0x5c   : > { %510 = vrot.lane.b32.xlu1 %v4240_v38, %s3952_s28 }
  0x5d   : > { %508 = vrot.lane.b32.xlu0 %v4243_v39, %s3952_s28 }
  0x60   : > { %556 = vrot.lane.b32.xlu1 %v3465_v40, %s3953_s29 }
  0x61   : > { %554 = vrot.lane.b32.xlu0 %v4251_v41, %s3953_s29 }
  0x64   : > { %560 = vrot.lane.b32.xlu1 %v3467_v42, %s3953_s29 }
  0x65   : > { %558 = vrot.lane.b32.xlu0 %v3466_v43, %s3953_s29 }
  0x68   : > { %606 = vrot.lane.b32.xlu1 %v4261_v44, %s3954_s30 }
  0x69   : > { %604 = vrot.lane.b32.xlu0 %v4264_v45, %s3954_s30 }
  0x6c   : > { %610 = vrot.lane.b32.xlu1 %v4271_v46, %s3954_s30 }
  0x6d   : > { %608 = vrot.lane.b32.xlu0 %v4274_v47, %s3954_s30 }
  0x70   : > { %655 = vrot.lane.b32.xlu1 %v4281_v48, %s3955_s13 }
  0x71   : > { %653 = vrot.lane.b32.xlu0 %v4284_v49, %s3955_s13 }
  0x74   : > { %659 = vrot.lane.b32.xlu1 %v4291_v50, %s3955_s13 }
  0x75   : > { %657 = vrot.lane.b32.xlu0 %v4294_v51, %s3955_s13 }
  0x78   : > { %705 = vrot.lane.b32.xlu1 %v4120_v16, %s3956_s14 }
  0x79   : > { %703 = vrot.lane.b32.xlu0 %v4123_v17, %s3956_s14  ;;  %v4358_v17 = vld [vmem:[%s4041_s26 + $0xc1] sm:$0xff] }
  0x7c   : > { %709 = vrot.lane.b32.xlu1 %v3491_v52, %s3956_s14  ;;  %v3541_v52 = vld [vmem:[%s4041_s26 + $0x1c1] sm:$0xff] }
  0x7d   : > { %707 = vrot.lane.b32.xlu0 %v4128_v18, %s3956_s14  ;;  %v4361_v18 = vld [vmem:[%s4041_s26 + $0xb1] sm:$0xff] }
  0x80   : > { %755 = vrot.lane.b32.xlu1 %v4226_v36, %s3957_s17 }
  0x81   : > { %753 = vrot.lane.b32.xlu0 %v4097_v11, %s3957_s17 }
  0x82   : > { %v452_v54 = vpop.permute.xlu1 %451 }
  0x83   : > { %v448_v55 = vpop.permute.xlu0 %447  ;;  %474 = vst.msk [vmem:[#allocation2 + $0x10] sm:$0xff] %vm471_vm2, %v452_v54  ;;  %v3540_v54 = vld [vmem:[%s4041_s26 + $0x1b1] sm:$0xff] }
  0x84   : > { %472 = vst.msk [vmem:[#allocation2] sm:$0xff] %vm471_vm2, %v448_v55  ;;  %759 = vrot.lane.b32.xlu1 %v4313_v53, %s3957_s17 }
  0x85   : > { %757 = vrot.lane.b32.xlu0 %v4223_v35, %s3957_s17 }
  0x86   : > { %v454_v56 = vpop.permute.xlu1 %453 }
  0x87   : > { %v450_v57 = vpop.permute.xlu0 %449  ;;  %475 = vst.msk [vmem:[#allocation2 + $0x18] sm:$0xff] %vm471_vm2, %v454_v56 }
  0x88   : > { %473 = vst.msk [vmem:[#allocation2 + $0x8] sm:$0xff] %vm471_vm2, %v450_v57  ;;  %804 = vrot.lane.b32.xlu1 %v4243_v39, %s3958_s24  ;;  %v3543_v57 = vld [vmem:[%s4041_s26 + $0x1e1] sm:$0xff] }
  0x89   : > { %802 = vrot.lane.b32.xlu0 %v4233_v37, %s3958_s24 }
  0x8a   : > { %v499_v59 = vpop.permute.xlu1 %498 }
  0x8b   : > { %v497_v60 = vpop.permute.xlu0 %496  ;;  %522 = vst.msk [vmem:[#allocation2 + $0x8] sm:$0xff] %vm520_vm3, %v499_v59  ;;  %v3542_v59 = vld [vmem:[%s4041_s26 + $0x1d1] sm:$0xff] }
  0x8c   : > { %521 = vst.msk [vmem:[#allocation2] sm:$0xff] %vm520_vm3, %v497_v60  ;;  %808 = vrot.lane.b32.xlu1 %v4328_v58, %s3958_s24 }
  0x8d   : > { %806 = vrot.lane.b32.xlu0 %v4240_v38, %s3958_s24 }
  0x8e   : > { %v503_v61 = vpop.permute.xlu1 %502 }
  0x8f   : > { %v501_v62 = vpop.permute.xlu0 %500  ;;  %524 = vst.msk [vmem:[#allocation2 + $0x18] sm:$0xff] %vm520_vm3, %v503_v61 }
  0x90   : > { %523 = vst.msk [vmem:[#allocation2 + $0x10] sm:$0xff] %vm520_vm3, %v501_v62  ;;  %862 = vrot.lane.b32.xlu1 %v4068_v4, %s3951_s27 }
  0x91   : > { %860 = vrot.lane.b32.xlu0 %v4071_v5, %s3951_s27 }
  0x92   : > { %v549_v63 = vpop.permute.xlu1 %548 }
  0x93   : > { %v547_v1 = vpop.permute.xlu0 %546  ;;  %572 = vst.msk [vmem:[#allocation2 + $0x8] sm:$0xff] %vm570_vm4, %v549_v63 }
  0x94   : > { %571 = vst.msk [vmem:[#allocation2] sm:$0xff] %vm570_vm4, %v547_v1  ;;  %866 = vrot.lane.b32.xlu1 %v4106_v12, %s3951_s27  ;;  %v4408_v1 = vld [vmem:[%s4041_s26 + $0x140] sm:$0xff] }
  0x95   : > { %864 = vrot.lane.b32.xlu0 %v4109_v13, %s3951_s27  ;;  %1239 = vst.msk [vmem:[#allocation2 + $0x90] sm:$0xff] %vm421_vm0, %v4408_v1 }
  0x96   : > { %v553_v16 = vpop.permute.xlu1 %552 }
  0x97   : > { %v551_v5 = vpop.permute.xlu0 %550  ;;  %574 = vst.msk [vmem:[#allocation2 + $0x18] sm:$0xff] %vm570_vm4, %v553_v16 }
  0x98   : > { %573 = vst.msk [vmem:[#allocation2 + $0x10] sm:$0xff] %vm570_vm4, %v551_v5  ;;  %910 = vrot.lane.b32.xlu1 %v4349_v14, %s3952_s28 }
  0x99   : > { %908 = vrot.lane.b32.xlu0 %v3516_v15, %s3952_s28  ;;  %v4411_v15 = vld [vmem:[%s4041_s26 + $0x130] sm:$0xff] }
  0x9a   : > { %v599_v19 = vpop.permute.xlu1 %598  ;;  %1238 = vst.msk [vmem:[#allocation2 + $0x88] sm:$0xff] %vm421_vm0, %v4411_v15 }
  0x9b   : > { %v597_v20 = vpop.permute.xlu0 %596  ;;  %622 = vst.msk [vmem:[#allocation2 + $0x8] sm:$0xff] %vm620_vm5, %v599_v19  ;;  %v4424_v19 = vld [vmem:[%s4041_s26 + $0x150] sm:$0xff] }
  0x9c   : > { %621 = vst.msk [vmem:[#allocation2] sm:$0xff] %vm620_vm5, %v597_v20  ;;  %914 = vrot.lane.b32.xlu1 %v4358_v17, %s3952_s28  ;;  %v4435_v20 = vld [vmem:[%s4041_s26 + $0x1d0] sm:$0xff] }
  0x9d   : > { %912 = vrot.lane.b32.xlu0 %v4361_v18, %s3952_s28  ;;  %1240 = vst.msk [vmem:[#allocation2 + $0x98] sm:$0xff] %vm421_vm0, %v4424_v19  ;;  %1642 = vst.msk [vmem:[#allocation2 + $0xd0] sm:$0xff] %vm421_vm0, %v4435_v20 }
  0x9e   : > { %v603_v21 = vpop.permute.xlu1 %602 }
  0x9f   : > { %v601_v30 = vpop.permute.xlu0 %600  ;;  %624 = vst.msk [vmem:[#allocation2 + $0x18] sm:$0xff] %vm620_vm5, %v603_v21  ;;  %v4438_v21 = vld [vmem:[%s4041_s26 + $0x1c0] sm:$0xff] }
  0xa0   : > { %623 = vst.msk [vmem:[#allocation2 + $0x10] sm:$0xff] %vm620_vm5, %v601_v30  ;;  %958 = vrot.lane.b32.xlu1 %v4143_v22, %s3953_s29 }
  0xa1   : > { %956 = vrot.lane.b32.xlu0 %v4146_v23, %s3953_s29  ;;  %1641 = vst.msk [vmem:[#allocation2 + $0xc8] sm:$0xff] %vm421_vm0, %v4438_v21 }
  0xa2   : > { %v648_v31 = vpop.permute.xlu1 %647 }
  0xa3   : > { %v646_v32 = vpop.permute.xlu0 %645  ;;  %671 = vst.msk [vmem:[#allocation2 + $0x8] sm:$0xff] %vm669_vm6, %v648_v31 }
  0xa4   : > { %670 = vst.msk [vmem:[#allocation2] sm:$0xff] %vm669_vm6, %v646_v32  ;;  %962 = vrot.lane.b32.xlu1 %v4153_v24, %s3953_s29 }
  0xa5   : > { %960 = vrot.lane.b32.xlu0 %v4156_v25, %s3953_s29 }
  0xa6   : > { %v652_v33 = vpop.permute.xlu1 %651 }
  0xa7   : > { %v650_v40 = vpop.permute.xlu0 %649  ;;  %673 = vst.msk [vmem:[#allocation2 + $0x18] sm:$0xff] %vm669_vm6, %v652_v33  ;;  %v4451_v33 = vld [vmem:[%s4041_s26 + $0x1e0] sm:$0xff] }
  0xa8   : > { %672 = vst.msk [vmem:[#allocation2 + $0x10] sm:$0xff] %vm669_vm6, %v650_v40  ;;  %1006 = vrot.lane.b32.xlu1 %v4163_v26, %s3954_s30  ;;  %v4464_v40 = vld [vmem:[%s4041_s26 + $0xf0] sm:$0xff] }
  0xa9   : > { %1004 = vrot.lane.b32.xlu0 %v4166_v27, %s3954_s30  ;;  %1643 = vst.msk [vmem:[#allocation2 + $0xd8] sm:$0xff] %vm421_vm0, %v4451_v33  ;;  %842 = vst.msk [vmem:[#allocation2 + $0x70] sm:$0xff] %vm421_vm0, %v4464_v40 }
  0xaa   : > { %v698_v42 = vpop.permute.xlu1 %697 }
  0xab   : > { %v696_v43 = vpop.permute.xlu0 %695  ;;  %721 = vst.msk [vmem:[#allocation2 + $0x8] sm:$0xff] %vm719_vm7, %v698_v42 }
  0xac   : > { %720 = vst.msk [vmem:[#allocation2] sm:$0xff] %vm719_vm7, %v696_v43  ;;  %1010 = vrot.lane.b32.xlu1 %v4173_v28, %s3954_s30 }
  0xad   : > { %1008 = vrot.lane.b32.xlu0 %v4176_v29, %s3954_s30 }
  0xae   : > { %v702_v55 = vpop.permute.xlu1 %701 }
  0xaf   : > { %v700_v56 = vpop.permute.xlu0 %699  ;;  %723 = vst.msk [vmem:[#allocation2 + $0x18] sm:$0xff] %vm719_vm7, %v702_v55 }
  0xb0   : > { %722 = vst.msk [vmem:[#allocation2 + $0x10] sm:$0xff] %vm719_vm7, %v700_v56  ;;  %1054 = vrot.lane.b32.xlu1 %v3541_v52, %s3955_s13 }
  0xb1   : > { %1052 = vrot.lane.b32.xlu0 %v3540_v54, %s3955_s13 }
  0xb2   : > { %v748_v60 = vpop.permute.xlu1 %747 }
  0xb3   : > { %v746_v61 = vpop.permute.xlu0 %745  ;;  %771 = vst.msk [vmem:[#allocation2 + $0x8] sm:$0xff] %vm769_vm8, %v748_v60 }
  0xb4   : > { %770 = vst.msk [vmem:[#allocation2] sm:$0xff] %vm769_vm8, %v746_v61  ;;  %1058 = vrot.lane.b32.xlu1 %v3543_v57, %s3955_s13  ;;  %v4496_v61 = vld [vmem:[%s4041_s26 + $0xe1] sm:$0xff] }
  0xb5   : > { %1056 = vrot.lane.b32.xlu0 %v3542_v59, %s3955_s13 }
  0xb6   : > { %v752_v62 = vpop.permute.xlu1 %751 }
  0xb7   : > { %v750_v63 = vpop.permute.xlu0 %749  ;;  %773 = vst.msk [vmem:[#allocation2 + $0x18] sm:$0xff] %vm769_vm8, %v752_v62 }
  0xb8   : > { %772 = vst.msk [vmem:[#allocation2 + $0x10] sm:$0xff] %vm769_vm8, %v750_v63  ;;  %1102 = vrot.lane.b32.xlu1 %v4044_v0, %s3956_s14 }
  0xb9   : > { %1100 = vrot.lane.b32.xlu0 %v4054_v3, %s3956_s14 }
  0xba   : > { %v797_v16 = vpop.permute.xlu1 %796 }
  0xbb   : > { %v795_v5 = vpop.permute.xlu0 %794  ;;  %820 = vst.msk [vmem:[#allocation2 + $0x8] sm:$0xff] %vm818_vm9, %v797_v16  ;;  %v4507_v16 = vld [vmem:[%s4041_s26 + $0xf1] sm:$0xff] }
  0xbc   : > { %819 = vst.msk [vmem:[#allocation2] sm:$0xff] %vm818_vm9, %v795_v5  ;;  %1106 = vrot.lane.b32.xlu1 %v4086_v10, %s3956_s14 }
  0xbd   : > { %1104 = vrot.lane.b32.xlu0 %v4048_v2, %s3956_s14 }
  0xbe   : > { %v458_v0 = vpop.permute.xlu1 %457 }
  0xbf   : > { %v456_v3 = vpop.permute.xlu0 %455  ;;  %477 = vst.msk [vmem:[#allocation2 + $0x28] sm:$0xff] %vm471_vm2, %v458_v0 }
  0xc0   : > { %476 = vst.msk [vmem:[#allocation2 + $0x20] sm:$0xff] %vm471_vm2, %v456_v3  ;;  %1150 = vrot.lane.b32.xlu1 %v4109_v13, %s3957_s17 }
  0xc1   : > { %1148 = vrot.lane.b32.xlu0 %v4068_v4, %s3957_s17  ;;  %v4461_v4 = vld [vmem:[%s4041_s26 + $0x100] sm:$0xff] }
  0xc2   : > { %v801_v2 = vpop.permute.xlu1 %800  ;;  %v2033_v32 = vld [vmem:[#allocation2 + $0x8] sm:$0xff]  ;;  %843 = vst.msk [vmem:[#allocation2 + $0x78] sm:$0xff] %vm421_vm0, %v4461_v4 }
  0xc3   : > { %v799_v30 = vpop.permute.xlu0 %798  ;;  %v2032_v31 = vld [vmem:[#allocation2] sm:$0xff]  ;;  %822 = vst.msk [vmem:[#allocation2 + $0x18] sm:$0xff] %vm818_vm9, %v801_v2 }
  0xc4   : > { %821 = vst.msk [vmem:[#allocation2 + $0x10] sm:$0xff] %vm818_vm9, %v799_v30  ;;  %v2064_v13 = vpack.c.bf16 %v2033_v32, %v2032_v31  ;;  %1154 = vrot.lane.b32.xlu1 %v4216_v34, %s3957_s17 }
  0xc5   : > { %1152 = vrot.lane.b32.xlu0 %v4106_v12, %s3957_s17 }
  0xc6   : > { %3861 = vmatprep.mubr.msk.bf16.mxu0 %vm2107_vm10, %v2064_v13  ;;  %v462_v42 = vpop.permute.xlu1 %461 }
  0xc7   : > { %v460_v43 = vpop.permute.xlu0 %459  ;;  %479 = vst.msk [vmem:[#allocation2 + $0x38] sm:$0xff] %vm471_vm2, %v462_v42 }
  0xc8   : > { %478 = vst.msk [vmem:[#allocation2 + $0x30] sm:$0xff] %vm471_vm2, %v460_v43  ;;  %1198 = vrot.lane.b32.xlu1 %v4361_v18, %s3958_s24  ;;  %v3567_v18 = vld [vmem:[%s4041_s26 + $0xd1] sm:$0xff] }
  0xc9   : > { %1196 = vrot.lane.b32.xlu0 %v4349_v14, %s3958_s24 }
  0xca   : > { %v507_v12 = vpop.permute.xlu1 %506  ;;  %v2035_v55 = vld [vmem:[#allocation2 + $0x18] sm:$0xff] }
  0xcb   : > { %v505_v52 = vpop.permute.xlu0 %504  ;;  %v2034_v54 = vld [vmem:[#allocation2 + $0x10] sm:$0xff]  ;;  %526 = vst.msk [vmem:[#allocation2 + $0x28] sm:$0xff] %vm520_vm3, %v507_v12 }
  0xcc   : > { %525 = vst.msk [vmem:[#allocation2 + $0x20] sm:$0xff] %vm520_vm3, %v505_v52  ;;  %v2065_v56 = vpack.c.bf16 %v2035_v55, %v2034_v54  ;;  %870 = vrot.lane.b32.xlu1 %v4233_v37, %s3951_s27  ;;  %v3547_v52 = vld [vmem:[%s4041_s26 + $0x221] sm:$0xff]  ;;  %v3546_v54 = vld [vmem:[%s4041_s26 + $0x211] sm:$0xff] }
  0xcd   : > { %868 = vrot.lane.b32.xlu0 %v4216_v34, %s3951_s27 }
  0xce   : > { %3862 = vmatmul.mubr.msk.bf16.vlgmr.msra.gmra.mxu0 %vm2107_vm10, %v2065_v56  ;;  %v511_v14 = vpop.permute.xlu1 %510 }
  0xcf   : > { %v509_v57 = vpop.permute.xlu0 %508  ;;  %528 = vst.msk [vmem:[#allocation2 + $0x38] sm:$0xff] %vm520_vm3, %v511_v14  ;;  %v4557_v14 = vld [vmem:[%s4041_s26 + $0x170] sm:$0xff] }
  0xd0   : > { %527 = vst.msk [vmem:[#allocation2 + $0x30] sm:$0xff] %vm520_vm3, %v509_v57  ;;  %1202 = vrot.lane.b32.xlu1 %v3567_v18, %s3958_s24 }
  0xd1   : > { %1200 = vrot.lane.b32.xlu0 %v4358_v17, %s3958_s24  ;;  %v4504_v17 = vld [vmem:[%s4041_s26 + $0x101] sm:$0xff]  ;;  %1242 = vst.msk [vmem:[#allocation2 + $0xa8] sm:$0xff] %vm421_vm0, %v4557_v14 }
  0xd2   : > { %v557_v59 = vpop.permute.xlu1 %556 }
  0xd3   : > { %v555_v60 = vpop.permute.xlu0 %554  ;;  %576 = vst.msk [vmem:[#allocation2 + $0x28] sm:$0xff] %vm570_vm4, %v557_v59 }
  0xd4   : > { %575 = vst.msk [vmem:[#allocation2 + $0x20] sm:$0xff] %vm570_vm4, %v555_v60  ;;  %874 = vrot.lane.b32.xlu1 %v4240_v38, %s3951_s27  ;;  %v4570_v60 = vld [vmem:[%s4041_s26 + $0x190] sm:$0xff] }
  0xd5   : > { %872 = vrot.lane.b32.xlu0 %v4243_v39, %s3951_s27  ;;  %1244 = vst.msk [vmem:[#allocation2 + $0xb8] sm:$0xff] %vm421_vm0, %v4570_v60 }
  0xd6   : > { %v561_v62 = vpop.permute.xlu1 %560 }
  0xd7   : > { %v559_v63 = vpop.permute.xlu0 %558  ;;  %578 = vst.msk [vmem:[#allocation2 + $0x38] sm:$0xff] %vm570_vm4, %v561_v62  ;;  %v3572_v62 = vld [vmem:[%s4041_s26 + $0x120] sm:$0xff] }
  0xd8   : > { %577 = vst.msk [vmem:[#allocation2 + $0x30] sm:$0xff] %vm570_vm4, %v559_v63  ;;  %918 = vrot.lane.b32.xlu1 %v4496_v61, %s3952_s28 }
  0xd9   : > { %916 = vrot.lane.b32.xlu0 %v3567_v18, %s3952_s28  ;;  %v4554_v18 = vld [vmem:[%s4041_s26 + $0x180] sm:$0xff]  ;;  %1237 = vst.msk [vmem:[#allocation2 + $0x80] sm:$0xff] %vm421_vm0, %v3572_v62 }
  0xda   : > { %v607_v5 = vpop.permute.xlu1 %606  ;;  %1243 = vst.msk [vmem:[#allocation2 + $0xb0] sm:$0xff] %vm421_vm0, %v4554_v18  ;;  %v4717_v62 = vld [vmem:[%s4041_s26 + $0x141] sm:$0xff] }
  0xdb   : > { %v605_v0 = vpop.permute.xlu0 %604  ;;  %626 = vst.msk [vmem:[#allocation2 + $0x28] sm:$0xff] %vm620_vm5, %v607_v5 }
  0xdc   : > { %625 = vst.msk [vmem:[#allocation2 + $0x20] sm:$0xff] %vm620_vm5, %v605_v0  ;;  %922 = vrot.lane.b32.xlu1 %v4504_v17, %s3952_s28 }
  0xdd   : > { %920 = vrot.lane.b32.xlu0 %v4507_v16, %s3952_s28 }
  0xde   : > { %v611_v3 = vpop.permute.xlu1 %610 }
  0xdf   : > { %v609_v2 = vpop.permute.xlu0 %608  ;;  %628 = vst.msk [vmem:[#allocation2 + $0x38] sm:$0xff] %vm620_vm5, %v611_v3 }
  0xe0   : > { %627 = vst.msk [vmem:[#allocation2 + $0x30] sm:$0xff] %vm620_vm5, %v609_v2  ;;  %966 = vrot.lane.b32.xlu1 %v4261_v44, %s3953_s29 }
  0xe1   : > { %964 = vrot.lane.b32.xlu0 %v4264_v45, %s3953_s29 }
  0xe2   : > { %v656_v30 = vpop.permute.xlu1 %655 }
  0xe3   : > { %v654_v31 = vpop.permute.xlu0 %653  ;;  %675 = vst.msk [vmem:[#allocation2 + $0x28] sm:$0xff] %vm669_vm6, %v656_v30 }
  0xe4   : > { %674 = vst.msk [vmem:[#allocation2 + $0x20] sm:$0xff] %vm669_vm6, %v654_v31  ;;  %970 = vrot.lane.b32.xlu1 %v4271_v46, %s3953_s29  ;;  %v3545_v46 = vld [vmem:[%s4041_s26 + $0x201] sm:$0xff] }
  0xe5   : > { %968 = vrot.lane.b32.xlu0 %v4274_v47, %s3953_s29  ;;  %v3544_v47 = vld [vmem:[%s4041_s26 + $0x1f1] sm:$0xff] }
  0xe6   : > { %v660_v32 = vpop.permute.xlu1 %659 }
  0xe7   : > { %v658_v13 = vpop.permute.xlu0 %657  ;;  %677 = vst.msk [vmem:[#allocation2 + $0x38] sm:$0xff] %vm669_vm6, %v660_v32 }
  0xe8   : > { %676 = vst.msk [vmem:[#allocation2 + $0x30] sm:$0xff] %vm669_vm6, %v658_v13  ;;  %1014 = vrot.lane.b32.xlu1 %v4281_v48, %s3954_s30 }
  0xe9   : > { %1012 = vrot.lane.b32.xlu0 %v4284_v49, %s3954_s30 }
  0xea   : > { %v706_v42 = vpop.permute.xlu1 %705 }
  0xeb   : > { %v704_v43 = vpop.permute.xlu0 %703  ;;  %725 = vst.msk [vmem:[#allocation2 + $0x28] sm:$0xff] %vm719_vm7, %v706_v42 }
  0xec   : > { %724 = vst.msk [vmem:[#allocation2 + $0x20] sm:$0xff] %vm719_vm7, %v704_v43  ;;  %1018 = vrot.lane.b32.xlu1 %v4291_v50, %s3954_s30 }
  0xed   : > { %1016 = vrot.lane.b32.xlu0 %v4294_v51, %s3954_s30 }
  0xee   : > { %v710_v48 = vpop.permute.xlu1 %709 }
  0xef   : > { %v708_v12 = vpop.permute.xlu0 %707  ;;  %727 = vst.msk [vmem:[#allocation2 + $0x38] sm:$0xff] %vm719_vm7, %v710_v48 }
  0xf0   : > { %726 = vst.msk [vmem:[#allocation2 + $0x30] sm:$0xff] %vm719_vm7, %v708_v12  ;;  %1062 = vrot.lane.b32.xlu1 %v3545_v46, %s3955_s13  ;;  %v4664_v46 = vld [vmem:[%s4041_s26 + $0x21] sm:$0xff] }
  0xf1   : > { %1060 = vrot.lane.b32.xlu0 %v3544_v47, %s3955_s13  ;;  %v4667_v47 = vld [vmem:[%s4041_s26 + $0x11] sm:$0xff] }
  0xf2   : > { %v756_v50 = vpop.permute.xlu1 %755 }
  0xf3   : > { %v754_v55 = vpop.permute.xlu0 %753  ;;  %775 = vst.msk [vmem:[#allocation2 + $0x28] sm:$0xff] %vm769_vm8, %v756_v50 }
  0xf4   : > { %774 = vst.msk [vmem:[#allocation2 + $0x20] sm:$0xff] %vm769_vm8, %v754_v55  ;;  %1066 = vrot.lane.b32.xlu1 %v3547_v52, %s3955_s13 }
  0xf5   : > { %1064 = vrot.lane.b32.xlu0 %v3546_v54, %s3955_s13 }
  0xf6   : > { %v760_v51 = vpop.permute.xlu1 %759 }
  0xf7   : > { %v758_v56 = vpop.permute.xlu0 %757  ;;  %777 = vst.msk [vmem:[#allocation2 + $0x38] sm:$0xff] %vm769_vm8, %v760_v51 }
  0xf8   : > { %776 = vst.msk [vmem:[#allocation2 + $0x30] sm:$0xff] %vm769_vm8, %v758_v56  ;;  %1110 = vrot.lane.b32.xlu1 %v4226_v36, %s3956_s14 }
  0xf9   : > { %1108 = vrot.lane.b32.xlu0 %v4097_v11, %s3956_s14 }
  0xfa   : > { %v805_v57 = vpop.permute.xlu1 %804 }
  0xfb   : > { %v803_v59 = vpop.permute.xlu0 %802  ;;  %824 = vst.msk [vmem:[#allocation2 + $0x28] sm:$0xff] %vm818_vm9, %v805_v57 }
  0xfc   : > { %823 = vst.msk [vmem:[#allocation2 + $0x20] sm:$0xff] %vm818_vm9, %v803_v59  ;;  %1114 = vrot.lane.b32.xlu1 %v4313_v53, %s3956_s14 }
  0xfd   : > { %1112 = vrot.lane.b32.xlu0 %v4223_v35, %s3956_s14 }
  0xfe   : > { %v809_v11 = vpop.permute.xlu1 %808 }
  0xff   : > { %v807_v36 = vpop.permute.xlu0 %806  ;;  %826 = vst.msk [vmem:[#allocation2 + $0x38] sm:$0xff] %vm818_vm9, %v809_v11 }
 0x100   : > { %825 = vst.msk [vmem:[#allocation2 + $0x30] sm:$0xff] %vm818_vm9, %v807_v36  ;;  %1158 = vrot.lane.b32.xlu1 %v4243_v39, %s3957_s17 }
 0x101   : > { %1156 = vrot.lane.b32.xlu0 %v4233_v37, %s3957_s17 }
 0x102   : > { %v863_v53 = vpop.permute.xlu1 %862  ;;  %v2037_v35 = vld [vmem:[#allocation2 + $0x28] sm:$0xff] }
 0x103   : > { %v861_v63 = vpop.permute.xlu0 %860  ;;  %v2036_v5 = vld [vmem:[#allocation2 + $0x20] sm:$0xff]  ;;  %885 = vst.msk [vmem:[#allocation2 + $0x48] sm:$0xff] %vm471_vm2, %v863_v53  ;;  %v4720_v53 = vld [vmem:[%s4041_s26 + $0x131] sm:$0xff] }
 0x104   : > { %884 = vst.msk [vmem:[#allocation2 + $0x40] sm:$0xff] %vm471_vm2, %v861_v63  ;;  %v2066_v0 = vpack.c.bf16 %v2037_v35, %v2036_v5  ;;  %1162 = vrot.lane.b32.xlu1 %v4328_v58, %s3957_s17 }
 0x105   : > { %1160 = vrot.lane.b32.xlu0 %v4240_v38, %s3957_s17  ;;  %v3571_v38 = vld [vmem:[%s4041_s26 + $0x111] sm:$0xff] }
 0x106   : > { %3865 = vmatprep.mubr.msk.bf16.mxu0 %vm2107_vm10, %v2066_v0  ;;  %v867_v37 = vpop.permute.xlu1 %866  ;;  %v2039_v2 = vld [vmem:[#allocation2 + $0x38] sm:$0xff] }
 0x107   : > { %v865_v39 = vpop.permute.xlu0 %864  ;;  %v2038_v3 = vld [vmem:[#allocation2 + $0x30] sm:$0xff]  ;;  %887 = vst.msk [vmem:[#allocation2 + $0x58] sm:$0xff] %vm471_vm2, %v867_v37 }
 0x108   : > { %886 = vst.msk [vmem:[#allocation2 + $0x50] sm:$0xff] %vm471_vm2, %v865_v39  ;;  %v2067_v30 = vpack.c.bf16 %v2039_v2, %v2038_v3  ;;  %1206 = vrot.lane.b32.xlu1 %v4507_v16, %s3958_s24  ;;  %v4736_v2 = vld [vmem:[%s4041_s26 + $0x151] sm:$0xff] }
 0x109   : > { %1204 = vrot.lane.b32.xlu0 %v4496_v61, %s3958_s24 }
 0x10a   : > { %3866 = vmatmul.mubr.msk.bf16.gmra.mxu0 %vm2107_vm10, %v2067_v30  ;;  %v911_v58 = vpop.permute.xlu1 %910 }
 0x10b   : > { %v909_v31 = vpop.permute.xlu0 %908  ;;  %933 = vst.msk [vmem:[#allocation2 + $0x48] sm:$0xff] %vm520_vm3, %v911_v58 }
 0x10c   : > { %932 = vst.msk [vmem:[#allocation2 + $0x40] sm:$0xff] %vm520_vm3, %v909_v31  ;;  %1210 = vrot.lane.b32.xlu1 %v3571_v38, %s3958_s24 }
 0x10d   : > { %1208 = vrot.lane.b32.xlu0 %v4504_v17, %s3958_s24 }
 0x10e   : > { %v915_v32 = vpop.permute.xlu1 %914 }
 0x10f   : > { %v913_v13 = vpop.permute.xlu0 %912  ;;  %935 = vst.msk [vmem:[#allocation2 + $0x58] sm:$0xff] %vm520_vm3, %v915_v32  ;;  %v4760_v32 = vld [vmem:[%s4041_s26 + $0x161] sm:$0xff] }
 0x110   : > { %934 = vst.msk [vmem:[#allocation2 + $0x50] sm:$0xff] %vm520_vm3, %v913_v13  ;;  %1263 = vrot.lane.b32.xlu1 %v4143_v22, %s3951_s27 }
 0x111   : > { %1261 = vrot.lane.b32.xlu0 %v4146_v23, %s3951_s27 }
 0x112   : > { %v959_v61 = vpop.permute.xlu1 %958 }
 0x113   : > { %v957_v16 = vpop.permute.xlu0 %956  ;;  %981 = vst.msk [vmem:[#allocation2 + $0x48] sm:$0xff] %vm570_vm4, %v959_v61 }
 0x114   : > { %980 = vst.msk [vmem:[#allocation2 + $0x40] sm:$0xff] %vm570_vm4, %v957_v16  ;;  %1267 = vrot.lane.b32.xlu1 %v4153_v24, %s3951_s27  ;;  %v4769_v16 = vld [vmem:[%s4041_s26 + $0x191] sm:$0xff] }
 0x115   : > { %1265 = vrot.lane.b32.xlu0 %v4156_v25, %s3951_s27 }
 0x116   : > { %v963_v17 = vpop.permute.xlu1 %962 }
 0x117   : > { %v961_v42 = vpop.permute.xlu0 %960  ;;  %983 = vst.msk [vmem:[#allocation2 + $0x58] sm:$0xff] %vm570_vm4, %v963_v17  ;;  %v4772_v17 = vld [vmem:[%s4041_s26 + $0x181] sm:$0xff] }
 0x118   : > { %982 = vst.msk [vmem:[#allocation2 + $0x50] sm:$0xff] %vm570_vm4, %v961_v42  ;;  %1311 = vrot.lane.b32.xlu1 %v4163_v26, %s3952_s28 }
 0x119   : > { %1309 = vrot.lane.b32.xlu0 %v4166_v27, %s3952_s28 }
 0x11a   : > { %v1007_v22 = vpop.permute.xlu1 %1006 }
 0x11b   : > { %v1005_v23 = vpop.permute.xlu0 %1004  ;;  %1029 = vst.msk [vmem:[#allocation2 + $0x48] sm:$0xff] %vm620_vm5, %v1007_v22 }
 0x11c   : > { %1028 = vst.msk [vmem:[#allocation2 + $0x40] sm:$0xff] %vm620_vm5, %v1005_v23  ;;  %1315 = vrot.lane.b32.xlu1 %v4173_v28, %s3952_s28  ;;  %v4643_v28 = vld [vmem:[%s4041_s26 + $0xb0] sm:$0xff]  ;;  %v3601_v23 = vld [vmem:[%s4041_s26 + $0x60] sm:$0xff] }
 0x11d   : > { %1313 = vrot.lane.b32.xlu0 %v4176_v29, %s3952_s28 }
 0x11e   : > { %v1011_v24 = vpop.permute.xlu1 %1010 }
 0x11f   : > { %v1009_v25 = vpop.permute.xlu0 %1008  ;;  %1031 = vst.msk [vmem:[#allocation2 + $0x58] sm:$0xff] %vm620_vm5, %v1011_v24  ;;  %v3600_v24 = vld [vmem:[%s4041_s26 + $0x50] sm:$0xff] }
 0x120   : > { %1030 = vst.msk [vmem:[#allocation2 + $0x50] sm:$0xff] %vm620_vm5, %v1009_v25  ;;  %1359 = vrot.lane.b32.xlu1 %v4074_v6, %s3953_s29  ;;  %v4646_v6 = vld [vmem:[%s4041_s26 + $0xa0] sm:$0xff] }
 0x121   : > { %1357 = vrot.lane.b32.xlu0 %v4077_v7, %s3953_s29 }
 0x122   : > { %v1055_v26 = vpop.permute.xlu1 %1054 }
 0x123   : > { %v1053_v27 = vpop.permute.xlu0 %1052  ;;  %1077 = vst.msk [vmem:[#allocation2 + $0x48] sm:$0xff] %vm669_vm6, %v1055_v26 }
 0x124   : > { %1076 = vst.msk [vmem:[#allocation2 + $0x40] sm:$0xff] %vm669_vm6, %v1053_v27  ;;  %1363 = vrot.lane.b32.xlu1 %v4080_v8, %s3953_s29  ;;  %v4655_v8 = vld [vmem:[%s4041_s26 + $0xc0] sm:$0xff] }
 0x125   : > { %1361 = vrot.lane.b32.xlu0 %v4083_v9, %s3953_s29  ;;  %v3603_v27 = vld [vmem:[%s4041_s26 + $0x80] sm:$0xff] }
 0x126   : > { %v1059_v29 = vpop.permute.xlu1 %1058 }
 0x127   : > { %v1057_v7 = vpop.permute.xlu0 %1056  ;;  %1079 = vst.msk [vmem:[#allocation2 + $0x58] sm:$0xff] %vm669_vm6, %v1059_v29  ;;  %v3602_v29 = vld [vmem:[%s4041_s26 + $0x70] sm:$0xff] }
 0x128   : > { %1078 = vst.msk [vmem:[#allocation2 + $0x50] sm:$0xff] %vm669_vm6, %v1057_v7  ;;  %1407 = vrot.lane.b32.xlu1 %v4643_v28, %s3954_s30 }
 0x129   : > { %1405 = vrot.lane.b32.xlu0 %v4646_v6, %s3954_s30 }
 0x12a   : > { %v1103_v9 = vpop.permute.xlu1 %1102 }
 0x12b   : > { %v1101_v43 = vpop.permute.xlu0 %1100  ;;  %1125 = vst.msk [vmem:[#allocation2 + $0x48] sm:$0xff] %vm719_vm7, %v1103_v9 }
 0x12c   : > { %1124 = vst.msk [vmem:[#allocation2 + $0x40] sm:$0xff] %vm719_vm7, %v1101_v43  ;;  %1411 = vrot.lane.b32.xlu1 %v4086_v10, %s3954_s30  ;;  %v4676_v10 = vld [vmem:[%s4041_s26 + $0x31] sm:$0xff]  ;;  %v4793_v43 = vld [vmem:[%s4041_s26 + $0xe0] sm:$0xff] }
 0x12d   : > { %1409 = vrot.lane.b32.xlu0 %v4655_v8, %s3954_s30 }
 0x12e   : > { %v1107_v48 = vpop.permute.xlu1 %1106 }
 0x12f   : > { %v1105_v12 = vpop.permute.xlu0 %1104  ;;  %1127 = vst.msk [vmem:[#allocation2 + $0x58] sm:$0xff] %vm719_vm7, %v1107_v48 }
 0x130   : > { %1126 = vst.msk [vmem:[#allocation2 + $0x50] sm:$0xff] %vm719_vm7, %v1105_v12  ;;  %1455 = vrot.lane.b32.xlu1 %v4664_v46, %s3955_s13 }
 0x131   : > { %1453 = vrot.lane.b32.xlu0 %v4667_v47, %s3955_s13 }
 0x132   : > { %v1151_v52 = vpop.permute.xlu1 %1150 }
 0x133   : > { %v1149_v54 = vpop.permute.xlu0 %1148  ;;  %1173 = vst.msk [vmem:[#allocation2 + $0x48] sm:$0xff] %vm769_vm8, %v1151_v52  ;;  %v4802_v52 = vld [vmem:[%s4041_s26 + $0x110] sm:$0xff] }
 0x134   : > { %1172 = vst.msk [vmem:[#allocation2 + $0x40] sm:$0xff] %vm769_vm8, %v1149_v54  ;;  %1459 = vrot.lane.b32.xlu1 %v4216_v34, %s3955_s13  ;;  %v4693_v34 = vld [vmem:[%s4041_s26 + $0x1f0] sm:$0xff] }
 0x135   : > { %1457 = vrot.lane.b32.xlu0 %v4676_v10, %s3955_s13  ;;  %1644 = vst.msk [vmem:[#allocation2 + $0xe0] sm:$0xff] %vm421_vm0, %v4693_v34 }
 0x136   : > { %v1155_v50 = vpop.permute.xlu1 %1154 }
 0x137   : > { %v1153_v55 = vpop.permute.xlu0 %1152  ;;  %1175 = vst.msk [vmem:[#allocation2 + $0x58] sm:$0xff] %vm769_vm8, %v1155_v50 }
 0x138   : > { %1174 = vst.msk [vmem:[#allocation2 + $0x50] sm:$0xff] %vm769_vm8, %v1153_v55  ;;  %1504 = vrot.lane.b32.xlu1 %v4408_v1, %s3956_s14  ;;  %v3576_v1 = vld [vmem:[%s4041_s26 + $0x160] sm:$0xff] }
 0x139   : > { %1502 = vrot.lane.b32.xlu0 %v4411_v15, %s3956_s14  ;;  %1241 = vst.msk [vmem:[#allocation2 + $0xa0] sm:$0xff] %vm421_vm0, %v3576_v1  ;;  %v4811_v55 = vld [vmem:[%s4041_s26 + $0x61] sm:$0xff] }
 0x13a   : > { %v1199_v51 = vpop.permute.xlu1 %1198 }
 0x13b   : > { %v1197_v56 = vpop.permute.xlu0 %1196  ;;  %1221 = vst.msk [vmem:[#allocation2 + $0x48] sm:$0xff] %vm818_vm9, %v1199_v51  ;;  %v4814_v51 = vld [vmem:[%s4041_s26 + $0x51] sm:$0xff] }
 0x13c   : > { %1220 = vst.msk [vmem:[#allocation2 + $0x40] sm:$0xff] %vm818_vm9, %v1197_v56  ;;  %1508 = vrot.lane.b32.xlu1 %v4251_v41, %s3956_s14 }
 0x13d   : > { %1506 = vrot.lane.b32.xlu0 %v4424_v19, %s3956_s14 }
 0x13e   : > { %v871_v57 = vpop.permute.xlu1 %870 }
 0x13f   : > { %v869_v15 = vpop.permute.xlu0 %868  ;;  %889 = vst.msk [vmem:[#allocation2 + $0x68] sm:$0xff] %vm471_vm2, %v871_v57  ;;  %v4823_v57 = vld [vmem:[%s4041_s26 + $0x81] sm:$0xff] }
 0x140   : > { %888 = vst.msk [vmem:[#allocation2 + $0x60] sm:$0xff] %vm471_vm2, %v869_v15  ;;  %1553 = vrot.lane.b32.xlu1 %v4435_v20, %s3957_s17  ;;  %v4826_v15 = vld [vmem:[%s4041_s26 + $0x71] sm:$0xff] }
 0x141   : > { %1551 = vrot.lane.b32.xlu0 %v4438_v21, %s3957_s17 }
 0x142   : > { %v1203_v41 = vpop.permute.xlu1 %1202  ;;  %v2041_v11 = vld [vmem:[#allocation2 + $0x48] sm:$0xff] }
 0x143   : > { %v1201_v19 = vpop.permute.xlu0 %1200  ;;  %v2040_v59 = vld [vmem:[#allocation2 + $0x40] sm:$0xff]  ;;  %1223 = vst.msk [vmem:[#allocation2 + $0x58] sm:$0xff] %vm818_vm9, %v1203_v41 }
 0x144   : > { %1222 = vst.msk [vmem:[#allocation2 + $0x50] sm:$0xff] %vm818_vm9, %v1201_v19  ;;  %v2068_v36 = vpack.c.bf16 %v2041_v11, %v2040_v59  ;;  %1557 = vrot.lane.b32.xlu1 %v4264_v45, %s3957_s17 }
 0x145   : > { %1555 = vrot.lane.b32.xlu0 %v4451_v33, %s3957_s17 }
 0x146   : > { %3869 = vmatprep.mubr.msk.bf16.mxu0 %vm2107_vm10, %v2068_v36  ;;  %v875_v63 = vpop.permute.xlu1 %874  ;;  %v3627_v36 = vld [vmem:[%s4041_s26 + $0x1a0] sm:$0xff] }
 0x147   : > { %v873_v5 = vpop.permute.xlu0 %872  ;;  %891 = vst.msk [vmem:[#allocation2 + $0x78] sm:$0xff] %vm471_vm2, %v875_v63 }
 0x148   : > { %890 = vst.msk [vmem:[#allocation2 + $0x70] sm:$0xff] %vm471_vm2, %v873_v5  ;;  %1601 = vrot.lane.b32.xlu1 %v4717_v62, %s3958_s24 }
 0x149   : > { %1599 = vrot.lane.b32.xlu0 %v4720_v53, %s3958_s24 }
 0x14a   : > { %v919_v35 = vpop.permute.xlu1 %918  ;;  %v2043_v39 = vld [vmem:[#allocation2 + $0x58] sm:$0xff] }
 0x14b   : > { %v917_v0 = vpop.permute.xlu0 %916  ;;  %v2042_v37 = vld [vmem:[#allocation2 + $0x50] sm:$0xff]  ;;  %937 = vst.msk [vmem:[#allocation2 + $0x68] sm:$0xff] %vm520_vm3, %v919_v35  ;;  %v4847_v35 = vld [vmem:[%s4041_s26 + $0x200] sm:$0xff] }
 0x14c   : > { %936 = vst.msk [vmem:[#allocation2 + $0x60] sm:$0xff] %vm520_vm3, %v917_v0  ;;  %v2069_v3 = vpack.c.bf16 %v2043_v39, %v2042_v37  ;;  %1271 = vrot.lane.b32.xlu1 %v4261_v44, %s3951_s27  ;;  %v4745_v44 = vld [vmem:[%s4041_s26 + $0x220] sm:$0xff]  ;;  %v3644_v37 = vld [vmem:[%s4041_s26 + $0x1b0] sm:$0xff] }
 0x14d   : > { %1269 = vrot.lane.b32.xlu0 %v4264_v45, %s3951_s27  ;;  %v4748_v45 = vld [vmem:[%s4041_s26 + $0x210] sm:$0xff]  ;;  %1640 = vst.msk [vmem:[#allocation2 + $0xc0] sm:$0xff] %vm421_vm0, %v3644_v37 }
 0x14e   : > { %3870 = vmatmul.mubr.msk.bf16.gmra.mxu0 %vm2107_vm10, %v2069_v3  ;;  %v923_v30 = vpop.permute.xlu1 %922 }
 0x14f   : > { %v921_v38 = vpop.permute.xlu0 %920  ;;  %939 = vst.msk [vmem:[#allocation2 + $0x78] sm:$0xff] %vm520_vm3, %v923_v30 }
 0x150   : > { %938 = vst.msk [vmem:[#allocation2 + $0x70] sm:$0xff] %vm520_vm3, %v921_v38  ;;  %1605 = vrot.lane.b32.xlu1 %v4284_v49, %s3958_s24  ;;  %v4757_v49 = vld [vmem:[%s4041_s26 + $0x171] sm:$0xff] }
 0x151   : > { %1603 = vrot.lane.b32.xlu0 %v4736_v2, %s3958_s24 }
 0x152   : > { %v967_v58 = vpop.permute.xlu1 %966 }
 0x153   : > { %v965_v31 = vpop.permute.xlu0 %964  ;;  %985 = vst.msk [vmem:[#allocation2 + $0x68] sm:$0xff] %vm570_vm4, %v967_v58 }
 0x154   : > { %984 = vst.msk [vmem:[#allocation2 + $0x60] sm:$0xff] %vm570_vm4, %v965_v31  ;;  %1275 = vrot.lane.b32.xlu1 %v4745_v44, %s3951_s27 }
 0x155   : > { %1273 = vrot.lane.b32.xlu0 %v4748_v45, %s3951_s27 }
 0x156   : > { %v971_v13 = vpop.permute.xlu1 %970 }
 0x157   : > { %v969_v61 = vpop.permute.xlu0 %968  ;;  %987 = vst.msk [vmem:[#allocation2 + $0x78] sm:$0xff] %vm570_vm4, %v971_v13 }
 0x158   : > { %986 = vst.msk [vmem:[#allocation2 + $0x70] sm:$0xff] %vm570_vm4, %v969_v61  ;;  %1319 = vrot.lane.b32.xlu1 %v4757_v49, %s3952_s28 }
 0x159   : > { %1317 = vrot.lane.b32.xlu0 %v4760_v32, %s3952_s28 }
 0x15a   : > { %v1015_v42 = vpop.permute.xlu1 %1014 }
 0x15b   : > { %v1013_v22 = vpop.permute.xlu0 %1012  ;;  %1033 = vst.msk [vmem:[#allocation2 + $0x68] sm:$0xff] %vm620_vm5, %v1015_v42 }
 0x15c   : > { %1032 = vst.msk [vmem:[#allocation2 + $0x60] sm:$0xff] %vm620_vm5, %v1013_v22  ;;  %1323 = vrot.lane.b32.xlu1 %v4769_v16, %s3952_s28  ;;  %v4875_v22 = vld [vmem:[%s4041_s26 + $0x1a1] sm:$0xff] }
 0x15d   : > { %1321 = vrot.lane.b32.xlu0 %v4772_v17, %s3952_s28 }
 0x15e   : > { %v1019_v25 = vpop.permute.xlu1 %1018 }
 0x15f   : > { %v1017_v26 = vpop.permute.xlu0 %1016  ;;  %1035 = vst.msk [vmem:[#allocation2 + $0x78] sm:$0xff] %vm620_vm5, %v1019_v25  ;;  %v4882_v25 = vld [vmem:[%s6002_s2] ss:$0 sm:$0xff] }
 0x160   : > { %1034 = vst.msk [vmem:[#allocation2 + $0x70] sm:$0xff] %vm620_vm5, %v1017_v26  ;;  %1367 = vrot.lane.b32.xlu1 %v3601_v23, %s3953_s29 }
 0x161   : > { %1365 = vrot.lane.b32.xlu0 %v3600_v24, %s3953_s29 }
 0x162   : > { %v1063_v7 = vpop.permute.xlu1 %1062 }
 0x163   : > { %v1061_v9 = vpop.permute.xlu0 %1060  ;;  %1081 = vst.msk [vmem:[#allocation2 + $0x68] sm:$0xff] %vm669_vm6, %v1063_v7 }
 0x164   : > { %1080 = vst.msk [vmem:[#allocation2 + $0x60] sm:$0xff] %vm669_vm6, %v1061_v9  ;;  %1371 = vrot.lane.b32.xlu1 %v3603_v27, %s3953_s29  ;;  %v3652_v27 = vld [vmem:[%s4041_s26 + $0x121] sm:$0xff] }
 0x165   : > { %1369 = vrot.lane.b32.xlu0 %v3602_v29, %s3953_s29  ;;  %v3959_v29 = vmov 0.0  }
 0x166   : > { %v1067_v48 = vpop.permute.xlu1 %1066  ;;  %2354 = vst.msk [vmem:[#allocation3] sm:$0xff] %vm2353_vm11, %v3959_v29  ;;  %2357 = vst.msk [vmem:[#allocation4] sm:$0xff] %vm2353_vm11, %v3959_v29  ;;  %3893 = vmatprep.subr.bf16.mxu1 %v3959_v29  ;;  %3901 = vmatprep.mubr.msk.bf16.mxu1 %vm3960_vm14, %v3959_v29 }
 0x167   : > { %v1065_v12 = vpop.permute.xlu0 %1064  ;;  %1083 = vst.msk [vmem:[#allocation2 + $0x78] sm:$0xff] %vm669_vm6, %v1067_v48 }
 0x168   : > { %1082 = vst.msk [vmem:[#allocation2 + $0x70] sm:$0xff] %vm669_vm6, %v1065_v12  ;;  %1415 = vrot.lane.b32.xlu1 %v4464_v40, %s3954_s30 }
 0x169   : > { %1413 = vrot.lane.b32.xlu0 %v4793_v43, %s3954_s30  ;;  %2680 = vst.msk [vmem:[#allocation7] sm:$0xff] %vm2353_vm11, %v3959_v29  ;;  %2684 = vst.msk [vmem:[#allocation7 + $0x90] sm:$0xff] %vm2353_vm11, %v3959_v29 }
 0x16a   : > { %v1111_v54 = vpop.permute.xlu1 %1110  ;;  %2370 = vst.msk [vmem:[#allocation5 + $0x20] sm:$0x1] %vm2355_vm12, %v3959_v29  ;;  %2356 = vst.msk [vmem:[#allocation3 + $0x8] sm:$0x1] %vm2355_vm12, %v3959_v29 }
 0x16b   : > { %v1109_v50 = vpop.permute.xlu0 %1108  ;;  %1129 = vst.msk [vmem:[#allocation2 + $0x68] sm:$0xff] %vm719_vm7, %v1111_v54 }
 0x16c   : > { %1128 = vst.msk [vmem:[#allocation2 + $0x60] sm:$0xff] %vm719_vm7, %v1109_v50  ;;  %1419 = vrot.lane.b32.xlu1 %v4802_v52, %s3954_s30 }
 0x16d   : > { %1417 = vrot.lane.b32.xlu0 %v4461_v4, %s3954_s30  ;;  %2360 = vst.msk [vmem:[#allocation3 + $0x10] sm:$0x1] %vm2355_vm12, %v3959_v29  ;;  %2361 = vst.msk [vmem:[#allocation3 + $0x20] sm:$0x1] %vm2355_vm12, %v3959_v29 }
 0x16e   : > { %v1115_v56 = vpop.permute.xlu1 %1114  ;;  %2362 = vst.msk [vmem:[#allocation3 + $0x30] sm:$0x1] %vm2355_vm12, %v3959_v29  ;;  %2363 = vst.msk [vmem:[#allocation3 + $0x40] sm:$0x1] %vm2355_vm12, %v3959_v29 }
 0x16f   : > { %v1113_v1 = vpop.permute.xlu0 %1112  ;;  %1131 = vst.msk [vmem:[#allocation2 + $0x78] sm:$0xff] %vm719_vm7, %v1115_v56 }
 0x170   : > { %1130 = vst.msk [vmem:[#allocation2 + $0x70] sm:$0xff] %vm719_vm7, %v1113_v1  ;;  %1463 = vrot.lane.b32.xlu1 %v4811_v55, %s3955_s13 }
 0x171   : > { %1461 = vrot.lane.b32.xlu0 %v4814_v51, %s3955_s13  ;;  %2364 = vst.msk [vmem:[#allocation3 + $0x50] sm:$0x1] %vm2355_vm12, %v3959_v29  ;;  %2365 = vst.msk [vmem:[#allocation3 + $0x60] sm:$0x1] %vm2355_vm12, %v3959_v29 }
 0x172   : > { %v1159_v41 = vpop.permute.xlu1 %1158  ;;  %2366 = vst.msk [vmem:[#allocation3 + $0x70] sm:$0x1] %vm2355_vm12, %v3959_v29  ;;  %2367 = vst.msk [vmem:[#allocation3 + $0x80] sm:$0x1] %vm2355_vm12, %v3959_v29 }
 0x173   : > { %v1157_v19 = vpop.permute.xlu0 %1156  ;;  %1177 = vst.msk [vmem:[#allocation2 + $0x68] sm:$0xff] %vm769_vm8, %v1159_v41 }
 0x174   : > { %1176 = vst.msk [vmem:[#allocation2 + $0x60] sm:$0xff] %vm769_vm8, %v1157_v19  ;;  %1467 = vrot.lane.b32.xlu1 %v4823_v57, %s3955_s13 }
 0x175   : > { %1465 = vrot.lane.b32.xlu0 %v4826_v15, %s3955_s13  ;;  %2368 = vst.msk [vmem:[#allocation5] sm:$0x1] %vm2355_vm12, %v3959_v29  ;;  %2369 = vst.msk [vmem:[#allocation5 + $0x10] sm:$0x1] %vm2355_vm12, %v3959_v29 }
 0x176   : > { %v1163_v59 = vpop.permute.xlu1 %1162  ;;  %2371 = vst.msk [vmem:[#allocation5 + $0x30] sm:$0x1] %vm2355_vm12, %v3959_v29  ;;  %2372 = vst.msk [vmem:[#allocation5 + $0x40] sm:$0x1] %vm2355_vm12, %v3959_v29 }
 0x177   : > { %v1161_v11 = vpop.permute.xlu0 %1160  ;;  %1179 = vst.msk [vmem:[#allocation2 + $0x78] sm:$0xff] %vm769_vm8, %v1163_v59 }
 0x178   : > { %1178 = vst.msk [vmem:[#allocation2 + $0x70] sm:$0xff] %vm769_vm8, %v1161_v11  ;;  %1512 = vrot.lane.b32.xlu1 %v4554_v18, %s3956_s14 }
 0x179   : > { %1510 = vrot.lane.b32.xlu0 %v4557_v14, %s3956_s14  ;;  %v4856_v14 = vld [vmem:[%s4041_s26 + $0x230] sm:$0xff]  ;;  %2373 = vst.msk [vmem:[#allocation5 + $0x50] sm:$0x1] %vm2355_vm12, %v3959_v29  ;;  %2374 = vst.msk [vmem:[#allocation5 + $0x60] sm:$0x1] %vm2355_vm12, %v3959_v29 }
 0x17a   : > { %v1207_v63 = vpop.permute.xlu1 %1206  ;;  %2375 = vst.msk [vmem:[#allocation5 + $0x70] sm:$0x1] %vm2355_vm12, %v3959_v29  ;;  %2687 = vst.msk [vmem:[#allocation7 + $0x10] sm:$0x1] %vm2355_vm12, %v3959_v29 }
 0x17b   : > { %v1205_v5 = vpop.permute.xlu0 %1204  ;;  %1225 = vst.msk [vmem:[#allocation2 + $0x68] sm:$0xff] %vm818_vm9, %v1207_v63 }
 0x17c   : > { %1224 = vst.msk [vmem:[#allocation2 + $0x60] sm:$0xff] %vm818_vm9, %v1205_v5  ;;  %1516 = vrot.lane.b32.xlu1 %v3627_v36, %s3956_s14  ;;  %v4988_v5 = vld [vmem:[%s4041_s26 + $0x1c1] sm:$0xff] }
 0x17d   : > { %1514 = vrot.lane.b32.xlu0 %v4570_v60, %s3956_s14  ;;  %2688 = vst.msk [vmem:[#allocation7 + $0x20] sm:$0x1] %vm2355_vm12, %v3959_v29  ;;  %2689 = vst.msk [vmem:[#allocation7 + $0x30] sm:$0x1] %vm2355_vm12, %v3959_v29 }
 0x17e   : > { %v1211_v18 = vpop.permute.xlu1 %1210  ;;  %2690 = vst.msk [vmem:[#allocation7 + $0x40] sm:$0x1] %vm2355_vm12, %v3959_v29  ;;  %2691 = vst.msk [vmem:[#allocation7 + $0x50] sm:$0x1] %vm2355_vm12, %v3959_v29 }
 0x17f   : > { %v1209_v0 = vpop.permute.xlu0 %1208  ;;  %1227 = vst.msk [vmem:[#allocation2 + $0x78] sm:$0xff] %vm818_vm9, %v1211_v18  ;;  %v3660_v18 = vld [vmem:[%s4041_s26 + $0x1b1] sm:$0xff] }
 0x180   : > { %1226 = vst.msk [vmem:[#allocation2 + $0x70] sm:$0xff] %vm818_vm9, %v1209_v0  ;;  %1561 = vrot.lane.b32.xlu1 %v4748_v45, %s3957_s17 }
 0x181   : > { %1559 = vrot.lane.b32.xlu0 %v4847_v35, %s3957_s17  ;;  %2692 = vst.msk [vmem:[#allocation7 + $0x60] sm:$0x1] %vm2355_vm12, %v3959_v29  ;;  %2693 = vst.msk [vmem:[#allocation7 + $0x70] sm:$0x1] %vm2355_vm12, %v3959_v29 }
 0x182   : > { %v1264_v39 = vpop.permute.xlu1 %1263  ;;  %v2045_v30 = vld [vmem:[#allocation2 + $0x68] sm:$0xff]  ;;  %2694 = vst.msk [vmem:[#allocation7 + $0x80] sm:$0x1] %vm2355_vm12, %v3959_v29  ;;  %2697 = vst.msk [vmem:[#allocation7 + $0x19] sm:$0x1] %vm2355_vm12, %v3959_v29 }
 0x183   : > { %v1262_v3 = vpop.permute.xlu0 %1261  ;;  %v2044_v60 = vld [vmem:[#allocation2 + $0x60] sm:$0xff]  ;;  %1286 = vst.msk [vmem:[#allocation2 + $0x88] sm:$0xff] %vm471_vm2, %v1264_v39 }
 0x184   : > { %1285 = vst.msk [vmem:[#allocation2 + $0x80] sm:$0xff] %vm471_vm2, %v1262_v3  ;;  %v2070_v38 = vpack.c.bf16 %v2045_v30, %v2044_v60  ;;  %1565 = vrot.lane.b32.xlu1 %v4856_v14, %s3957_s17  ;;  %v4999_v3 = vld [vmem:[%s4041_s26 + $0x1e1] sm:$0xff]  ;;  %v5002_v60 = vld [vmem:[%s4041_s26 + $0x1d1] sm:$0xff] }
 0x185   : > { %1563 = vrot.lane.b32.xlu0 %v4745_v44, %s3957_s17  ;;  %2698 = vst.msk [vmem:[#allocation7 + $0x29] sm:$0x1] %vm2355_vm12, %v3959_v29  ;;  %2699 = vst.msk [vmem:[#allocation7 + $0x39] sm:$0x1] %vm2355_vm12, %v3959_v29 }
 0x186   : > { %3873 = vmatprep.mubr.msk.bf16.mxu0 %vm2107_vm10, %v2070_v38  ;;  %v1268_v58 = vpop.permute.xlu1 %1267  ;;  %v2047_v61 = vld [vmem:[#allocation2 + $0x78] sm:$0xff]  ;;  %2700 = vst.msk [vmem:[#allocation7 + $0x49] sm:$0x1] %vm2355_vm12, %v3959_v29  ;;  %2701 = vst.msk [vmem:[#allocation7 + $0x59] sm:$0x1] %vm2355_vm12, %v3959_v29 }
 0x187   : > { %v1266_v31 = vpop.permute.xlu0 %1265  ;;  %v2046_v13 = vld [vmem:[#allocation2 + $0x70] sm:$0xff]  ;;  %1288 = vst.msk [vmem:[#allocation2 + $0x98] sm:$0xff] %vm471_vm2, %v1268_v58 }
 0x188   : > { %1287 = vst.msk [vmem:[#allocation2 + $0x90] sm:$0xff] %vm471_vm2, %v1266_v31  ;;  %v2071_v42 = vpack.c.bf16 %v2047_v61, %v2046_v13  ;;  %1609 = vrot.lane.b32.xlu1 %v4772_v17, %s3958_s24  ;;  %v3671_v13 = vld [vmem:[%s4041_s26 + $0xd0] sm:$0xff] }
 0x189   : > { %1607 = vrot.lane.b32.xlu0 %v4757_v49, %s3958_s24  ;;  %2702 = vst.msk [vmem:[#allocation7 + $0x69] sm:$0x1] %vm2355_vm12, %v3959_v29  ;;  %2703 = vst.msk [vmem:[#allocation7 + $0x79] sm:$0x1] %vm2355_vm12, %v3959_v29 }
 0x18a   : > { %3874 = vmatmul.mubr.msk.bf16.gmra.mxu0 %vm2107_vm10, %v2071_v42  ;;  %v1312_v23 = vpop.permute.xlu1 %1311  ;;  %2704 = vst.msk [vmem:[#allocation7 + $0x89] sm:$0x1] %vm2355_vm12, %v3959_v29  ;;  %2359 = vst.msk [vmem:[#allocation3] sm:$0x1] %vm2355_vm12, %v3959_v29 }
 0x18b   : > { %v1310_v24 = vpop.permute.xlu0 %1309  ;;  %1334 = vst.msk [vmem:[#allocation2 + $0x88] sm:$0xff] %vm520_vm3, %v1312_v23 }
 0x18c   : > { %1333 = vst.msk [vmem:[#allocation2 + $0x80] sm:$0xff] %vm520_vm3, %v1310_v24  ;;  %1613 = vrot.lane.b32.xlu1 %v4875_v22, %s3958_s24 }
 0x18d   : > { %1611 = vrot.lane.b32.xlu0 %v4769_v16, %s3958_s24  ;;  %2686 = vst.msk [vmem:[#allocation7] sm:$0x1] %vm2355_vm12, %v3959_v29  ;;  %2695 = vst.msk [vmem:[#allocation7 + $0x90] sm:$0x1] %vm2355_vm12, %v3959_v29 }
 0x18e   : > { %v3863_v26 = vpop.f32.mrf.mxu0  ;;  %v1316_v9 = vpop.permute.xlu1 %1315  ;;  %2682 = vst.msk [vmem:[#allocation7 + $0x8] sm:$0x3] %vm2681_vm13, %v3959_v29  ;;  %2685 = vst.msk [vmem:[#allocation7 + $0x98] sm:$0x3] %vm2681_vm13, %v3959_v29 }
 0x18f   : > { %v2203_v7 = vadd.f32 %v3863_v26, %v4882_v25  ;;  %v1314_v48 = vpop.permute.xlu0 %1313  ;;  %1336 = vst.msk [vmem:[#allocation2 + $0x98] sm:$0xff] %vm520_vm3, %v1316_v9  ;;  %v3686_v9 = vld [vmem:[%s4041_s26 + $0xc1] sm:$0xff] }
 0x190   : > { %1335 = vst.msk [vmem:[#allocation2 + $0x90] sm:$0xff] %vm520_vm3, %v1314_v48  ;;  %v2194_v12 = vpop.f32.mrf.mxu0  ;;  %1666 = vrot.lane.b32.xlu1 %v4720_v53, %s3951_s27 }
 0x191   : > { %v2323_v54 = vmax.f32 %v2203_v7, 0.0  ;;  %v2195_v50 = vadd.f32 %v4882_v25, %v2194_v12  ;;  %1664 = vrot.lane.b32.xlu0 %v3652_v27, %s3951_s27  ;;  %v3684_v27 = vld [vmem:[%s4041_s26 + $0xa1] sm:$0xff]  ;;  %2696 = vst.msk [vmem:[#allocation7 + $0x9] sm:$0x1] %vm2355_vm12, %v3959_v29  ;;  %2705 = vst.msk [vmem:[#allocation7 + $0x99] sm:$0x1] %vm2355_vm12, %v3959_v29 }
 0x192   : > { %v3864_v56 = vpop.f32.mrf.mxu0  ;;  %v1360_v19 = vpop.permute.xlu1 %1359 }
 0x193   : > { %2379 = vst.msk [vmem:[#allocation6 + $0x20] sm:$0xff] %vm2353_vm11, %v2323_v54  ;;  %v2321_v1 = vmax.f32 %v2195_v50, 0.0  ;;  %v2206_v41 = vadd.f32 %v3864_v56, %v4882_v25  ;;  %v1358_v59 = vpop.permute.xlu0 %1357 }
 0x194   : > { %1382 = vst.msk [vmem:[#allocation2 + $0x88] sm:$0xff] %vm570_vm4, %v1360_v19  ;;  %1381 = vst.msk [vmem:[#allocation2 + $0x80] sm:$0xff] %vm570_vm4, %v1358_v59  ;;  %v2197_v11 = vpop.f32.mrf.mxu0  ;;  %1670 = vrot.lane.b32.xlu1 %v4736_v2, %s3951_s27 }
 0x195   : > { %2377 = vst.msk [vmem:[#allocation6] sm:$0xff] %vm2353_vm11, %v2321_v1  ;;  %v2324_v36 = vmax.f32 %v2206_v41, 0.0  ;;  %v2198_v63 = vadd.f32 %v4882_v25, %v2197_v11  ;;  %1668 = vrot.lane.b32.xlu0 %v4717_v62, %s3951_s27  ;;  %v5055_v1 = vld [vmem:[%s4041_s26 + $0x200] sm:$0xff] }
 0x196   : > { %v1364_v37 = vpop.permute.xlu1 %1363  ;;  %1645 = vst.msk [vmem:[#allocation2 + $0xe8] sm:$0xff] %vm421_vm0, %v5055_v1 }
 0x197   : > { %2380 = vst.msk [vmem:[#allocation6 + $0x30] sm:$0xff] %vm2353_vm11, %v2324_v36  ;;  %v2322_v0 = vmax.f32 %v2198_v63, 0.0  ;;  %v1362_v39 = vpop.permute.xlu0 %1361 }
 0x198   : > { %1384 = vst.msk [vmem:[#allocation2 + $0x98] sm:$0xff] %vm570_vm4, %v1364_v37  ;;  %1383 = vst.msk [vmem:[#allocation2 + $0x90] sm:$0xff] %vm570_vm4, %v1362_v39  ;;  %1714 = vrot.lane.b32.xlu1 %v4988_v5, %s3952_s28 }
 0x199   : > { %2378 = vst.msk [vmem:[#allocation6 + $0x10] sm:$0xff] %vm2353_vm11, %v2322_v0  ;;  %1712 = vrot.lane.b32.xlu0 %v3660_v18, %s3952_s28 }
 0x19a   : > { %v1408_v30 = vpop.permute.xlu1 %1407 }
 0x19b   : > { %v1406_v38 = vpop.permute.xlu0 %1405  ;;  %1430 = vst.msk [vmem:[#allocation2 + $0x88] sm:$0xff] %vm620_vm5, %v1408_v30 }
 0x19c   : > { %1429 = vst.msk [vmem:[#allocation2 + $0x80] sm:$0xff] %vm620_vm5, %v1406_v38  ;;  %1718 = vrot.lane.b32.xlu1 %v4999_v3, %s3952_s28 }
 0x19d   : > { %1716 = vrot.lane.b32.xlu0 %v5002_v60, %s3952_s28 }
 0x19e   : > { %v1412_v58 = vpop.permute.xlu1 %1411 }
 0x19f   : > { %v1410_v31 = vpop.permute.xlu0 %1409  ;;  %1432 = vst.msk [vmem:[#allocation2 + $0x98] sm:$0xff] %vm620_vm5, %v1412_v58 }
 0x1a0   : > { %1431 = vst.msk [vmem:[#allocation2 + $0x90] sm:$0xff] %vm620_vm5, %v1410_v31  ;;  %1762 = vrot.lane.b32.xlu1 %v4643_v28, %s3953_s29  ;;  %v3679_v28 = vld [vmem:[%s4041_s26 + $0x41] sm:$0xff]  ;;  %v3711_v31 = vld [vmem:[%s4041_s26 + $0x1f1] sm:$0xff] }
 0x1a1   : > { %1760 = vrot.lane.b32.xlu0 %v4646_v6, %s3953_s29 }
 0x1a2   : > { %v1456_v61 = vpop.permute.xlu1 %1455 }
 0x1a3   : > { %v1454_v42 = vpop.permute.xlu0 %1453  ;;  %1478 = vst.msk [vmem:[#allocation2 + $0x88] sm:$0xff] %vm669_vm6, %v1456_v61 }
 0x1a4   : > { %1477 = vst.msk [vmem:[#allocation2 + $0x80] sm:$0xff] %vm669_vm6, %v1454_v42  ;;  %1766 = vrot.lane.b32.xlu1 %v3671_v13, %s3953_s29 }
 0x1a5   : > { %1764 = vrot.lane.b32.xlu0 %v4655_v8, %s3953_s29  ;;  %v3685_v8 = vld [vmem:[%s4041_s26 + $0xb1] sm:$0xff] }
 0x1a6   : > { %v1460_v23 = vpop.permute.xlu1 %1459 }
 0x1a7   : > { %v1458_v24 = vpop.permute.xlu0 %1457  ;;  %1480 = vst.msk [vmem:[#allocation2 + $0x98] sm:$0xff] %vm669_vm6, %v1460_v23 }
 0x1a8   : > { %1479 = vst.msk [vmem:[#allocation2 + $0x90] sm:$0xff] %vm669_vm6, %v1458_v24  ;;  %1810 = vrot.lane.b32.xlu1 %v4664_v46, %s3954_s30 }
 0x1a9   : > { %1808 = vrot.lane.b32.xlu0 %v4667_v47, %s3954_s30  ;;  %v3687_v47 = vld [vmem:[%s4041_s26 + $0xd1] sm:$0xff] }
 0x1aa   : > { %v1505_v6 = vpop.permute.xlu1 %1504 }
 0x1ab   : > { %v1503_v26 = vpop.permute.xlu0 %1502  ;;  %1527 = vst.msk [vmem:[#allocation2 + $0x88] sm:$0xff] %vm719_vm7, %v1505_v6 }
 0x1ac   : > { %1526 = vst.msk [vmem:[#allocation2 + $0x80] sm:$0xff] %vm719_vm7, %v1503_v26  ;;  %1814 = vrot.lane.b32.xlu1 %v3679_v28, %s3954_s30 }
 0x1ad   : > { %1812 = vrot.lane.b32.xlu0 %v4676_v10, %s3954_s30 }
 0x1ae   : > { %v1509_v46 = vpop.permute.xlu1 %1508 }
 0x1af   : > { %v1507_v7 = vpop.permute.xlu0 %1506  ;;  %1529 = vst.msk [vmem:[#allocation2 + $0x98] sm:$0xff] %vm719_vm7, %v1509_v46 }
 0x1b0   : > { %1528 = vst.msk [vmem:[#allocation2 + $0x90] sm:$0xff] %vm719_vm7, %v1507_v7  ;;  %1858 = vrot.lane.b32.xlu1 %v3685_v8, %s3955_s13  ;;  %v5128_v7 = vld [vmem:[%s4041_s26 + $0x221] sm:$0xff] }
 0x1b1   : > { %1856 = vrot.lane.b32.xlu0 %v3684_v27, %s3955_s13 }
 0x1b2   : > { %v1554_v48 = vpop.permute.xlu1 %1553 }
 0x1b3   : > { %v1552_v12 = vpop.permute.xlu0 %1551  ;;  %1576 = vst.msk [vmem:[#allocation2 + $0x88] sm:$0xff] %vm769_vm8, %v1554_v48 }
 0x1b4   : > { %1575 = vst.msk [vmem:[#allocation2 + $0x80] sm:$0xff] %vm769_vm8, %v1552_v12  ;;  %1862 = vrot.lane.b32.xlu1 %v3687_v47, %s3955_s13  ;;  %v5131_v47 = vld [vmem:[%s4041_s26 + $0x211] sm:$0xff] }
 0x1b5   : > { %1860 = vrot.lane.b32.xlu0 %v3686_v9, %s3955_s13 }
 0x1b6   : > { %v1558_v10 = vpop.permute.xlu1 %1557 }
 0x1b7   : > { %v1556_v54 = vpop.permute.xlu0 %1555  ;;  %1578 = vst.msk [vmem:[#allocation2 + $0x98] sm:$0xff] %vm769_vm8, %v1558_v10 }
 0x1b8   : > { %1577 = vst.msk [vmem:[#allocation2 + $0x90] sm:$0xff] %vm769_vm8, %v1556_v54  ;;  %1906 = vrot.lane.b32.xlu1 %v4435_v20, %s3956_s14 }
 0x1b9   : > { %1904 = vrot.lane.b32.xlu0 %v4438_v21, %s3956_s14 }
 0x1ba   : > { %v1602_v50 = vpop.permute.xlu1 %1601 }
 0x1bb   : > { %v1600_v56 = vpop.permute.xlu0 %1599  ;;  %1624 = vst.msk [vmem:[#allocation2 + $0x88] sm:$0xff] %vm818_vm9, %v1602_v50 }
 0x1bc   : > { %1623 = vst.msk [vmem:[#allocation2 + $0x80] sm:$0xff] %vm818_vm9, %v1600_v56  ;;  %1910 = vrot.lane.b32.xlu1 %v4693_v34, %s3956_s14 }
 0x1bd   : > { %1908 = vrot.lane.b32.xlu0 %v4451_v33, %s3956_s14 }
 0x1be   : > { %v1272_v20 = vpop.permute.xlu1 %1271 }
 0x1bf   : > { %v1270_v21 = vpop.permute.xlu0 %1269  ;;  %1290 = vst.msk [vmem:[#allocation2 + $0xa8] sm:$0xff] %vm471_vm2, %v1272_v20 }
 0x1c0   : > { %1289 = vst.msk [vmem:[#allocation2 + $0xa0] sm:$0xff] %vm471_vm2, %v1270_v21  ;;  %1954 = vrot.lane.b32.xlu1 %v4717_v62, %s3957_s17  ;;  %v5077_v62 = vld [vmem:[%s4041_s26 + $0x220] sm:$0xff] }
 0x1c1   : > { %1952 = vrot.lane.b32.xlu0 %v4720_v53, %s3957_s17  ;;  %v5080_v53 = vld [vmem:[%s4041_s26 + $0x210] sm:$0xff]  ;;  %1647 = vst.msk [vmem:[#allocation2 + $0xf8] sm:$0xff] %vm421_vm0, %v5077_v62 }
 0x1c2   : > { %v1606_v34 = vpop.permute.xlu1 %1605  ;;  %v2049_v19 = vld [vmem:[#allocation2 + $0x88] sm:$0xff]  ;;  %1646 = vst.msk [vmem:[#allocation2 + $0xf0] sm:$0xff] %vm421_vm0, %v5080_v53 }
 0x1c3   : > { %v1604_v41 = vpop.permute.xlu0 %1603  ;;  %v2048_v33 = vld [vmem:[#allocation2 + $0x80] sm:$0xff]  ;;  %1626 = vst.msk [vmem:[#allocation2 + $0x98] sm:$0xff] %vm818_vm9, %v1606_v34 }
 0x1c4   : > { %1625 = vst.msk [vmem:[#allocation2 + $0x90] sm:$0xff] %vm818_vm9, %v1604_v41  ;;  %v2072_v59 = vpack.c.bf16 %v2049_v19, %v2048_v33  ;;  %1958 = vrot.lane.b32.xlu1 %v4760_v32, %s3957_s17  ;;  %v3690_v34 = vld [vmem:[%s4041_s26 + $0x101] sm:$0xff] }
 0x1c5   : > { %1956 = vrot.lane.b32.xlu0 %v4736_v2, %s3957_s17 }
 0x1c6   : > { %3877 = vmatprep.mubr.msk.bf16.mxu0 %vm2107_vm10, %v2072_v59  ;;  %v1276_v11 = vpop.permute.xlu1 %1275 }
 0x1c7   : > { %v1274_v36 = vpop.permute.xlu0 %1273  ;;  %1292 = vst.msk [vmem:[#allocation2 + $0xb8] sm:$0xff] %vm471_vm2, %v1276_v11 }
 0x1c8   : > { %1291 = vst.msk [vmem:[#allocation2 + $0xb0] sm:$0xff] %vm471_vm2, %v1274_v36  ;;  %2002 = vrot.lane.b32.xlu1 %v5002_v60, %s3958_s24 }
 0x1c9   : > { %2000 = vrot.lane.b32.xlu0 %v4988_v5, %s3958_s24 }
 0x1ca   : > { %v3867_v2 = vpop.f32.mrf.mxu0  ;;  %v1320_v18 = vpop.permute.xlu1 %1319  ;;  %v2051_v39 = vld [vmem:[#allocation2 + $0x98] sm:$0xff] }
 0x1cb   : > { %v2219_v63 = vadd.f32 %v3867_v2, %v4882_v25  ;;  %v1318_v0 = vpop.permute.xlu0 %1317  ;;  %v2050_v37 = vld [vmem:[#allocation2 + $0x90] sm:$0xff]  ;;  %1338 = vst.msk [vmem:[#allocation2 + $0xa8] sm:$0xff] %vm520_vm3, %v1320_v18 }
 0x1cc   : > { %1337 = vst.msk [vmem:[#allocation2 + $0xa0] sm:$0xff] %vm520_vm3, %v1318_v0  ;;  %v2210_v30 = vpop.f32.mrf.mxu0  ;;  %v2073_v38 = vpack.c.bf16 %v2051_v39, %v2050_v37  ;;  %1674 = vrot.lane.b32.xlu1 %v4757_v49, %s3951_s27 }
 0x1cd   : > { %v2327_v58 = vmax.f32 %v2219_v63, 0.0  ;;  %v2211_v60 = vadd.f32 %v4882_v25, %v2210_v30  ;;  %1672 = vrot.lane.b32.xlu0 %v4760_v32, %s3951_s27 }
 0x1ce   : > { %v3868_v5 = vpop.f32.mrf.mxu0  ;;  %3878 = vmatmul.mubr.msk.bf16.gmra.mxu0 %vm2107_vm10, %v2073_v38  ;;  %v1324_v42 = vpop.permute.xlu1 %1323 }
 0x1cf   : > { %2383 = vst.msk [vmem:[#allocation6 + $0x60] sm:$0xff] %vm2353_vm11, %v2327_v58  ;;  %v2325_v13 = vmax.f32 %v2211_v60, 0.0  ;;  %v2222_v61 = vadd.f32 %v3868_v5, %v4882_v25  ;;  %v1322_v23 = vpop.permute.xlu0 %1321 }
 0x1d0   : > { %1340 = vst.msk [vmem:[#allocation2 + $0xb8] sm:$0xff] %vm520_vm3, %v1324_v42  ;;  %1339 = vst.msk [vmem:[#allocation2 + $0xb0] sm:$0xff] %vm520_vm3, %v1322_v23  ;;  %v2213_v24 = vpop.f32.mrf.mxu0  ;;  %2006 = vrot.lane.b32.xlu1 %v3711_v31, %s3958_s24 }
 0x1d1   : > { %2381 = vst.msk [vmem:[#allocation6 + $0x40] sm:$0xff] %vm2353_vm11, %v2325_v13  ;;  %v2328_v32 = vmax.f32 %v2222_v61, 0.0  ;;  %v2214_v28 = vadd.f32 %v4882_v25, %v2213_v24  ;;  %2004 = vrot.lane.b32.xlu0 %v4999_v3, %s3958_s24  ;;  %v5120_v3 = vld [vmem:[%s4041_s26 + $0x201] sm:$0xff] }
 0x1d2   : > { %v1368_v26 = vpop.permute.xlu1 %1367 }
 0x1d3   : > { %2384 = vst.msk [vmem:[#allocation6 + $0x70] sm:$0xff] %vm2353_vm11, %v2328_v32  ;;  %v2326_v6 = vmax.f32 %v2214_v28, 0.0  ;;  %v1366_v8 = vpop.permute.xlu0 %1365 }
 0x1d4   : > { %1386 = vst.msk [vmem:[#allocation2 + $0xa8] sm:$0xff] %vm570_vm4, %v1368_v26  ;;  %1385 = vst.msk [vmem:[#allocation2 + $0xa0] sm:$0xff] %vm570_vm4, %v1366_v8  ;;  %1678 = vrot.lane.b32.xlu1 %v4769_v16, %s3951_s27 }
 0x1d5   : > { %2382 = vst.msk [vmem:[#allocation6 + $0x50] sm:$0xff] %vm2353_vm11, %v2326_v6  ;;  %1676 = vrot.lane.b32.xlu0 %v4772_v17, %s3951_s27 }
 0x1d6   : > { %v1372_v27 = vpop.permute.xlu1 %1371 }
 0x1d7   : > { %v1370_v46 = vpop.permute.xlu0 %1369  ;;  %1388 = vst.msk [vmem:[#allocation2 + $0xb8] sm:$0xff] %vm570_vm4, %v1372_v27 }
 0x1d8   : > { %1387 = vst.msk [vmem:[#allocation2 + $0xb0] sm:$0xff] %vm570_vm4, %v1370_v46  ;;  %1722 = vrot.lane.b32.xlu1 %v5120_v3, %s3952_s28 }
 0x1d9   : > { %1720 = vrot.lane.b32.xlu0 %v3711_v31, %s3952_s28 }
 0x1da   : > { %v1416_v9 = vpop.permute.xlu1 %1415 }
 0x1db   : > { %v1414_v48 = vpop.permute.xlu0 %1413  ;;  %1434 = vst.msk [vmem:[#allocation2 + $0xa8] sm:$0xff] %vm620_vm5, %v1416_v9 }
 0x1dc   : > { %1433 = vst.msk [vmem:[#allocation2 + $0xa0] sm:$0xff] %vm620_vm5, %v1414_v48  ;;  %1726 = vrot.lane.b32.xlu1 %v5128_v7, %s3952_s28 }
 0x1dd   : > { %1724 = vrot.lane.b32.xlu0 %v5131_v47, %s3952_s28 }
 0x1de   : > { %v1420_v12 = vpop.permute.xlu1 %1419 }
 0x1df   : > { %v1418_v10 = vpop.permute.xlu0 %1417  ;;  %1436 = vst.msk [vmem:[#allocation2 + $0xb8] sm:$0xff] %vm620_vm5, %v1420_v12 }
 0x1e0   : > { %1435 = vst.msk [vmem:[#allocation2 + $0xb0] sm:$0xff] %vm620_vm5, %v1418_v10  ;;  %1770 = vrot.lane.b32.xlu1 %v4464_v40, %s3953_s29 }
 0x1e1   : > { %1768 = vrot.lane.b32.xlu0 %v4793_v43, %s3953_s29 }
 0x1e2   : > { %v1464_v54 = vpop.permute.xlu1 %1463 }
 0x1e3   : > { %v1462_v50 = vpop.permute.xlu0 %1461  ;;  %1482 = vst.msk [vmem:[#allocation2 + $0xa8] sm:$0xff] %vm669_vm6, %v1464_v54 }
 0x1e4   : > { %1481 = vst.msk [vmem:[#allocation2 + $0xa0] sm:$0xff] %vm669_vm6, %v1462_v50  ;;  %1774 = vrot.lane.b32.xlu1 %v4802_v52, %s3953_s29  ;;  %v3688_v52 = vld [vmem:[%s4041_s26 + $0xe1] sm:$0xff] }
 0x1e5   : > { %1772 = vrot.lane.b32.xlu0 %v4461_v4, %s3953_s29  ;;  %v3689_v4 = vld [vmem:[%s4041_s26 + $0xf1] sm:$0xff] }
 0x1e6   : > { %v1468_v56 = vpop.permute.xlu1 %1467 }
 0x1e7   : > { %v1466_v20 = vpop.permute.xlu0 %1465  ;;  %1484 = vst.msk [vmem:[#allocation2 + $0xb8] sm:$0xff] %vm669_vm6, %v1468_v56 }
 0x1e8   : > { %1483 = vst.msk [vmem:[#allocation2 + $0xb0] sm:$0xff] %vm669_vm6, %v1466_v20  ;;  %1818 = vrot.lane.b32.xlu1 %v4811_v55, %s3954_s30 }
 0x1e9   : > { %1816 = vrot.lane.b32.xlu0 %v4814_v51, %s3954_s30  ;;  %v3691_v51 = vld [vmem:[%s4041_s26 + $0x111] sm:$0xff] }
 0x1ea   : > { %v1513_v40 = vpop.permute.xlu1 %1512 }
 0x1eb   : > { %v1511_v43 = vpop.permute.xlu0 %1510  ;;  %1531 = vst.msk [vmem:[#allocation2 + $0xa8] sm:$0xff] %vm719_vm7, %v1513_v40 }
 0x1ec   : > { %1530 = vst.msk [vmem:[#allocation2 + $0xa0] sm:$0xff] %vm719_vm7, %v1511_v43  ;;  %1822 = vrot.lane.b32.xlu1 %v4823_v57, %s3954_s30 }
 0x1ed   : > { %1820 = vrot.lane.b32.xlu0 %v4826_v15, %s3954_s30 }
 0x1ee   : > { %v1517_v55 = vpop.permute.xlu1 %1516 }
 0x1ef   : > { %v1515_v21 = vpop.permute.xlu0 %1514  ;;  %1533 = vst.msk [vmem:[#allocation2 + $0xb8] sm:$0xff] %vm719_vm7, %v1517_v55 }
 0x1f0   : > { %1532 = vst.msk [vmem:[#allocation2 + $0xb0] sm:$0xff] %vm719_vm7, %v1515_v21  ;;  %1866 = vrot.lane.b32.xlu1 %v3689_v4, %s3955_s13 }
 0x1f1   : > { %1864 = vrot.lane.b32.xlu0 %v3688_v52, %s3955_s13 }
 0x1f2   : > { %v1562_v41 = vpop.permute.xlu1 %1561 }
 0x1f3   : > { %v1560_v33 = vpop.permute.xlu0 %1559  ;;  %1580 = vst.msk [vmem:[#allocation2 + $0xa8] sm:$0xff] %vm769_vm8, %v1562_v41 }
 0x1f4   : > { %1579 = vst.msk [vmem:[#allocation2 + $0xa0] sm:$0xff] %vm769_vm8, %v1560_v33  ;;  %1870 = vrot.lane.b32.xlu1 %v3691_v51, %s3955_s13 }
 0x1f5   : > { %1868 = vrot.lane.b32.xlu0 %v3690_v34, %s3955_s13 }
 0x1f6   : > { %v1566_v57 = vpop.permute.xlu1 %1565 }
 0x1f7   : > { %v1564_v15 = vpop.permute.xlu0 %1563  ;;  %1582 = vst.msk [vmem:[#allocation2 + $0xb8] sm:$0xff] %vm769_vm8, %v1566_v57 }
 0x1f8   : > { %1581 = vst.msk [vmem:[#allocation2 + $0xb0] sm:$0xff] %vm769_vm8, %v1564_v15  ;;  %1914 = vrot.lane.b32.xlu1 %v4748_v45, %s3956_s14 }
 0x1f9   : > { %1912 = vrot.lane.b32.xlu0 %v4847_v35, %s3956_s14 }
 0x1fa   : > { %v1610_v19 = vpop.permute.xlu1 %1609 }
 0x1fb   : > { %v1608_v59 = vpop.permute.xlu0 %1607  ;;  %1628 = vst.msk [vmem:[#allocation2 + $0xa8] sm:$0xff] %vm818_vm9, %v1610_v19 }
 0x1fc   : > { %1627 = vst.msk [vmem:[#allocation2 + $0xa0] sm:$0xff] %vm818_vm9, %v1608_v59  ;;  %1918 = vrot.lane.b32.xlu1 %v4856_v14, %s3956_s14 }
 0x1fd   : > { %1916 = vrot.lane.b32.xlu0 %v4745_v44, %s3956_s14  ;;  %s3451_s14 = sshll.u32 %s6014_s22, 3 }
 0x1fe   : > { %v1614_v11 = vpop.permute.xlu1 %1613 }
 0x1ff   : > { %v1612_v36 = vpop.permute.xlu0 %1611  ;;  %1630 = vst.msk [vmem:[#allocation2 + $0xb8] sm:$0xff] %vm818_vm9, %v1614_v11 }
 0x200   : > { %1629 = vst.msk [vmem:[#allocation2 + $0xb0] sm:$0xff] %vm818_vm9, %v1612_v36  ;;  %1962 = vrot.lane.b32.xlu1 %v4772_v17, %s3957_s17 }
 0x201   : > { %1960 = vrot.lane.b32.xlu0 %v4757_v49, %s3957_s17 }
 0x202   : > { %v1667_v45 = vpop.permute.xlu1 %1666  ;;  %v2053_v63 = vld [vmem:[#allocation2 + $0xa8] sm:$0xff] }
 0x203   : > { %v1665_v35 = vpop.permute.xlu0 %1664  ;;  %v2052_v2 = vld [vmem:[#allocation2 + $0xa0] sm:$0xff]  ;;  %1689 = vst.msk [vmem:[#allocation2 + $0xc8] sm:$0xff] %vm471_vm2, %v1667_v45 }
 0x204   : > { %1688 = vst.msk [vmem:[#allocation2 + $0xc0] sm:$0xff] %vm471_vm2, %v1665_v35  ;;  %v2074_v44 = vpack.c.bf16 %v2053_v63, %v2052_v2  ;;  %1966 = vrot.lane.b32.xlu1 %v4875_v22, %s3957_s17 }
 0x205   : > { %1964 = vrot.lane.b32.xlu0 %v4769_v16, %s3957_s17  ;;  %v3715_v16 = vld [vmem:[%s4041_s26 + $0x231] sm:$0xff]  ;;  %s411_s17 = scalar_lea.vmem %s6012_s12, %s3451_s14 }
 0x206   : > { %3881 = vmatprep.mubr.msk.bf16.mxu0 %vm2107_vm10, %v2074_v44  ;;  %v1671_v17 = vpop.permute.xlu1 %1670  ;;  %v2055_v18 = vld [vmem:[#allocation2 + $0xb8] sm:$0xff] }
 0x207   : > { %v1669_v49 = vpop.permute.xlu0 %1668  ;;  %v2054_v14 = vld [vmem:[#allocation2 + $0xb0] sm:$0xff]  ;;  %1691 = vst.msk [vmem:[#allocation2 + $0xd8] sm:$0xff] %vm471_vm2, %v1671_v17 }
 0x208   : > { %1690 = vst.msk [vmem:[#allocation2 + $0xd0] sm:$0xff] %vm471_vm2, %v1669_v49  ;;  %v2075_v0 = vpack.c.bf16 %v2055_v18, %v2054_v14  ;;  %2010 = vrot.lane.b32.xlu1 %v5131_v47, %s3958_s24 }
 0x209   : > { %2008 = vrot.lane.b32.xlu0 %v5120_v3, %s3958_s24 }
 0x20a   : > { %3882 = vmatmul.mubr.msk.bf16.gmra.mxu0 %vm2107_vm10, %v2075_v0  ;;  %v1715_v22 = vpop.permute.xlu1 %1714 }
 0x20b   : > { %v1713_v37 = vpop.permute.xlu0 %1712  ;;  %1737 = vst.msk [vmem:[#allocation2 + $0xc8] sm:$0xff] %vm520_vm3, %v1715_v22 }
 0x20c   : > { %1736 = vst.msk [vmem:[#allocation2 + $0xc0] sm:$0xff] %vm520_vm3, %v1713_v37  ;;  %2014 = vrot.lane.b32.xlu1 %v3715_v16, %s3958_s24 }
 0x20d   : > { %2012 = vrot.lane.b32.xlu0 %v5128_v7, %s3958_s24 }
 0x20e   : > { %v3871_v39 = vpop.f32.mrf.mxu0  ;;  %v1719_v38 = vpop.permute.xlu1 %1718 }
 0x20f   : > { %v2235_v30 = vadd.f32 %v3871_v39, %v4882_v25  ;;  %v1717_v58 = vpop.permute.xlu0 %1716  ;;  %1739 = vst.msk [vmem:[#allocation2 + $0xd8] sm:$0xff] %vm520_vm3, %v1719_v38 }
 0x210   : > { %1738 = vst.msk [vmem:[#allocation2 + $0xd0] sm:$0xff] %vm520_vm3, %v1717_v58  ;;  %v2226_v60 = vpop.f32.mrf.mxu0 }
 0x211   : > { %v2331_v5 = vmax.f32 %v2235_v30, 0.0  ;;  %v2227_v31 = vadd.f32 %v4882_v25, %v2226_v60 }
 0x212   : > { %v3872_v13 = vpop.f32.mrf.mxu0  ;;  %v1763_v23 = vpop.permute.xlu1 %1762 }
 0x213   : > { %2387 = vst.msk [vmem:[#allocation5 + $0x21] sm:$0xff] %vm2353_vm11, %v2331_v5  ;;  %v2329_v61 = vmax.f32 %v2227_v31, 0.0  ;;  %v2238_v42 = vadd.f32 %v3872_v13, %v4882_v25  ;;  %v1761_v24 = vpop.permute.xlu0 %1760 }
 0x214   : > { %1785 = vst.msk [vmem:[#allocation2 + $0xc8] sm:$0xff] %vm570_vm4, %v1763_v23  ;;  %1784 = vst.msk [vmem:[#allocation2 + $0xc0] sm:$0xff] %vm570_vm4, %v1761_v24  ;;  %v2229_v32 = vpop.f32.mrf.mxu0 }
 0x215   : > { %2385 = vst.msk [vmem:[#allocation5 + $0x1] sm:$0xff] %vm2353_vm11, %v2329_v61  ;;  %v2332_v28 = vmax.f32 %v2238_v42, 0.0  ;;  %v2230_v6 = vadd.f32 %v4882_v25, %v2229_v32 }
 0x216   : > { %v1767_v8 = vpop.permute.xlu1 %1766 }
 0x217   : > { %2388 = vst.msk [vmem:[#allocation5 + $0x31] sm:$0xff] %vm2353_vm11, %v2332_v28  ;;  %v2330_v26 = vmax.f32 %v2230_v6, 0.0  ;;  %v1765_v3 = vpop.permute.xlu0 %1764 }
 0x218   : > { %1787 = vst.msk [vmem:[#allocation2 + $0xd8] sm:$0xff] %vm570_vm4, %v1767_v8  ;;  %1786 = vst.msk [vmem:[#allocation2 + $0xd0] sm:$0xff] %vm570_vm4, %v1765_v3 }
 0x219   : > { %2386 = vst.msk [vmem:[#allocation5 + $0x11] sm:$0xff] %vm2353_vm11, %v2330_v26 }
 0x21a   : > { %v1811_v27 = vpop.permute.xlu1 %1810 }
 0x21b   : > { %v1809_v46 = vpop.permute.xlu0 %1808  ;;  %1833 = vst.msk [vmem:[#allocation2 + $0xc8] sm:$0xff] %vm620_vm5, %v1811_v27 }
 0x21c   : > { %1832 = vst.msk [vmem:[#allocation2 + $0xc0] sm:$0xff] %vm620_vm5, %v1809_v46 }
 0x21e   : > { %v1815_v7 = vpop.permute.xlu1 %1814 }
 0x21f   : > { %v1813_v47 = vpop.permute.xlu0 %1812  ;;  %1835 = vst.msk [vmem:[#allocation2 + $0xd8] sm:$0xff] %vm620_vm5, %v1815_v7 }
 0x220   : > { %1834 = vst.msk [vmem:[#allocation2 + $0xd0] sm:$0xff] %vm620_vm5, %v1813_v47 }
 0x222   : > { %v1859_v9 = vpop.permute.xlu1 %1858 }
 0x223   : > { %v1857_v48 = vpop.permute.xlu0 %1856  ;;  %1881 = vst.msk [vmem:[#allocation2 + $0xc8] sm:$0xff] %vm669_vm6, %v1859_v9 }
 0x224   : > { %1880 = vst.msk [vmem:[#allocation2 + $0xc0] sm:$0xff] %vm669_vm6, %v1857_v48 }
 0x226   : > { %v1863_v12 = vpop.permute.xlu1 %1862 }
 0x227   : > { %v1861_v10 = vpop.permute.xlu0 %1860  ;;  %1883 = vst.msk [vmem:[#allocation2 + $0xd8] sm:$0xff] %vm669_vm6, %v1863_v12 }
 0x228   : > { %1882 = vst.msk [vmem:[#allocation2 + $0xd0] sm:$0xff] %vm669_vm6, %v1861_v10 }
 0x22a   : > { %v1907_v54 = vpop.permute.xlu1 %1906 }
 0x22b   : > { %v1905_v50 = vpop.permute.xlu0 %1904  ;;  %1929 = vst.msk [vmem:[#allocation2 + $0xc8] sm:$0xff] %vm719_vm7, %v1907_v54 }
 0x22c   : > { %1928 = vst.msk [vmem:[#allocation2 + $0xc0] sm:$0xff] %vm719_vm7, %v1905_v50 }
 0x22e   : > { %v1911_v56 = vpop.permute.xlu1 %1910 }
 0x22f   : > { %v1909_v20 = vpop.permute.xlu0 %1908  ;;  %1931 = vst.msk [vmem:[#allocation2 + $0xd8] sm:$0xff] %vm719_vm7, %v1911_v56 }
 0x230   : > { %1930 = vst.msk [vmem:[#allocation2 + $0xd0] sm:$0xff] %vm719_vm7, %v1909_v20 }
 0x232   : > { %v1955_v40 = vpop.permute.xlu1 %1954 }
 0x233   : > { %v1953_v43 = vpop.permute.xlu0 %1952  ;;  %1977 = vst.msk [vmem:[#allocation2 + $0xc8] sm:$0xff] %vm769_vm8, %v1955_v40 }
 0x234   : > { %1976 = vst.msk [vmem:[#allocation2 + $0xc0] sm:$0xff] %vm769_vm8, %v1953_v43 }
 0x236   : > { %v1959_v4 = vpop.permute.xlu1 %1958 }
 0x237   : > { %v1957_v52 = vpop.permute.xlu0 %1956  ;;  %1979 = vst.msk [vmem:[#allocation2 + $0xd8] sm:$0xff] %vm769_vm8, %v1959_v4 }
 0x238   : > { %1978 = vst.msk [vmem:[#allocation2 + $0xd0] sm:$0xff] %vm769_vm8, %v1957_v52 }
 0x23a   : > { %v2003_v55 = vpop.permute.xlu1 %2002 }
 0x23b   : > { %v2001_v21 = vpop.permute.xlu0 %2000  ;;  %2025 = vst.msk [vmem:[#allocation2 + $0xc8] sm:$0xff] %vm818_vm9, %v2003_v55 }
 0x23c   : > { %2024 = vst.msk [vmem:[#allocation2 + $0xc0] sm:$0xff] %vm818_vm9, %v2001_v21 }
 0x23e   : > { %v1675_v51 = vpop.permute.xlu1 %1674 }
 0x23f   : > { %v1673_v34 = vpop.permute.xlu0 %1672  ;;  %1693 = vst.msk [vmem:[#allocation2 + $0xe8] sm:$0xff] %vm471_vm2, %v1675_v51 }
 0x240   : > { %1692 = vst.msk [vmem:[#allocation2 + $0xe0] sm:$0xff] %vm471_vm2, %v1673_v34 }
 0x242   : > { %v2007_v41 = vpop.permute.xlu1 %2006  ;;  %v2057_v15 = vld [vmem:[#allocation2 + $0xc8] sm:$0xff] }
 0x243   : > { %v2005_v33 = vpop.permute.xlu0 %2004  ;;  %v2056_v57 = vld [vmem:[#allocation2 + $0xc0] sm:$0xff]  ;;  %2027 = vst.msk [vmem:[#allocation2 + $0xd8] sm:$0xff] %vm818_vm9, %v2007_v41 }
 0x244   : > { %2026 = vst.msk [vmem:[#allocation2 + $0xd0] sm:$0xff] %vm818_vm9, %v2005_v33  ;;  %v2076_v19 = vpack.c.bf16 %v2057_v15, %v2056_v57 }
 0x246   : > { %3885 = vmatprep.mubr.msk.bf16.mxu0 %vm2107_vm10, %v2076_v19  ;;  %v1679_v59 = vpop.permute.xlu1 %1678 }
 0x247   : > { %v1677_v11 = vpop.permute.xlu0 %1676  ;;  %1695 = vst.msk [vmem:[#allocation2 + $0xf8] sm:$0xff] %vm471_vm2, %v1679_v59 }
 0x248   : > { %1694 = vst.msk [vmem:[#allocation2 + $0xf0] sm:$0xff] %vm471_vm2, %v1677_v11 }
 0x24a   : > { %v3875_v36 = vpop.f32.mrf.mxu0  ;;  %v1723_v35 = vpop.permute.xlu1 %1722  ;;  %v2059_v44 = vld [vmem:[#allocation2 + $0xd8] sm:$0xff] }
 0x24b   : > { %v2251_v45 = vadd.f32 %v3875_v36, %v4882_v25  ;;  %v1721_v2 = vpop.permute.xlu0 %1720  ;;  %v2058_v63 = vld [vmem:[#allocation2 + $0xd0] sm:$0xff]  ;;  %1741 = vst.msk [vmem:[#allocation2 + $0xe8] sm:$0xff] %vm520_vm3, %v1723_v35 }
 0x24c   : > { %1740 = vst.msk [vmem:[#allocation2 + $0xe0] sm:$0xff] %vm520_vm3, %v1721_v2  ;;  %v2242_v17 = vpop.f32.mrf.mxu0  ;;  %v2077_v49 = vpack.c.bf16 %v2059_v44, %v2058_v63 }
 0x24d   : > { %v2335_v14 = vmax.f32 %v2251_v45, 0.0  ;;  %v2243_v18 = vadd.f32 %v4882_v25, %v2242_v17 }
 0x24e   : > { %v3876_v0 = vpop.f32.mrf.mxu0  ;;  %3886 = vmatmul.mubr.msk.bf16.gmra.mxu0 %vm2107_vm10, %v2077_v49  ;;  %v1727_v37 = vpop.permute.xlu1 %1726 }
 0x24f   : > { %2391 = vst.msk [vmem:[#allocation5 + $0x61] sm:$0xff] %vm2353_vm11, %v2335_v14  ;;  %v2333_v16 = vmax.f32 %v2243_v18, 0.0  ;;  %v2254_v22 = vadd.f32 %v3876_v0, %v4882_v25  ;;  %v1725_v39 = vpop.permute.xlu0 %1724 }
 0x250   : > { %1743 = vst.msk [vmem:[#allocation2 + $0xf8] sm:$0xff] %vm520_vm3, %v1727_v37  ;;  %1742 = vst.msk [vmem:[#allocation2 + $0xf0] sm:$0xff] %vm520_vm3, %v1725_v39  ;;  %v2245_v30 = vpop.f32.mrf.mxu0 }
 0x251   : > { %2389 = vst.msk [vmem:[#allocation5 + $0x41] sm:$0xff] %vm2353_vm11, %v2333_v16  ;;  %v2336_v38 = vmax.f32 %v2254_v22, 0.0  ;;  %v2246_v58 = vadd.f32 %v4882_v25, %v2245_v30  ;;  %v5313_v22 = vld [vmem:[%s6002_s2] ss:$0 sm:$0xff]  ;;  %v3012_v30 = vld [vmem:[%s4041_s26 + $0x70] sm:$0xff] }
 0x252   : > { %v1771_v5 = vpop.permute.xlu1 %1770 }
 0x253   : > { %2392 = vst.msk [vmem:[#allocation5 + $0x71] sm:$0xff] %vm2353_vm11, %v2336_v38  ;;  %v2334_v60 = vmax.f32 %v2246_v58, 0.0  ;;  %v1769_v31 = vpop.permute.xlu0 %1768  ;;  %v5325_v38 = vld [vmem:[%s6007_s7] ss:$0 sm:$0xff] }
 0x254   : > { %1789 = vst.msk [vmem:[#allocation2 + $0xe8] sm:$0xff] %vm570_vm4, %v1771_v5  ;;  %1788 = vst.msk [vmem:[#allocation2 + $0xe0] sm:$0xff] %vm570_vm4, %v1769_v31  ;;  %v5330_v58 = vld [vmem:[%s6008_s8] ss:$0 sm:$0xff]  ;;  %v3025_v5 = vmul.f32 %v5325_v38, %v3012_v30  ;;  %v5336_v31 = vld [vmem:[%s4041_s26 + $0xf0] sm:$0xff] }
 0x255   : > { %2390 = vst.msk [vmem:[#allocation5 + $0x51] sm:$0xff] %vm2353_vm11, %v2334_v60 }
 0x256   : > { %v1775_v13 = vpop.permute.xlu1 %1774 }
 0x257   : > { %v1773_v61 = vpop.permute.xlu0 %1772  ;;  %1791 = vst.msk [vmem:[#allocation2 + $0xf8] sm:$0xff] %vm570_vm4, %v1775_v13  ;;  %v3765_v13 = vld [vmem:[%s4041_s26 + $0x100] sm:$0xff] }
 0x258   : > { %1790 = vst.msk [vmem:[#allocation2 + $0xf0] sm:$0xff] %vm570_vm4, %v1773_v61  ;;  %v5342_v61 = vld [vmem:[%s6007_s7 + $0x1] ss:$0 sm:$0xff] }
 0x25a   : > { %v1819_v42 = vpop.permute.xlu1 %1818 }
 0x25b   : > { %v1817_v23 = vpop.permute.xlu0 %1816  ;;  %1837 = vst.msk [vmem:[#allocation2 + $0xe8] sm:$0xff] %vm620_vm5, %v1819_v42 }
 0x25c   : > { %1836 = vst.msk [vmem:[#allocation2 + $0xe0] sm:$0xff] %vm620_vm5, %v1817_v23  ;;  %v3033_v23 = vadd.f32 %v5330_v58, %v3025_v5 }
 0x25e   : > { %v1823_v24 = vpop.permute.xlu1 %1822 }
 0x25f   : > { %v1821_v32 = vpop.permute.xlu0 %1820  ;;  %1839 = vst.msk [vmem:[#allocation2 + $0xf8] sm:$0xff] %vm620_vm5, %v1823_v24  ;;  %v3053_v24 = vmul.f32 %v5342_v61, %v5336_v31 }
 0x260   : > { %1838 = vst.msk [vmem:[#allocation2 + $0xf0] sm:$0xff] %vm620_vm5, %v1821_v32  ;;  %v3054_v32 = vmul.f32 %v5342_v61, %v3765_v13 }
 0x262   : > { %v1867_v28 = vpop.permute.xlu1 %1866 }
 0x263   : > { %v1865_v6 = vpop.permute.xlu0 %1864  ;;  %1885 = vst.msk [vmem:[#allocation2 + $0xe8] sm:$0xff] %vm669_vm6, %v1867_v28  ;;  %v5350_v28 = vld [vmem:[%s4041_s26 + $0x61] sm:$0xff] }
 0x264   : > { %1884 = vst.msk [vmem:[#allocation2 + $0xe0] sm:$0xff] %vm669_vm6, %v1865_v6  ;;  %v3070_v6 = vld [vmem:[%s4041_s26 + $0x71] sm:$0xff] }
 0x266   : > { %v1871_v26 = vpop.permute.xlu1 %1870 }
 0x267   : > { %v1869_v8 = vpop.permute.xlu0 %1868  ;;  %1887 = vst.msk [vmem:[#allocation2 + $0xf8] sm:$0xff] %vm669_vm6, %v1871_v26  ;;  %v5356_v26 = vld [vmem:[%s6007_s7 + $0x2] ss:$0 sm:$0xff] }
 0x268   : > { %1886 = vst.msk [vmem:[#allocation2 + $0xf0] sm:$0xff] %vm669_vm6, %v1869_v8 }
 0x26a   : > { %v1915_v3 = vpop.permute.xlu1 %1914 }
 0x26b   : > { %v1913_v27 = vpop.permute.xlu0 %1912  ;;  %1933 = vst.msk [vmem:[#allocation2 + $0xe8] sm:$0xff] %vm719_vm7, %v1915_v3  ;;  %v3062_v3 = vadd.f32 %v3054_v32, %v3033_v23 }
 0x26c   : > { %1932 = vst.msk [vmem:[#allocation2 + $0xe0] sm:$0xff] %vm719_vm7, %v1913_v27  ;;  %v3082_v27 = vmul.f32 %v5356_v26, %v5350_v28 }
 0x26e   : > { %v1919_v46 = vpop.permute.xlu1 %1918 }
 0x26f   : > { %v1917_v7 = vpop.permute.xlu0 %1916  ;;  %1935 = vst.msk [vmem:[#allocation2 + $0xf8] sm:$0xff] %vm719_vm7, %v1919_v46  ;;  %v3083_v46 = vmul.f32 %v5356_v26, %v3070_v6 }
 0x270   : > { %1934 = vst.msk [vmem:[#allocation2 + $0xf0] sm:$0xff] %vm719_vm7, %v1917_v7  ;;  %v3774_v7 = vld [vmem:[%s4041_s26 + $0x180] sm:$0xff] }
 0x272   : > { %v1963_v47 = vpop.permute.xlu1 %1962 }
 0x273   : > { %v1961_v9 = vpop.permute.xlu0 %1960  ;;  %1981 = vst.msk [vmem:[#allocation2 + $0xe8] sm:$0xff] %vm769_vm8, %v1963_v47  ;;  %v3775_v47 = vld [vmem:[%s4041_s26 + $0x190] sm:$0xff] }
 0x274   : > { %1980 = vst.msk [vmem:[#allocation2 + $0xe0] sm:$0xff] %vm769_vm8, %v1961_v9  ;;  %v5366_v9 = vld [vmem:[%s6007_s7 + $0x3] ss:$0 sm:$0xff] }
 0x276   : > { %v1967_v48 = vpop.permute.xlu1 %1966 }
 0x277   : > { %v1965_v12 = vpop.permute.xlu0 %1964  ;;  %1983 = vst.msk [vmem:[#allocation2 + $0xf8] sm:$0xff] %vm769_vm8, %v1967_v48 }
 0x278   : > { %1982 = vst.msk [vmem:[#allocation2 + $0xf0] sm:$0xff] %vm769_vm8, %v1965_v12  ;;  %v3091_v12 = vadd.f32 %v3083_v46, %v3062_v3  ;;  %v5443_v46 = vld [vmem:[%s6007_s7 + $0x8] ss:$0 sm:$0xff] }
 0x27a   : > { %v2011_v10 = vpop.permute.xlu1 %2010 }
 0x27b   : > { %v2009_v54 = vpop.permute.xlu0 %2008  ;;  %2029 = vst.msk [vmem:[#allocation2 + $0xe8] sm:$0xff] %vm818_vm9, %v2011_v10  ;;  %v3111_v10 = vmul.f32 %v5366_v9, %v3774_v7 }
 0x27c   : > { %2028 = vst.msk [vmem:[#allocation2 + $0xe0] sm:$0xff] %vm818_vm9, %v2009_v54  ;;  %v3112_v54 = vmul.f32 %v5366_v9, %v3775_v47  ;;  %v3781_v47 = vld [vmem:[%s4041_s26 + $0x1f0] sm:$0xff] }
 0x27e   : > { %v2015_v50 = vpop.permute.xlu1 %2014 }
 0x27f   : > { %v2013_v56 = vpop.permute.xlu0 %2012  ;;  %2031 = vst.msk [vmem:[#allocation2 + $0xf8] sm:$0xff] %vm818_vm9, %v2015_v50  ;;  %v5373_v50 = vld [vmem:[%s6007_s7 + $0x4] ss:$0 sm:$0xff] }
 0x280   : > { %2030 = vst.msk [vmem:[#allocation2 + $0xf0] sm:$0xff] %vm818_vm9, %v2013_v56  ;;  %v5376_v56 = vld [vmem:[%s4041_s26 + $0x40] sm:$0xff] }
 0x282   : > { %v2061_v40 = vld [vmem:[#allocation2 + $0xe8] sm:$0xff] }
 0x283   : > { %v2060_v20 = vld [vmem:[#allocation2 + $0xe0] sm:$0xff] }
 0x284   : > { %v2078_v43 = vpack.c.bf16 %v2061_v40, %v2060_v20  ;;  %v5379_v20 = vld [vmem:[%s4041_s26 + $0x50] sm:$0xff]  ;;  %v3140_v40 = vmul.f32 %v5373_v50, %v5080_v53 }
 0x286   : > { %3889 = vmatprep.mubr.msk.bf16.mxu0 %vm2107_vm10, %v2078_v43  ;;  %v2063_v52 = vld [vmem:[#allocation2 + $0xf8] sm:$0xff]  ;;  %v3141_v43 = vmul.f32 %v5373_v50, %v5077_v62 }
 0x287   : > { %v2062_v4 = vld [vmem:[#allocation2 + $0xf0] sm:$0xff] }
 0x288   : > { %v2079_v55 = vpack.c.bf16 %v2063_v52, %v2062_v4  ;;  %v3022_v4 = vmul.f32 %v5325_v38, %v5376_v56  ;;  %v3023_v52 = vmul.f32 %v5325_v38, %v5379_v20 }
 0x28a   : > { %3890 = vmatmul.mubr.msk.bf16.gmra.mxu0 %vm2107_vm10, %v2079_v55 }
 0x28e   : > { %v3879_v21 = vpop.f32.mrf.mxu0 }
 0x28f   : > { %v2267_v51 = vadd.f32 %v3879_v21, %v4882_v25  ;;  %v3120_v21 = vadd.f32 %v3112_v54, %v3091_v12  ;;  %v3138_v54 = vmul.f32 %v5373_v50, %v3781_v47  ;;  %v3255_v47 = vmul.f32 %v5443_v46, %v5350_v28 }
 0x290   : > { %v2258_v34 = vpop.f32.mrf.mxu0 }
 0x291   : > { %v2339_v41 = vmax.f32 %v2267_v51, 0.0  ;;  %v2259_v33 = vadd.f32 %v4882_v25, %v2258_v34  ;;  %v3792_v51 = vld [vmem:[%s4041_s26 + $0x181] sm:$0xff]  ;;  %v3793_v34 = vld [vmem:[%s4041_s26 + $0x191] sm:$0xff] }
 0x292   : > { %v3880_v57 = vpop.f32.mrf.mxu0 }
 0x293   : > { %2396 = vst.msk [vmem:[#allocation4 + $0x30] sm:$0xff] %vm2353_vm11, %v2339_v41  ;;  %v2337_v15 = vmax.f32 %v2259_v33, 0.0  ;;  %v2270_v19 = vadd.f32 %v3880_v57, %v4882_v25  ;;  %v5394_v41 = vld [vmem:[%s6007_s7 + $0x5] ss:$0 sm:$0xff]  ;;  %v3030_v33 = vadd.f32 %v5330_v58, %v3022_v4  ;;  %v3031_v57 = vadd.f32 %v5330_v58, %v3023_v52 }
 0x294   : > { %v2261_v59 = vpop.f32.mrf.mxu0  ;;  %v3169_v62 = vmul.f32 %v5394_v41, %v3792_v51  ;;  %v3170_v53 = vmul.f32 %v5394_v41, %v3793_v34  ;;  %v3790_v51 = vld [vmem:[%s4041_s26 + $0x161] sm:$0xff]  ;;  %v3791_v34 = vld [vmem:[%s4041_s26 + $0x171] sm:$0xff] }
 0x295   : > { %2394 = vst.msk [vmem:[#allocation4 + $0x10] sm:$0xff] %vm2353_vm11, %v2337_v15  ;;  %v2340_v11 = vmax.f32 %v2270_v19, 0.0  ;;  %v2262_v36 = vadd.f32 %v4882_v25, %v2261_v59  ;;  %v5401_v15 = vld [vmem:[%s4041_s26 + $0xd0] sm:$0xff]  ;;  %v5404_v19 = vld [vmem:[%s4041_s26 + $0xe0] sm:$0xff] }
 0x297   : > { %2397 = vst.msk [vmem:[#allocation4 + $0x40] sm:$0xff] %vm2353_vm11, %v2340_v11  ;;  %v2338_v45 = vmax.f32 %v2262_v36, 0.0  ;;  %v3149_v11 = vadd.f32 %v3141_v43, %v3120_v21  ;;  %v3802_v36 = vld [vmem:[%s4041_s26 + $0x80] sm:$0xff]  ;;  %v3008_v43 = vld [vmem:[%s4041_s26 + $0x30] sm:$0xff]  ;;  %v3139_v21 = vmul.f32 %v5373_v50, %v5055_v1 }
 0x298   : > { %v3761_v1 = vld [vmem:[%s4041_s26 + $0xc0] sm:$0xff] }
 0x299   : > { %2395 = vst.msk [vmem:[#allocation4 + $0x20] sm:$0xff] %vm2353_vm11, %v2338_v45  ;;  %v5410_v45 = vld [vmem:[%s6007_s7 + $0x6] ss:$0 sm:$0xff] }
 0x2ca   : > { %v3883_v35 = vpop.f32.mrf.mxu0 }
 0x2cb   : > { %v2283_v2 = vadd.f32 %v3883_v35, %v4882_v25  ;;  %v3051_v35 = vmul.f32 %v5342_v61, %v5401_v15 }
 0x2cc   : > { %v2274_v63 = vpop.f32.mrf.mxu0 }
 0x2cd   : > { %v2343_v44 = vmax.f32 %v2283_v2, 0.0  ;;  %v2275_v17 = vadd.f32 %v4882_v25, %v2274_v63  ;;  %v3052_v2 = vmul.f32 %v5342_v61, %v5404_v19  ;;  %v5417_v63 = vld [vmem:[%s4041_s26 + $0x41] sm:$0xff] }
 0x2ce   : > { %v3884_v49 = vpop.f32.mrf.mxu0 }
 0x2cf   : > { %2400 = vst.msk [vmem:[#allocation4 + $0x70] sm:$0xff] %vm2353_vm11, %v2343_v44  ;;  %v2341_v14 = vmax.f32 %v2275_v17, 0.0  ;;  %v2286_v18 = vadd.f32 %v3884_v49, %v4882_v25  ;;  %v5319_v25 = vld [vmem:[%s4041_s26 + $0x60] sm:$0xff]  ;;  %v3198_v44 = vmul.f32 %v5410_v45, %v3012_v30  ;;  %v3199_v17 = vmul.f32 %v5410_v45, %v3802_v36  ;;  %v5422_v49 = vld [vmem:[%s4041_s26 + $0x51] sm:$0xff] }
 0x2d0   : > { %v2277_v0 = vpop.f32.mrf.mxu0  ;;  %v3024_v60 = vmul.f32 %v5325_v38, %v5319_v25  ;;  %v3772_v30 = vld [vmem:[%s4041_s26 + $0x160] sm:$0xff]  ;;  %v3081_v23 = vmul.f32 %v5356_v26, %v5422_v49 }
 0x2d1   : > { %2398 = vst.msk [vmem:[#allocation4 + $0x50] sm:$0xff] %vm2353_vm11, %v2341_v14  ;;  %v2344_v16 = vmax.f32 %v2286_v18, 0.0  ;;  %v2278_v37 = vadd.f32 %v5313_v22, %v2277_v0  ;;  %v3080_v14 = vmul.f32 %v5356_v26, %v5417_v63  ;;  %v3178_v0 = vadd.f32 %v3170_v53, %v3149_v11 }
 0x2d2   : > { %v3032_v42 = vadd.f32 %v5330_v58, %v3024_v60  ;;  %v3060_v60 = vadd.f32 %v3052_v2, %v3031_v57  ;;  %v3109_v32 = vmul.f32 %v5366_v9, %v3772_v30  ;;  %v3168_v53 = vmul.f32 %v5394_v41, %v3791_v34  ;;  %v5463_v57 = vld [vmem:[%s4041_s26 + $0xb0] sm:$0xff] }
 0x2d3   : > { %2401 = vst.msk [vmem:[#allocation4 + $0x80] sm:$0xff] %vm2353_vm11, %v2344_v16  ;;  %v2342_v39 = vmax.f32 %v2278_v37, 0.0  ;;  %v3811_v16 = vld [vmem:[%s4041_s26 + $0x110] sm:$0xff]  ;;  %v5430_v37 = vld [vmem:[%s6007_s7 + $0x7] ss:$0 sm:$0xff]  ;;  %v3207_v3 = vadd.f32 %v3199_v17, %v3178_v0  ;;  %v3197_v17 = vmul.f32 %v5410_v45, %v5319_v25 }
 0x2d4   : > { %v3061_v8 = vadd.f32 %v3053_v24, %v3032_v42  ;;  %v3227_v5 = vmul.f32 %v5430_v37, %v3765_v13  ;;  %v3228_v42 = vmul.f32 %v5430_v37, %v3811_v16  ;;  %v3773_v24 = vld [vmem:[%s4041_s26 + $0x170] sm:$0xff]  ;;  %v3226_v25 = vmul.f32 %v5430_v37, %v5336_v31 }
 0x2d5   : > { %2399 = vst.msk [vmem:[#allocation4 + $0x60] sm:$0xff] %vm2353_vm11, %v2342_v39  ;;  %v3059_v39 = vadd.f32 %v3051_v35, %v3030_v33  ;;  %v3110_v7 = vmul.f32 %v5366_v9, %v3773_v24  ;;  %v3021_v35 = vmul.f32 %v5325_v38, %v3008_v43  ;;  %v3254_v31 = vmul.f32 %v5443_v46, %v5422_v49 }
 0x2d6   : > { %v3090_v48 = vadd.f32 %v3082_v27, %v3061_v8  ;;  %v3820_v27 = vld [vmem:[%s4041_s26 + $0x81] sm:$0xff]  ;;  %v3236_v52 = vadd.f32 %v3228_v42, %v3207_v3  ;;  %v3066_v42 = vld [vmem:[%s4041_s26 + $0x31] sm:$0xff] }
 0x2d7   : > { %v3088_v13 = vadd.f32 %v3080_v14, %v3059_v39  ;;  %v3257_v12 = vmul.f32 %v5443_v46, %v3820_v27  ;;  %v3029_v39 = vadd.f32 %v5330_v58, %v3021_v35  ;;  %v3771_v27 = vld [vmem:[%s4041_s26 + $0x150] sm:$0xff] }
 0x2d8   : > { %v3119_v55 = vadd.f32 %v3111_v10, %v3090_v48  ;;  %v3256_v48 = vmul.f32 %v5443_v46, %v3070_v6  ;;  %v3089_v10 = vadd.f32 %v3081_v23, %v3060_v60  ;;  %v3049_v60 = vmul.f32 %v5342_v61, %v5463_v57  ;;  %v3770_v23 = vld [vmem:[%s4041_s26 + $0x140] sm:$0xff]  ;;  %v3006_v35 = vld [vmem:[%s4041_s26 + $0x10] sm:$0xff] }
 0x2d9   : > { %v3265_v11 = vadd.f32 %v3257_v12, %v3236_v52  ;;  %v3788_v52 = vld [vmem:[%s4041_s26 + $0x141] sm:$0xff]  ;;  %v3108_v49 = vmul.f32 %v5366_v9, %v3771_v27 }
 0x2da   : > { %v3148_v59 = vadd.f32 %v3140_v40, %v3119_v55  ;;  %v5451_v40 = vld [vmem:[%s4041_s26 + $0x20] sm:$0xff]  ;;  %v3117_v55 = vadd.f32 %v3109_v32, %v3088_v13  ;;  %v3118_v6 = vadd.f32 %v3110_v7, %v3089_v10  ;;  %v3779_v13 = vld [vmem:[%s4041_s26 + $0x1d0] sm:$0xff]  ;;  %v3079_v10 = vmul.f32 %v5356_v26, %v3066_v42 }
 0x2db   : > { %v3020_v33 = vmul.f32 %v5325_v38, %v5451_v40  ;;  %v3780_v7 = vld [vmem:[%s4041_s26 + $0x1e0] sm:$0xff] }
 0x2dc   : > { %v3177_v18 = vadd.f32 %v3169_v62, %v3148_v59  ;;  %v3167_v62 = vmul.f32 %v5394_v41, %v3790_v51  ;;  %v3146_v36 = vadd.f32 %v3138_v54, %v3117_v55  ;;  %v3147_v2 = vadd.f32 %v3139_v21, %v3118_v6  ;;  %v3789_v55 = vld [vmem:[%s4041_s26 + $0x151] sm:$0xff] }
 0x2dd   : > { %v3028_v14 = vadd.f32 %v5330_v58, %v3020_v33  ;;  %v3136_v51 = vmul.f32 %v5373_v50, %v3779_v13  ;;  %v3137_v28 = vmul.f32 %v5373_v50, %v3780_v7  ;;  %v3005_v33 = vld [vmem:[%s4041_s26] sm:$0xff] }
 0x2de   : > { %v3206_v8 = vadd.f32 %v3198_v44, %v3177_v18  ;;  %v3196_v44 = vmul.f32 %v5410_v45, %v5379_v20  ;;  %v5473_v18 = vld [vmem:[%s4041_s26 + $0x21] sm:$0xff]  ;;  %v3175_v16 = vadd.f32 %v3167_v62, %v3146_v36  ;;  %v3176_v30 = vadd.f32 %v3168_v53, %v3147_v2  ;;  %v3758_v2 = vld [vmem:[%s4041_s26 + $0x90] sm:$0xff] }
 0x2df   : > { %v3225_v20 = vmul.f32 %v5430_v37, %v5404_v19  ;;  %v3078_v3 = vmul.f32 %v5356_v26, %v5473_v18  ;;  %v3165_v53 = vmul.f32 %v5394_v41, %v3788_v52  ;;  %v3194_v36 = vmul.f32 %v5410_v45, %v3008_v43  ;;  %v3786_v52 = vld [vmem:[%s4041_s26 + $0x121] sm:$0xff] }
 0x2e0   : > { %v3235_v4 = vadd.f32 %v3227_v5, %v3206_v8  ;;  %v3050_v5 = vmul.f32 %v5342_v61, %v3761_v1  ;;  %v3204_v32 = vadd.f32 %v3196_v44, %v3175_v16  ;;  %v3057_v8 = vadd.f32 %v3049_v60, %v3028_v14  ;;  %v3759_v16 = vld [vmem:[%s4041_s26 + $0xa0] sm:$0xff] }
 0x2e1   : > { %v3205_v19 = vadd.f32 %v3197_v17, %v3176_v30  ;;  %v3195_v14 = vmul.f32 %v5410_v45, %v5376_v56  ;;  %v3224_v30 = vmul.f32 %v5430_v37, %v5401_v15  ;;  %v3018_v43 = vmul.f32 %v5325_v38, %v3005_v33 }
 0x2e2   : > { %v3264_v59 = vadd.f32 %v3256_v48, %v3235_v4  ;;  %v3058_v48 = vadd.f32 %v3050_v5, %v3029_v39  ;;  %v3233_v12 = vadd.f32 %v3225_v20, %v3204_v32  ;;  %v3086_v54 = vadd.f32 %v3078_v3, %v3057_v8  ;;  %v3063_v39 = vld [vmem:[%s4041_s26 + $0x1] sm:$0xff]  ;;  %v3769_v3 = vld [vmem:[%s4041_s26 + $0x130] sm:$0xff] }
 0x2e3   : > { %v3107_v4 = vmul.f32 %v5366_v9, %v3770_v23  ;;  %v3234_v21 = vadd.f32 %v3226_v25, %v3205_v19  ;;  %v3252_v20 = vmul.f32 %v5443_v46, %v3066_v42  ;;  %v3064_v25 = vld [vmem:[%s4041_s26 + $0x11] sm:$0xff]  ;;  %v3047_v56 = vmul.f32 %v5342_v61, %v3758_v2  ;;  %v5550_v2 = vld [vmem:[%s6003_s3] ss:$0 sm:$0xff] }
 0x2e4   : > { %v3269_v0 = vpack.c.bf16 %v3265_v11, %v3264_v59  ;;  %v3262_v34 = vadd.f32 %v3254_v31, %v3233_v12  ;;  %v3087_v6 = vadd.f32 %v3079_v10, %v3058_v48  ;;  %v3166_v11 = vmul.f32 %v5394_v41, %v3789_v55  ;;  %v3777_v19 = vld [vmem:[%s4041_s26 + $0x1b0] sm:$0xff]  ;;  %v3778_v48 = vld [vmem:[%s4041_s26 + $0x1c0] sm:$0xff] }
 0x2e5   : > { %v3115_v62 = vadd.f32 %v3107_v4, %v3086_v54  ;;  %v3263_v59 = vadd.f32 %v3255_v47, %v3234_v21  ;;  %v3026_v8 = vadd.f32 %v5330_v58, %v3018_v43  ;;  %v3048_v15 = vmul.f32 %v5342_v61, %v3759_v16 }
 0x2e6   : > { %v3285_v24 = vsel %vm421_vm0, %v3269_v0, 0  ;;  %v3116_v44 = vadd.f32 %v3108_v49, %v3087_v6  ;;  %v3223_v0 = vmul.f32 %v5430_v37, %v3761_v1  ;;  %v3768_v1 = vld [vmem:[%s4041_s26 + $0x120] sm:$0xff]  ;;  %v3076_v42 = vmul.f32 %v5356_v26, %v3063_v39 }
 0x2e7   : > { %3894 = vmatpush3.bf16.xpose.msra.mxu1 %v3285_v24  ;;  %v3144_v17 = vadd.f32 %v3136_v51, %v3115_v62  ;;  %v3268_v60 = vpack.c.bf16 %v3263_v59, %v3262_v34  ;;  %v3019_v24 = vmul.f32 %v5325_v38, %v3006_v35  ;;  %v3077_v7 = vmul.f32 %v5356_v26, %v3064_v25  ;;  %v3787_v26 = vld [vmem:[%s4041_s26 + $0x131] sm:$0xff] }
 0x2e8   : > { %3895 = vmatprep.subr.bf16.mxu1 %v3959_v29  ;;  %v3145_v5 = vadd.f32 %v3137_v28, %v3116_v44  ;;  %v3253_v31 = vmul.f32 %v5443_v46, %v5417_v63  ;;  %v3055_v47 = vadd.f32 %v3047_v56, %v3026_v8  ;;  %v3105_v61 = vmul.f32 %v5366_v9, %v3768_v1  ;;  %v2506_v8 = vld [vmem:[#allocation5] sm:$0xff] }
 0x2e9   : > { %v3173_v23 = vadd.f32 %v3165_v53, %v3144_v17  ;;  %v3282_v32 = vsel %vm421_vm0, %v3268_v60, 0  ;;  %v3027_v38 = vadd.f32 %v5330_v58, %v3019_v24  ;;  %v3106_v4 = vmul.f32 %v5366_v9, %v3769_v3 }
 0x2ea   : > { %v3174_v27 = vadd.f32 %v3166_v11, %v3145_v5  ;;  %v3084_v55 = vadd.f32 %v3076_v42, %v3055_v47  ;;  %v3134_v58 = vmul.f32 %v5373_v50, %v3777_v19  ;;  %v3135_v28 = vmul.f32 %v5373_v50, %v3778_v48  ;;  %v2419_v50 = vld [vmem:[#allocation3] sm:$0xff] }
 0x2eb   : > { %v3202_v13 = vadd.f32 %v3194_v36, %v3173_v23  ;;  %v3056_v54 = vadd.f32 %v3048_v15, %v3027_v38  ;;  %v3163_v34 = vmul.f32 %v5394_v41, %v3786_v52  ;;  %v3164_v53 = vmul.f32 %v5394_v41, %v3787_v26  ;;  %v5584_v42 = vld [vmem:[%s6003_s3 + $0x3] ss:$0 sm:$0xff] }
 0x2ec   : > { %v3203_v12 = vadd.f32 %v3195_v14, %v3174_v27  ;;  %v3113_v63 = vadd.f32 %v3105_v61, %v3084_v55  ;;  %v3192_v9 = vmul.f32 %v5410_v45, %v3006_v35  ;;  %v3193_v36 = vmul.f32 %v5410_v45, %v5451_v40  ;;  %v2535_v61 = vld [vmem:[#allocation6] sm:$0xff]  ;;  %v2564_v26 = vld [vmem:[#allocation5 + $0x1] sm:$0xff] }
 0x2ed   : > { %v3231_v10 = vadd.f32 %v3223_v0, %v3202_v13  ;;  %v3085_v51 = vadd.f32 %v3077_v7, %v3056_v54  ;;  %v3221_v41 = vmul.f32 %v5430_v37, %v3759_v16  ;;  %v3222_v14 = vmul.f32 %v5430_v37, %v5463_v57  ;;  %v5564_v16 = vld [vmem:[%s6004_s4] ss:$0 sm:$0xff]  ;;  %v5569_v37 = vld [vmem:[%s6003_s3 + $0x1] ss:$0 sm:$0xff] }
 0x2ee   : > { %v3232_v21 = vadd.f32 %v3224_v30, %v3203_v12  ;;  %v3142_v33 = vadd.f32 %v3134_v58, %v3113_v63  ;;  %v3250_v39 = vmul.f32 %v5443_v46, %v3064_v25  ;;  %v2432_v45 = vmul.f32 %v5550_v2, %v2419_v50  ;;  %v2448_v30 = vld [vmem:[#allocation4] sm:$0xff]  ;;  %v5613_v63 = vld [vmem:[#allocation4 + $0x30] sm:$0xff] }
 0x2ef   : > { %3896 = vmatpush3.bf16.xpose.msra.mxu1 %v3282_v32  ;;  %v3260_v49 = vadd.f32 %v3252_v20, %v3231_v10  ;;  %v3114_v62 = vadd.f32 %v3106_v4, %v3085_v51  ;;  %v3251_v60 = vmul.f32 %v5443_v46, %v5473_v18  ;;  %v2461_v5 = vmul.f32 %v5569_v37, %v2448_v30  ;;  %v2477_v46 = vld [vmem:[#allocation3 + $0x1] sm:$0xff] }
 0x2f0   : > { %3897 = vmatprep.subr.bf16.mxu1 %v3959_v29  ;;  %v3261_v6 = vadd.f32 %v3253_v31, %v3232_v21  ;;  %v3171_v44 = vadd.f32 %v3163_v34, %v3142_v33  ;;  %v2440_v25 = vadd.f32 %v5564_v16, %v2432_v45  ;;  %v5576_v18 = vld [vmem:[%s6003_s3 + $0x2] ss:$0 sm:$0xff]  ;;  %v2519_v13 = vmul.f32 %v5584_v42, %v2506_v8  ;;  %v5598_v4 = vld [vmem:[%s6003_s3 + $0x4] ss:$0 sm:$0xff]  ;;  %v5609_v51 = vld [vmem:[%s6003_s3 + $0x5] ss:$0 sm:$0xff] }
 0x2f1   : > { %v3143_v11 = vadd.f32 %v3135_v28, %v3114_v62  ;;  %v2490_v1 = vmul.f32 %v5576_v18, %v2477_v46  ;;  %v3271_v31 = vld [vmem:[%s6010_s10] sm:$0xf]  ;;  %v2548_v58 = vmul.f32 %v5598_v4, %v2535_v61  ;;  %v2577_v28 = vmul.f32 %v5609_v51, %v2564_v26  ;;  %v5631_v50 = vld [vmem:[%s6003_s3 + $0x7] ss:$0 sm:$0xff] }
 0x2f2   : > { %v3267_v59 = vpack.c.bf16 %v3261_v6, %v3260_v49  ;;  %v3200_v0 = vadd.f32 %v3192_v9, %v3171_v44  ;;  %v2469_v56 = vadd.f32 %v2461_v5, %v2440_v25  ;;  %v2449_v6 = vld [vmem:[#allocation4 + $0x10] sm:$0xff] }
 0x2f3   : > { %v3172_v17 = vadd.f32 %v3164_v53, %v3143_v11  ;;  %v5624_v9 = vld [vmem:[%s6003_s3 + $0x6] ss:$0 sm:$0xff]  ;;  %v2509_v11 = vld [vmem:[#allocation5 + $0x30] sm:$0xff] }
 0x2f4   : > { %v3279_v35 = vsel %vm421_vm0, %v3267_v59, 0  ;;  %v3229_v57 = vadd.f32 %v3221_v41, %v3200_v0  ;;  %v2498_v27 = vadd.f32 %v2490_v1, %v2469_v56  ;;  %v2635_v0 = vmul.f32 %v5631_v50, %v2449_v6  ;;  %v2536_v8 = vld [vmem:[#allocation6 + $0x10] sm:$0xff] }
 0x2f5   : > { %v3201_v40 = vadd.f32 %v3193_v36, %v3172_v17  ;;  %v2464_v36 = vmul.f32 %v5569_v37, %v5613_v63 }
 0x2f6   : > { %v3258_v43 = vadd.f32 %v3250_v39, %v3229_v57  ;;  %v2527_v10 = vadd.f32 %v2519_v13, %v2498_v27  ;;  %v2538_v39 = vld [vmem:[#allocation6 + $0x30] sm:$0xff]  ;;  %v2522_v57 = vmul.f32 %v5584_v42, %v2509_v11 }
 0x2f7   : > { %3898 = vmatpush3.bf16.xpose.msra.mxu1 %v3279_v35  ;;  %v3230_v20 = vadd.f32 %v3222_v14, %v3201_v40  ;;  %v2462_v14 = vmul.f32 %v5569_v37, %v2449_v6 }
 0x2f8   : > { %3899 = vmatprep.subr.bf16.mxu1 %v3959_v29  ;;  %v2556_v49 = vadd.f32 %v2548_v58, %v2527_v10  ;;  %v2508_v10 = vld [vmem:[#allocation5 + $0x20] sm:$0xff]  ;;  %v2452_v58 = vld [vmem:[#allocation4 + $0x40] sm:$0xff] }
 0x2f9   : > { %v3259_v23 = vadd.f32 %v3251_v60, %v3230_v20  ;;  %v2507_v20 = vld [vmem:[#allocation5 + $0x10] sm:$0xff] }
 0x2fa   : > { %v2585_v53 = vadd.f32 %v2577_v28, %v2556_v49  ;;  %v2520_v27 = vmul.f32 %v5584_v42, %v2507_v20  ;;  %v2537_v49 = vld [vmem:[#allocation6 + $0x20] sm:$0xff] }
 0x2fb   : > { %v3266_v24 = vpack.c.bf16 %v3259_v23, %v3258_v43  ;;  %v5645_v43 = vld [vmem:[%s6003_s3 + $0x8] ss:$0 sm:$0xff]  ;;  %v2450_v23 = vld [vmem:[#allocation4 + $0x20] sm:$0xff] }
 0x2fd   : > { %v3276_v32 = vsel %vm421_vm0, %v3266_v24, 0 }
 0x2ff   : > { %3900 = vmatpush3.bf16.xpose.msra.mxu1 %v3276_v32  ;;  %v2551_v32 = vmul.f32 %v5598_v4, %v2538_v39 }
 0x300   : > { %3905 = vmatprep.subr.bf16.mxu1 %v3959_v29 }
 0x306   : > { %3902 = vmatmul.mubr.msk.bf16.vlgmr.msra.gmra.mxu1 %vm421_vm0, %v3271_v31  ;;  %v2565_v31 = vld [vmem:[#allocation5 + $0x11] sm:$0xff] }
 0x307   : > { %3913 = vmatprep.mubr.msk.bf16.mxu1 %vm3960_vm14, %v3959_v29  ;;  %v2578_v28 = vmul.f32 %v5609_v51, %v2565_v31 }
 0x30e   : > { %v3887_v15 = vpop.f32.mrf.mxu0 }
 0x30f   : > { %v2299_v3 = vadd.f32 %v5313_v22, %v3887_v15  ;;  %v2567_v15 = vld [vmem:[#allocation5 + $0x31] sm:$0xff] }
 0x310   : > { %v2290_v38 = vpop.f32.mrf.mxu0 }
 0x311   : > { %v2347_v7 = vmax.f32 %v2299_v3, 0.0  ;;  %v2291_v19 = vadd.f32 %v5313_v22, %v2290_v38 }
 0x312   : > { %v3888_v47 = vpop.f32.mrf.mxu0 }
 0x313   : > { %2405 = vst.msk [vmem:[#allocation3 + $0x31] sm:$0xff] %vm2353_vm11, %v2347_v7  ;;  %v2345_v48 = vmax.f32 %v2291_v19, 0.0  ;;  %v2302_v12 = vadd.f32 %v5313_v22, %v3888_v47  ;;  %v2463_v47 = vmul.f32 %v5569_v37, %v2450_v23 }
 0x314   : > { %v2293_v54 = vpop.f32.mrf.mxu0 }
 0x315   : > { %2403 = vst.msk [vmem:[#allocation3 + $0x11] sm:$0xff] %vm2353_vm11, %v2345_v48  ;;  %v2348_v52 = vmax.f32 %v2302_v12, 0.0  ;;  %v2294_v55 = vadd.f32 %v5313_v22, %v2293_v54  ;;  %v2549_v12 = vmul.f32 %v5598_v4, %v2536_v8  ;;  %v2580_v54 = vmul.f32 %v5609_v51, %v2567_v15  ;;  %v3382_v8 = vld [vmem:[%s6011_s11] sm:$0xff] }
 0x317   : > { %2406 = vst.msk [vmem:[#allocation3 + $0x41] sm:$0xff] %vm2353_vm11, %v2348_v52  ;;  %v2346_v21 = vmax.f32 %v2294_v55, 0.0 }
 0x319   : > { %2404 = vst.msk [vmem:[#allocation3 + $0x21] sm:$0xff] %vm2353_vm11, %v2346_v21 }
 0x31a   : > { %v5615_v34 = vld [vmem:[#allocation3 + $0x30] sm:$0xff] }
 0x31b   : > { %v2435_v62 = vmul.f32 %v5550_v2, %v5615_v34  ;;  %v5619_v33 = vld [vmem:[#allocation3 + $0x31] sm:$0xff] }
 0x31c   : > { %v2420_v59 = vld [vmem:[#allocation3 + $0x10] sm:$0xff]  ;;  %v2493_v40 = vmul.f32 %v5576_v18, %v5619_v33  ;;  %v2666_v15 = vmul.f32 %v5645_v43, %v5619_v33  ;;  %v2510_v33 = vld [vmem:[#allocation5 + $0x40] sm:$0xff] }
 0x31d   : > { %v2443_v44 = vadd.f32 %v5564_v16, %v2435_v62  ;;  %v2433_v41 = vmul.f32 %v5550_v2, %v2420_v59  ;;  %v2478_v35 = vld [vmem:[#allocation3 + $0x11] sm:$0xff]  ;;  %v2606_v17 = vmul.f32 %v5624_v9, %v2420_v59  ;;  %v2521_v59 = vmul.f32 %v5584_v42, %v2508_v10 }
 0x31e   : > { %v2491_v25 = vmul.f32 %v5576_v18, %v2478_v35  ;;  %v2664_v1 = vmul.f32 %v5645_v43, %v2478_v35  ;;  %v2423_v61 = vld [vmem:[#allocation3 + $0x40] sm:$0xff] }
 0x31f   : > { %v2472_v45 = vadd.f32 %v2464_v36, %v2443_v44  ;;  %v2441_v60 = vadd.f32 %v5564_v16, %v2433_v41  ;;  %v2614_v30 = vadd.f32 %v2606_v17, %v2585_v53  ;;  %v2609_v62 = vmul.f32 %v5624_v9, %v2423_v61  ;;  %v2481_v11 = vld [vmem:[#allocation3 + $0x41] sm:$0xff] }
 0x320   : > { %v2421_v5 = vld [vmem:[#allocation3 + $0x20] sm:$0xff]  ;;  %v2638_v41 = vmul.f32 %v5631_v50, %v2452_v58  ;;  %v2494_v31 = vmul.f32 %v5576_v18, %v2481_v11 }
 0x321   : > { %v2501_v46 = vadd.f32 %v2493_v40, %v2472_v45  ;;  %v2470_v24 = vadd.f32 %v2462_v14, %v2441_v60  ;;  %v2643_v56 = vadd.f32 %v2635_v0, %v2614_v30  ;;  %v2434_v3 = vmul.f32 %v5550_v2, %v2421_v5  ;;  %v2479_v19 = vld [vmem:[#allocation3 + $0x21] sm:$0xff] }
 0x322   : > { %v2492_v21 = vmul.f32 %v5576_v18, %v2479_v19  ;;  %v2566_v44 = vld [vmem:[#allocation5 + $0x21] sm:$0xff]  ;;  %v2607_v14 = vmul.f32 %v5624_v9, %v2421_v5  ;;  %v2550_v0 = vmul.f32 %v5598_v4, %v2537_v49  ;;  %v2636_v45 = vmul.f32 %v5631_v50, %v2450_v23 }
 0x323   : > { %v2530_v13 = vadd.f32 %v2522_v57, %v2501_v46  ;;  %v2499_v38 = vadd.f32 %v2491_v25, %v2470_v24  ;;  %v2672_v7 = vadd.f32 %v2664_v1, %v2643_v56  ;;  %v2442_v48 = vadd.f32 %v5564_v16, %v2434_v3 }
 0x324   : > { %v2667_v60 = vmul.f32 %v5645_v43, %v2481_v11  ;;  %v2579_v57 = vmul.f32 %v5609_v51, %v2566_v44  ;;  %v2665_v24 = vmul.f32 %v5645_v43, %v2479_v19  ;;  %v2608_v56 = vmul.f32 %v5624_v9, %v5615_v34  ;;  %v5693_v11 = vld [vmem:[#allocation4 + $0x70] sm:$0xff] }
 0x325   : > { %v2528_v52 = vadd.f32 %v2520_v27, %v2499_v38  ;;  %2707 = vst.msk [vmem:[#allocation7 + $0x11] sm:$0xff] %vm2353_vm11, %v2672_v7  ;;  %v2559_v55 = vadd.f32 %v2551_v32, %v2530_v13  ;;  %v2471_v26 = vadd.f32 %v2463_v47, %v2442_v48  ;;  %v2637_v23 = vmul.f32 %v5631_v50, %v5613_v63 }
 0x326   : > { %v3961_v27 = vmov 0   ;;  %v2436_v13 = vmul.f32 %v5550_v2, %v2423_v61  ;;  %v2465_v38 = vmul.f32 %v5569_v37, %v2452_v58 }
 0x327   : > { %v2588_v6 = vadd.f32 %v2580_v54, %v2559_v55  ;;  %v2557_v53 = vadd.f32 %v2549_v12, %v2528_v52  ;;  %v2500_v36 = vadd.f32 %v2492_v21, %v2471_v26  ;;  %3938 = vset.pattern.permute.xlu0 %v3961_v27  ;;  %v2523_v55 = vmul.f32 %v5584_v42, %v2510_v33  ;;  %v2539_v26 = vld [vmem:[#allocation6 + $0x40] sm:$0xff] }
 0x328   : > { %3385 = vperm.xlu0 %3938, %v3382_v8   ;;  %v2444_v63 = vadd.f32 %v5564_v16, %v2436_v13  ;;  %v2571_v13 = vld [vmem:[#allocation5 + $0x71] sm:$0xff] }
 0x329   : > { %v2617_v35 = vadd.f32 %v2609_v62, %v2588_v6  ;;  %v2586_v17 = vadd.f32 %v2578_v28, %v2557_v53  ;;  %v2529_v39 = vadd.f32 %v2521_v59, %v2500_v36  ;;  %v2552_v62 = vmul.f32 %v5598_v4, %v2539_v26  ;;  %v2568_v59 = vld [vmem:[#allocation5 + $0x41] sm:$0xff] }
 0x32a   : > { %v2473_v7 = vadd.f32 %v2465_v38, %v2444_v63  ;;  %v2584_v26 = vmul.f32 %v5609_v51, %v2571_v13 }
 0x32b   : > { %v2646_v40 = vadd.f32 %v2638_v41, %v2617_v35  ;;  %v2615_v30 = vadd.f32 %v2607_v14, %v2586_v17  ;;  %v2558_v20 = vadd.f32 %v2550_v0, %v2529_v39  ;;  %v2581_v41 = vmul.f32 %v5609_v51, %v2568_v59  ;;  %v2453_v35 = vld [vmem:[#allocation4 + $0x50] sm:$0xff]  ;;  %v2513_v39 = vld [vmem:[#allocation5 + $0x70] sm:$0xff] }
 0x32c   : > { %v2502_v12 = vadd.f32 %v2494_v31, %v2473_v7  ;;  %v2526_v8 = vmul.f32 %v5584_v42, %v2513_v39 }
 0x32d   : > { %v2675_v25 = vadd.f32 %v2667_v60, %v2646_v40  ;;  %v2644_v46 = vadd.f32 %v2636_v45, %v2615_v30  ;;  %v2587_v5 = vadd.f32 %v2579_v57, %v2558_v20  ;;  %v2466_v20 = vmul.f32 %v5569_v37, %v2453_v35 }
 0x32e   : > { %v2531_v49 = vadd.f32 %v2523_v55, %v2502_v12  ;;  %v2512_v12 = vld [vmem:[#allocation5 + $0x60] sm:$0xff] }
 0x32f   : > { %2710 = vst.msk [vmem:[#allocation7 + $0x41] sm:$0xff] %vm2353_vm11, %v2675_v25  ;;  %v2673_v1 = vadd.f32 %v2665_v24, %v2644_v46  ;;  %v2616_v32 = vadd.f32 %v2608_v56, %v2587_v5  ;;  %v2639_v25 = vmul.f32 %v5631_v50, %v2453_v35  ;;  %v2542_v46 = vld [vmem:[#allocation6 + $0x70] sm:$0xff]  ;;  %v2511_v24 = vld [vmem:[#allocation5 + $0x50] sm:$0xff] }
 0x330   : > { %v2560_v36 = vadd.f32 %v2552_v62, %v2531_v49  ;;  %v2454_v56 = vld [vmem:[#allocation4 + $0x60] sm:$0xff]  ;;  %v2555_v31 = vmul.f32 %v5598_v4, %v2542_v46 }
 0x331   : > { %2708 = vst.msk [vmem:[#allocation7 + $0x21] sm:$0xff] %vm2353_vm11, %v2673_v1  ;;  %v2645_v3 = vadd.f32 %v2637_v23, %v2616_v32  ;;  %v2467_v33 = vmul.f32 %v5569_v37, %v2454_v56  ;;  %v2629_v49 = vld [vmem:[#allocation4 + $0x80] sm:$0xff] }
 0x332   : > { %v2589_v30 = vadd.f32 %v2581_v41, %v2560_v36  ;;  %v2570_v36 = vld [vmem:[#allocation5 + $0x61] sm:$0xff] }
 0x333   : > { %v2674_v34 = vadd.f32 %v2666_v15, %v2645_v3 }
 0x335   : > { %2709 = vst.msk [vmem:[#allocation7 + $0x31] sm:$0xff] %vm2353_vm11, %v2674_v34  ;;  %v2540_v34 = vld [vmem:[#allocation6 + $0x50] sm:$0xff] }
 0x34a   : > { %v3891_v19 = vpop.f32.mrf.mxu0 }
 0x34b   : > { %v2315_v47 = vadd.f32 %v5313_v22, %v3891_v19 }
 0x34c   : > { %v2306_v48 = vpop.f32.mrf.mxu0 }
 0x34d   : > { %v2351_v10 = vmax.f32 %v2315_v47, 0.0  ;;  %v2307_v54 = vadd.f32 %v5313_v22, %v2306_v48  ;;  %v2524_v47 = vmul.f32 %v5584_v42, %v2511_v24 }
 0x34e   : > { %v3892_v52 = vpop.f32.mrf.mxu0 }
 0x34f   : > { %2409 = vst.msk [vmem:[#allocation3 + $0x71] sm:$0xff] %vm2353_vm11, %v2351_v10  ;;  %v2349_v61 = vmax.f32 %v2307_v54, 0.0  ;;  %v2318_v58 = vadd.f32 %v5313_v22, %v3892_v52  ;;  %v2569_v10 = vld [vmem:[#allocation5 + $0x51] sm:$0xff] }
 0x350   : > { %v2309_v21 = vpop.f32.mrf.mxu0  ;;  %v2582_v59 = vmul.f32 %v5609_v51, %v2569_v10 }
 0x351   : > { %2407 = vst.msk [vmem:[#allocation3 + $0x51] sm:$0xff] %vm2353_vm11, %v2349_v61  ;;  %v2352_v28 = vmax.f32 %v2318_v58, 0.0  ;;  %v2310_v6 = vadd.f32 %v5313_v22, %v2309_v21  ;;  %v2468_v22 = vmul.f32 %v5569_v37, %v5693_v11  ;;  %v2553_v58 = vmul.f32 %v5598_v4, %v2540_v34 }
 0x353   : > { %2410 = vst.msk [vmem:[#allocation3 + $0x81] sm:$0xff] %vm2353_vm11, %v2352_v28  ;;  %v2350_v53 = vmax.f32 %v2310_v6, 0.0 }
 0x355   : > { %2408 = vst.msk [vmem:[#allocation3 + $0x61] sm:$0xff] %vm2353_vm11, %v2350_v53  ;;  %v2525_v53 = vmul.f32 %v5584_v42, %v2512_v12 }
 0x356   : > { %v5696_v44 = vld [vmem:[#allocation3 + $0x70] sm:$0xff] }
 0x357   : > { %v2439_v17 = vmul.f32 %v5550_v2, %v5696_v44  ;;  %v5703_v14 = vld [vmem:[#allocation3 + $0x71] sm:$0xff] }
 0x358   : > { %v2424_v0 = vld [vmem:[#allocation3 + $0x50] sm:$0xff]  ;;  %v2497_v1 = vmul.f32 %v5576_v18, %v5703_v14 }
 0x359   : > { %v2447_v45 = vadd.f32 %v5564_v16, %v2439_v17  ;;  %v2437_v40 = vmul.f32 %v5550_v2, %v2424_v0  ;;  %v2482_v60 = vld [vmem:[#allocation3 + $0x51] sm:$0xff]  ;;  %v2610_v57 = vmul.f32 %v5624_v9, %v2424_v0  ;;  %v2723_v0 = vld [vmem:[#allocation7] sm:$0xff] }
 0x35a   : > { %v2495_v15 = vmul.f32 %v5576_v18, %v2482_v60  ;;  %v2668_v3 = vmul.f32 %v5645_v43, %v2482_v60  ;;  %v2600_v21 = vld [vmem:[#allocation3 + $0x80] sm:$0xff] }
 0x35b   : > { %v2476_v5 = vadd.f32 %v2468_v22, %v2447_v45  ;;  %v2445_v23 = vadd.f32 %v5564_v16, %v2437_v40  ;;  %v2618_v32 = vadd.f32 %v2610_v57, %v2589_v30  ;;  %v2613_v41 = vmul.f32 %v5624_v9, %v2600_v21  ;;  %v5731_v22 = vld [vmem:[%s6005_s5] ss:$0 sm:$0xff]  ;;  %v2658_v45 = vld [vmem:[#allocation3 + $0x81] sm:$0xff] }
 0x35c   : > { %v2425_v27 = vld [vmem:[#allocation3 + $0x60] sm:$0xff]  ;;  %v2583_v57 = vmul.f32 %v5609_v51, %v2570_v36  ;;  %v2671_v24 = vmul.f32 %v5645_v43, %v2658_v45 }
 0x35d   : > { %v2505_v63 = vadd.f32 %v2497_v1, %v2476_v5  ;;  %v2474_v38 = vadd.f32 %v2466_v20, %v2445_v23  ;;  %v2647_v7 = vadd.f32 %v2639_v25, %v2618_v32  ;;  %v2438_v19 = vmul.f32 %v5550_v2, %v2425_v27  ;;  %v2483_v48 = vld [vmem:[#allocation3 + $0x61] sm:$0xff]  ;;  %v2541_v2 = vld [vmem:[#allocation6 + $0x60] sm:$0xff] }
 0x35e   : > { %v2496_v62 = vmul.f32 %v5576_v18, %v2483_v48  ;;  %v2554_v39 = vmul.f32 %v5598_v4, %v2541_v2  ;;  %v2642_v18 = vmul.f32 %v5631_v50, %v2629_v49  ;;  %v2611_v30 = vmul.f32 %v5624_v9, %v2425_v27  ;;  %v5743_v4 = vld [vmem:[%s6006_s6] ss:$0 sm:$0xff]  ;;  %v5748_v23 = vld [vmem:[%s6005_s5 + $0x1] ss:$0 sm:$0xff]  ;;  %v5796_v49 = vld [vmem:[%s6005_s5 + $0x6] ss:$0 sm:$0xff] }
 0x35f   : > { %v2534_v54 = vadd.f32 %v2526_v8, %v2505_v63  ;;  %v2503_v52 = vadd.f32 %v2495_v15, %v2474_v38  ;;  %v2676_v55 = vadd.f32 %v2668_v3, %v2647_v7  ;;  %v2446_v61 = vadd.f32 %v5564_v16, %v2438_v19  ;;  %v2752_v51 = vld [vmem:[#allocation7 + $0x1] sm:$0xff] }
 0x360   : > { %v2640_v20 = vmul.f32 %v5631_v50, %v2454_v56  ;;  %v2736_v25 = vmul.f32 %v5731_v22, %v2723_v0  ;;  %v2612_v56 = vmul.f32 %v5624_v9, %v5696_v44  ;;  %v2669_v27 = vmul.f32 %v5645_v43, %v2483_v48  ;;  %v5763_v9 = vld [vmem:[%s6005_s5 + $0x2] ss:$0 sm:$0xff] }
 0x361   : > { %v2532_v28 = vadd.f32 %v2524_v47, %v2503_v52  ;;  %2711 = vst.msk [vmem:[#allocation7 + $0x51] sm:$0xff] %vm2353_vm11, %v2676_v55  ;;  %v2563_v6 = vadd.f32 %v2555_v31, %v2534_v54  ;;  %v2475_v37 = vadd.f32 %v2467_v33, %v2446_v61  ;;  %v2765_v13 = vmul.f32 %v5748_v23, %v2752_v51  ;;  %v5765_v44 = vld [vmem:[#allocation7 + $0x40] sm:$0xff]  ;;  %v5769_v47 = vld [vmem:[#allocation7 + $0x10] sm:$0xff] }
 0x362   : > { %v2744_v34 = vadd.f32 %v5743_v4, %v2736_v25  ;;  %v2641_v63 = vmul.f32 %v5631_v50, %v5693_v11  ;;  %v2781_v31 = vld [vmem:[#allocation7 + $0x2] sm:$0xff]  ;;  %v2670_v50 = vmul.f32 %v5645_v43, %v5703_v14  ;;  %v2740_v48 = vmul.f32 %v5731_v22, %v5765_v44  ;;  %v5782_v55 = vld [vmem:[#allocation7 + $0x30] sm:$0xff] }
 0x363   : > { %v2592_v16 = vadd.f32 %v2584_v26, %v2563_v6  ;;  %v2504_v35 = vadd.f32 %v2496_v62, %v2475_v37  ;;  %v2561_v17 = vadd.f32 %v2553_v58, %v2532_v28  ;;  %v5774_v33 = vld [vmem:[#allocation7 + $0x20] sm:$0xff]  ;;  %v2794_v10 = vmul.f32 %v5763_v9, %v2781_v31  ;;  %v2905_v58 = vld [vmem:[#allocation7 + $0x90] sm:$0xff] }
 0x364   : > { %v2737_v43 = vmul.f32 %v5731_v22, %v5769_v47  ;;  %v2773_v14 = vadd.f32 %v2765_v13, %v2744_v34  ;;  %v2738_v61 = vmul.f32 %v5731_v22, %v5774_v33  ;;  %v2934_v26 = vld [vmem:[#allocation7 + $0x91] sm:$0xff]  ;;  %v5789_v21 = vld [vmem:[#allocation7 + $0x41] sm:$0xff]  ;;  %v2748_v28 = vadd.f32 %v5743_v4, %v2740_v48 }
 0x365   : > { %v2621_v42 = vadd.f32 %v2613_v41, %v2592_v16  ;;  %v2533_v40 = vadd.f32 %v2525_v53, %v2504_v35  ;;  %v2590_v60 = vadd.f32 %v2582_v59, %v2561_v17  ;;  %v2739_v37 = vmul.f32 %v5731_v22, %v5782_v55  ;;  %v5803_v62 = vld [vmem:[#allocation7 + $0x11] sm:$0xff]  ;;  %v5808_v53 = vld [vmem:[%s6005_s5 + $0x7] ss:$0 sm:$0xff] }
 0x366   : > { %v2963_v59 = vld [vmem:[#allocation7 + $0x92] sm:$0xff]  ;;  %v5810_v16 = vld [vmem:[#allocation7 + $0x21] sm:$0xff]  ;;  %v2745_v41 = vadd.f32 %v5743_v4, %v2737_v43  ;;  %v5813_v35 = vadd.f32 %v2794_v10, %v2773_v14  ;;  %v5828_v45 = vmul.f32 %v5808_v53, %v2934_v26 }
 0x367   : > { %v2650_v46 = vadd.f32 %v2642_v18, %v2621_v42  ;;  %v2562_v5 = vadd.f32 %v2554_v39, %v2533_v40  ;;  %v2619_v1 = vadd.f32 %v2611_v30, %v2590_v60  ;;  %v5822_v39 = vld [vmem:[%s6005_s5 + $0x3] ss:$0 sm:$0xff]  ;;  %v5825_v18 = vmul.f32 %v5796_v49, %v2905_v58  ;;  %v5838_v30 = vld [vmem:[%s6005_s5 + $0x8] ss:$0 sm:$0xff]  ;;  %v5883_v14 = vld [vmem:[#allocation7 + $0x32] sm:$0xff] }
 0x368   : > { %v5752_v32 = vld [vmem:[#allocation7 + $0x50] sm:$0xff]  ;;  %v2769_v42 = vmul.f32 %v5748_v23, %v5789_v21  ;;  %v2746_v40 = vadd.f32 %v5743_v4, %v2738_v61  ;;  %v5861_v34 = vld [vmem:[#allocation7 + $0x22] sm:$0xff] }
 0x369   : > { %v2679_v8 = vadd.f32 %v2671_v24, %v2650_v46  ;;  %v2591_v15 = vadd.f32 %v2583_v57, %v2562_v5  ;;  %v2648_v3 = vadd.f32 %v2640_v20, %v2619_v1  ;;  %v2741_v19 = vmul.f32 %v5731_v22, %v5752_v32  ;;  %v5778_v12 = vld [vmem:[#allocation7 + $0x51] sm:$0xff]  ;;  %v5840_v57 = vld [vmem:[#allocation7 + $0x42] sm:$0xff] }
 0x36a   : > { %v2770_v2 = vmul.f32 %v5748_v23, %v5778_v12  ;;  %v5799_v6 = vld [vmem:[#allocation7 + $0x52] sm:$0xff]  ;;  %v2766_v24 = vmul.f32 %v5748_v23, %v5803_v62  ;;  %v5853_v1 = vmul.f32 %v5838_v30, %v2963_v59  ;;  %v2777_v51 = vadd.f32 %v2769_v42, %v2748_v28 }
 0x36b   : > { %2714 = vst.msk [vmem:[#allocation7 + $0x81] sm:$0xff] %vm2353_vm11, %v2679_v8  ;;  %v2620_v38 = vadd.f32 %v2612_v56, %v2591_v15  ;;  %v2677_v7 = vadd.f32 %v2669_v27, %v2648_v3  ;;  %v2749_v52 = vadd.f32 %v5743_v4, %v2741_v19  ;;  %v2799_v20 = vmul.f32 %v5763_v9, %v5799_v6  ;;  %v5846_v46 = vld [vmem:[#allocation7 + $0x31] sm:$0xff] }
 0x36c   : > { %v2747_v56 = vadd.f32 %v5743_v4, %v2739_v37  ;;  %v2767_v8 = vmul.f32 %v5748_v23, %v5810_v16  ;;  %v5863_v13 = vadd.f32 %v2766_v24, %v2745_v41  ;;  %v2827_v19 = vmul.f32 %v5822_v39, %v5752_v32 }
 0x36d   : > { %v2649_v11 = vadd.f32 %v2641_v63, %v2620_v38  ;;  %2712 = vst.msk [vmem:[#allocation7 + $0x61] sm:$0xff] %vm2353_vm11, %v2677_v7  ;;  %v2778_v36 = vadd.f32 %v2770_v2, %v2749_v52  ;;  %v2798_v7 = vmul.f32 %v5763_v9, %v5840_v57  ;;  %v2768_v31 = vmul.f32 %v5748_v23, %v5846_v46  ;;  %v5881_v52 = vld [vmem:[%s6005_s5 + $0x4] ss:$0 sm:$0xff] }
 0x36f   : > { %v2678_v54 = vadd.f32 %v2670_v50, %v2649_v11  ;;  %v2807_v27 = vadd.f32 %v2799_v20, %v2778_v36  ;;  %v2775_v50 = vadd.f32 %v2767_v8, %v2746_v40  ;;  %v2806_v61 = vadd.f32 %v2798_v7, %v2777_v51 }
 0x370   : > { %v2776_v26 = vadd.f32 %v2768_v31, %v2747_v56  ;;  %v2797_v40 = vmul.f32 %v5763_v9, %v5883_v14  ;;  %v5903_v56 = vld [vmem:[%s6005_s5 + $0x5] ss:$0 sm:$0xff]  ;;  %v2856_v8 = vmul.f32 %v5881_v52, %v5778_v12 }
 0x371   : > { %2713 = vst.msk [vmem:[#allocation7 + $0x71] sm:$0xff] %vm2353_vm11, %v2678_v54  ;;  %v2835_v42 = vadd.f32 %v2827_v19, %v2806_v61 }
 0x372   : > { %v2817_v59 = vld [vmem:[#allocation7 + $0x80] sm:$0xff] }
 0x373   : > { %v2846_v24 = vld [vmem:[#allocation7 + $0x81] sm:$0xff] }
 0x374   : > { %v5815_v17 = vld [vmem:[#allocation7 + $0x60] sm:$0xff] }
 0x375   : > { %v5817_v0 = vld [vmem:[#allocation7 + $0x61] sm:$0xff]  ;;  %v2742_v60 = vmul.f32 %v5731_v22, %v5815_v17  ;;  %v2828_v25 = vmul.f32 %v5822_v39, %v5815_v17 }
 0x376   : > { %v5850_v5 = vld [vmem:[#allocation7 + $0x62] sm:$0xff]  ;;  %v2771_v3 = vmul.f32 %v5748_v23, %v5817_v0  ;;  %v2857_v58 = vmul.f32 %v5881_v52, %v5817_v0 }
 0x377   : > { %v2750_v15 = vadd.f32 %v5743_v4, %v2742_v60  ;;  %v2800_v54 = vmul.f32 %v5763_v9, %v5850_v5  ;;  %v2836_v43 = vadd.f32 %v2828_v25, %v2807_v27  ;;  %v2875_v19 = vld [vmem:[#allocation7 + $0x82] sm:$0xff] }
 0x378   : > { %v2730_v63 = vld [vmem:[#allocation7 + $0x70] sm:$0xff] }
 0x379   : > { %v5865_v38 = vld [vmem:[#allocation7 + $0x71] sm:$0xff]  ;;  %v2743_v11 = vmul.f32 %v5731_v22, %v2730_v63  ;;  %v2779_v48 = vadd.f32 %v2771_v3, %v2750_v15  ;;  %v2796_v22 = vmul.f32 %v5763_v9, %v5861_v34  ;;  %v2829_v36 = vmul.f32 %v5822_v39, %v2730_v63 }
 0x37a   : > { %v5874_v10 = vld [vmem:[#allocation7 + $0x72] sm:$0xff]  ;;  %v2772_v28 = vmul.f32 %v5748_v23, %v5865_v38  ;;  %v2865_v51 = vadd.f32 %v2857_v58, %v2836_v43  ;;  %v2830_v23 = vmul.f32 %v5822_v39, %v2817_v59  ;;  %v2805_v15 = vadd.f32 %v2797_v40, %v2776_v26 }
 0x37b   : > { %v2751_v2 = vadd.f32 %v5743_v4, %v2743_v11  ;;  %v2808_v37 = vadd.f32 %v2800_v54, %v2779_v48  ;;  %v2801_v41 = vmul.f32 %v5763_v9, %v5874_v10  ;;  %v2804_v60 = vadd.f32 %v2796_v22, %v2775_v50 }
 0x37c   : > { %v2858_v4 = vmul.f32 %v5881_v52, %v5865_v38  ;;  %v2825_v3 = vmul.f32 %v5822_v39, %v5782_v55  ;;  %v2887_v31 = vmul.f32 %v5903_v56, %v5874_v10  ;;  %v2886_v50 = vmul.f32 %v5903_v56, %v5850_v5 }
 0x37d   : > { %v2780_v20 = vadd.f32 %v2772_v28, %v2751_v2  ;;  %v2837_v25 = vadd.f32 %v2829_v36, %v2808_v37  ;;  %v2859_v11 = vmul.f32 %v5881_v52, %v2846_v24  ;;  %v2864_v48 = vadd.f32 %v2856_v8, %v2835_v42  ;;  %v2782_v2 = vld [vmem:[#allocation7 + $0x12] sm:$0xff] }
 0x37e   : > { %v2826_v54 = vmul.f32 %v5822_v39, %v5765_v44  ;;  %v2833_v43 = vadd.f32 %v2825_v3, %v2804_v60  ;;  %v2917_v26 = vmul.f32 %v5796_v49, %v2817_v59  ;;  %v2894_v22 = vadd.f32 %v2886_v50, %v2865_v51 }
 0x37f   : > { %v2809_v27 = vadd.f32 %v2801_v41, %v2780_v20  ;;  %v2866_v7 = vadd.f32 %v2858_v4, %v2837_v25  ;;  %v2888_v28 = vmul.f32 %v5903_v56, %v2875_v19  ;;  %v2946_v37 = vmul.f32 %v5808_v53, %v2846_v24 }
 0x380   : > { %v2885_v36 = vmul.f32 %v5903_v56, %v5799_v6  ;;  %v2834_v41 = vadd.f32 %v2826_v54, %v2805_v15  ;;  %v2915_v20 = vmul.f32 %v5796_v49, %v5815_v17  ;;  %v2916_v60 = vmul.f32 %v5796_v49, %v2730_v63 }
 0x381   : > { %v2838_v61 = vadd.f32 %v2830_v23, %v2809_v27  ;;  %v2895_v58 = vadd.f32 %v2887_v31, %v2866_v7  ;;  %v2854_v59 = vmul.f32 %v5881_v52, %v5846_v46  ;;  %v2855_v25 = vmul.f32 %v5881_v52, %v5789_v21 }
 0x382   : > { %v2795_v4 = vmul.f32 %v5763_v9, %v2782_v2  ;;  %v2824_v24 = vmul.f32 %v5822_v39, %v5774_v33  ;;  %v2893_v8 = vadd.f32 %v2885_v36, %v2864_v48  ;;  %v2924_v15 = vadd.f32 %v2916_v60, %v2894_v22 }
 0x383   : > { %v2867_v40 = vadd.f32 %v2859_v11, %v2838_v61  ;;  %v2925_v42 = vadd.f32 %v2917_v26, %v2895_v58  ;;  %v2862_v3 = vadd.f32 %v2854_v59, %v2833_v43  ;;  %v2863_v27 = vadd.f32 %v2855_v25, %v2834_v41 }
 0x384   : > { %v2803_v17 = vadd.f32 %v2795_v4, %v5863_v13  ;;  %v2823_v63 = vmul.f32 %v5822_v39, %v5769_v47  ;;  %v2975_v31 = vmul.f32 %v5838_v30, %v2875_v19  ;;  %v2923_v50 = vadd.f32 %v2915_v20, %v2893_v8 }
 0x385   : > { %v2896_v51 = vadd.f32 %v2888_v28, %v2867_v40  ;;  %v2954_v23 = vadd.f32 %v2946_v37, %v2925_v42  ;;  %v2945_v9 = vmul.f32 %v5808_v53, %v5865_v38  ;;  %v2883_v11 = vmul.f32 %v5903_v56, %v5883_v14 }
 0x386   : > { %v2884_v48 = vmul.f32 %v5903_v56, %v5840_v57  ;;  %v2914_v13 = vmul.f32 %v5796_v49, %v5752_v32  ;;  %v2832_v54 = vadd.f32 %v2824_v24, %v2803_v17  ;;  %v2853_v38 = vmul.f32 %v5881_v52, %v5810_v16 }
 0x387   : > { %v2926_v7 = vadd.f32 %v5825_v18, %v2896_v51  ;;  %v2983_v39 = vadd.f32 %v2975_v31, %v2954_v23  ;;  %v2944_v18 = vmul.f32 %v5808_v53, %v5817_v0  ;;  %v2953_v19 = vadd.f32 %v2945_v9, %v2924_v15 }
 0x388   : > { %v2892_v43 = vadd.f32 %v2884_v48, %v2863_v27  ;;  %v2974_v26 = vmul.f32 %v5838_v30, %v5874_v10  ;;  %v2891_v22 = vadd.f32 %v2883_v11, %v2862_v3  ;;  %v2913_v32 = vmul.f32 %v5796_v49, %v5765_v44 }
 0x389   : > { %v2955_v47 = vadd.f32 %v5828_v45, %v2926_v7  ;;  %v2952_v58 = vadd.f32 %v2944_v18, %v2923_v50  ;;  %v2831_v28 = vadd.f32 %v2823_v63, %v5813_v35  ;;  %v2861_v37 = vadd.f32 %v2853_v38, %v2832_v54 }
 0x38a   : > { %v2922_v45 = vadd.f32 %v2914_v13, %v2892_v43  ;;  %v2991_v0 = vmax.f32 %v2983_v39, 0.0  ;;  %v2973_v41 = vmul.f32 %v5838_v30, %v5850_v5  ;;  %v2982_v40 = vadd.f32 %v2974_v26, %v2953_v19 }
 0x38b   : > { %v2984_v61 = vadd.f32 %v5853_v1, %v2955_v47  ;;  %v2852_v1 = vmul.f32 %v5881_v52, %v5803_v62  ;;  %v2882_v10 = vmul.f32 %v5903_v56, %v5861_v34  ;;  %v2921_v60 = vadd.f32 %v2913_v32, %v2891_v22 }
 0x38c   : > { %v2981_v20 = vadd.f32 %v2973_v41, %v2952_v58  ;;  %v2943_v44 = vmul.f32 %v5808_v53, %v5778_v12  ;;  %v2942_v35 = vmul.f32 %v5808_v53, %v5789_v21  ;;  %v2990_v5 = vmax.f32 %v2982_v40, 0.0 }
 0x38d   : > { %v2992_v36 = vmax.f32 %v2984_v61, 0.0  ;;  %v2860_v59 = vadd.f32 %v2852_v1, %v2831_v28  ;;  %v2890_v24 = vadd.f32 %v2882_v10, %v2861_v37  ;;  %v2881_v62 = vmul.f32 %v5903_v56, %v2782_v2 }
 0x38e   : > { %v2951_v4 = vadd.f32 %v2943_v44, %v2922_v45  ;;  %v2911_v52 = vmul.f32 %v5796_v49, %v5774_v33  ;;  %v2989_v51 = vmax.f32 %v2981_v20, 0.0  ;;  %v2950_v23 = vadd.f32 %v2942_v35, %v2921_v60 }
 0x38f   : > { %v2996_v42 = vpack.c.bf16 %v2992_v36, %v2991_v0  ;;  %v2972_v12 = vmul.f32 %v5838_v30, %v5799_v6  ;;  %v2912_v21 = vmul.f32 %v5796_v49, %v5782_v55  ;;  %v2889_v8 = vadd.f32 %v2881_v62, %v2860_v59 }
 0x390   : > { %v2995_v15 = vpack.c.bf16 %v2990_v5, %v2989_v51  ;;  %v2971_v3 = vmul.f32 %v5838_v30, %v5840_v57  ;;  %v2941_v33 = vmul.f32 %v5808_v53, %v5846_v46  ;;  %v2940_v6 = vmul.f32 %v5808_v53, %v5810_v16 }
 0x391   : > { %v3340_v25 = vsel %vm2353_vm11, %v2996_v42, 0  ;;  %v2980_v27 = vadd.f32 %v2972_v12, %v2951_v4  ;;  %v2920_v56 = vadd.f32 %v2912_v21, %v2890_v24  ;;  %v2919_v17 = vadd.f32 %v2911_v52, %v2889_v8 }
 0x392   : > { %3906 = vmatpush3.bf16.xpose.msra.mxu1 %v3340_v25  ;;  %v2979_v2 = vadd.f32 %v2971_v3, %v2950_v23  ;;  %v3337_v63 = vsel %vm2353_vm11, %v2995_v15, 0  ;;  %v2970_v57 = vmul.f32 %v5838_v30, %v5883_v14  ;;  %v2969_v9 = vmul.f32 %v5838_v30, %v5861_v34  ;;  %v3270_v14 = vld [vmem:[%s6009_s9] sm:$0xf] }
 0x393   : > { %3907 = vmatprep.subr.bf16.mxu1 %v3959_v29  ;;  %v2988_v7 = vmax.f32 %v2980_v27, 0.0  ;;  %v2949_v31 = vadd.f32 %v2941_v33, %v2920_v56  ;;  %v2948_v49 = vadd.f32 %v2940_v6, %v2919_v17 }
 0x394   : > { %v2987_v55 = vmax.f32 %v2979_v2, 0.0 }
 0x395   : > { %v2978_v46 = vadd.f32 %v2970_v57, %v2949_v31  ;;  %v2977_v11 = vadd.f32 %v2969_v9, %v2948_v49 }
 0x396   : > { %v2994_v50 = vpack.c.bf16 %v2988_v7, %v2987_v55 }
 0x397   : > { %v2986_v13 = vmax.f32 %v2978_v46, 0.0  ;;  %v2985_v53 = vmax.f32 %v2977_v11, 0.0 }
 0x398   : > { %v3334_v48 = vsel %vm2353_vm11, %v2994_v50, 0 }
 0x399   : > { %v2993_v16 = vpack.c.bf16 %v2986_v13, %v2985_v53 }
 0x39a   : > { %3908 = vmatpush3.bf16.xpose.msra.mxu1 %v3337_v63 }
 0x39b   : > { %3909 = vmatprep.subr.bf16.mxu1 %v3959_v29  ;;  %v3331_v54 = vsel %vm2353_vm11, %v2993_v16, 0 }
 0x3a2   : > { %3910 = vmatpush3.bf16.xpose.msra.mxu1 %v3334_v48 }
 0x3a3   : > { %3911 = vmatprep.subr.bf16.mxu1 %v3959_v29  ;;  %v3386_v19 = vpop.permute.xlu0 %3385 }
 0x3aa   : > { %3912 = vmatpush3.bf16.xpose.msra.mxu1 %v3331_v54 }
 0x3b1   : > { %3914 = vmatmul.mubr.msk.bf16.vlgmr.msra.gmra.mxu1 %vm2353_vm11, %v3270_v14 }
 0x3c6   : > { %v3321_v30 = vpop.f32.mrf.mxu1 }
 0x3c8   : > { %v3903_v34 = vpop.f32.mrf.mxu1 }
 0x3ca   : > { %v3324_v47 = vpop.f32.mrf.mxu1 }
 0x3cc   : > { %v3904_v39 = vpop.f32.mrf.mxu1 }
 0x471   : > { %v3376_v18 = vpop.f32.mrf.mxu1 }
 0x472   : > { %v3377_v43 = vadd.f32 %v3376_v18, %v3321_v30 }
 0x473   : > { %v3915_v29 = vpop.f32.mrf.mxu1 }
 0x474   : > { %v3388_v38 = vadd.f32 %v3386_v19, %v3377_v43 }
 0x475   : > { %v3379_v61 = vpop.f32.mrf.mxu1 }
 0x476   : > { %v3389_v58 = vmax.f32 %v3388_v38, 0.0 }
 0x477   : > { %v3916_v26 = vpop.f32.mrf.mxu1 }
 0x478   : > { %3391 = vst.msk [vmem:[%s411_s17] sm:$0xff] %vm3390_vm15, %v3389_v58 }
 0x479 PF: > { %s22_s21 = sadd.s32 1, %s3949_s21  }
 0x47a   : > { %p19_p4 = scmp.ge.s32.totalorder %s22_s21, 4  }
 0x47c   :  { %21 = sbr.rel (!%p19_p4) target bundleno = 1 (0x1), region = 113 }

</bundles_post_ra>
